<compile_context>
chip_gen: v6e
topology: v6e:2x2x1
jax: 0.10.0
libtpu: 0.0.40
codegen_flags: <defaults>
</compile_context>

<pallas_src>
import jax
import jax.numpy as jnp
from jax import lax
from jax.experimental import pallas as pl
from jax.experimental.pallas import tpu as pltpu

BN_EPS = 5e-5
K = 3
LANES = 128


# ------------- pass 1: polyphase transposed conv + per-tile BN partial stats -------------
def _convt_phase_kernel(xa_ref, xb_ref, w0_ref, w1_ref, w2_ref, w3_ref,
                        o_ref, stats_ref):
    """
    xa_ref : (1, TH, W+1, Cin)  input rows m   (right column zero-padded)
    xb_ref : (1, TH, W+1, Cin)  input rows m+1 (right column + last row zero-padded)
    w0_ref : (Cin, 4*Cp)  weights hit by x[m,  n  ]: phases [ee|eo|oe|oo] = taps w11,w12,w21,w22
    w1_ref : (Cin, 2*Cp)  weights hit by x[m,  n+1]: phases [eo|oo]       = taps w10,w20
    w2_ref : (Cin, 2*Cp)  weights hit by x[m+1,n  ]: phases [oe|oo]       = taps w01,w02
    w3_ref : (Cin, 1*Cp)  weights hit by x[m+1,n+1]: phase  [oo]          = tap  w00
    o_ref  : (1, 2, 2, TH, W, Cp)  phase-major conv output, index (dh, dw, m, n, c)
    stats_ref : (1, 1, 2, Cp)      per-tile per-channel [sum ; sum-of-squares]
    """
    xa = xa_ref[0]                       # (TH, W+1, Cin)
    xb = xb_ref[0]
    TH, Wp1, _ = xa.shape
    W = Wp1 - 1
    Cp = o_ref.shape[-1]

    a0 = xa[:, :W, :]                    # x[m,   n  ]
    a1 = xa[:, 1:, :]                    # x[m,   n+1]
    b0 = xb[:, :W, :]                    # x[m+1, n  ]
    b1 = xb[:, 1:, :]                    # x[m+1, n+1]

    def mm(p, w):                        # (TH,W,Cin) x (Cin,Nc) -> (TH,W,Nc) on the MXU
        return jnp.einsum("hwc,cd->hwd", p, w, preferred_element_type=jnp.float32)

    r0 = mm(a0, w0_ref[...])             # (TH, W, 4*Cp)
    r1 = mm(a1, w1_ref[...])             # (TH, W, 2*Cp)
    r2 = mm(b0, w2_ref[...])             # (TH, W, 2*Cp)
    r3 = mm(b1, w3_ref[...])             # (TH, W, 1*Cp)

    # lane-aligned (multiples of 128) column slices -> phase results
    ee = r0[..., 0 * Cp:1 * Cp]
    eo = r0[..., 1 * Cp:2 * Cp] + r1[..., 0 * Cp:1 * Cp]
    oe = r0[..., 2 * Cp:3 * Cp] + r2[..., 0 * Cp:1 * Cp]
    oo = (r0[..., 3 * Cp:4 * Cp] + r1[..., 1 * Cp:2 * Cp]
          + r2[..., 1 * Cp:2 * Cp] + r3)

    o_ref[0, 0, 0] = ee                  # out[2m,   2n  ]
    o_ref[0, 0, 1] = eo                  # out[2m,   2n+1]
    o_ref[0, 1, 0] = oe                  # out[2m+1, 2n  ]
    o_ref[0, 1, 1] = oo                  # out[2m+1, 2n+1]

    # single-pass BN partials for this tile (sum and sum of squares per channel)
    psum = (ee + eo + oe + oo).sum(axis=0).sum(axis=0, keepdims=True)               # (1, Cp)
    psq = (ee * ee + eo * eo + oe * oe + oo * oo).sum(axis=0).sum(axis=0, keepdims=True)
    stats_ref[0, 0, 0:1, :] = psum
    stats_ref[0, 0, 1:2, :] = psq


# ------------- pass 2: normalize (exact batch stats) + ReLU -------------
def _bn_relu_kernel(y_ref, scale_ref, shift_ref, o_ref):
    o_ref[...] = jnp.maximum(y_ref[...] * scale_ref[...] + shift_ref[...], 0.0)


def conv2d_transpose_unit(x_nchw, w_t, gamma, beta):
    """x_nchw: (B,Cin,H,W), w_t: (Cin,Cout,3,3) (PyTorch ConvTranspose2d layout),
    gamma/beta: (Cout,).  Returns (B, Cout, 2H, 2W) NCHW float32."""
    B, Cin, H, W = x_nchw.shape
    Cout = w_t.shape[1]
    Ho, Wo = 2 * H, 2 * W
    Cp = ((Cout + LANES - 1) // LANES) * LANES            # lane-dense channel padding
    TH = 8 if H % 8 == 0 else H                           # halo-free row tile
    nH = H // TH
    Wp1 = W + 1

    # ---- layout plumbing (cheap, small input) ----
    x = jnp.transpose(x_nchw, (0, 2, 3, 1)).astype(jnp.float32)          # NHWC
    xp = jnp.pad(x, ((0, 0), (0, 1), (0, 1), (0, 0)))                    # (B, H+1, W+1, Cin)
    xa = xp[:, :H, :, :]           # rows m   (right column zero)
    xb = xp[:, 1:H + 1, :, :]      # rows m+1 (right column zero, bottom row zero)

    w = w_t.astype(jnp.float32)                                          # (Cin, Cout, 3, 3)

    def padc(m):                                                         # (Cin,Cout)->(Cin,Cp)
        return jnp.pad(m, ((0, 0), (0, Cp - Cout)))

    # ConvTranspose2d: out[2m+dh, 2n+dw] += x[ih,iw] * w[kh,kw]
    # with 2m+dh = 2*ih - 1 + kh, 2n+dw = 2*iw - 1 + kw  (stride 2, pad 1, op 1):
    #   ee: x[m,n]*w[1,1]
    #   eo: x[m,n]*w[1,2] + x[m,n+1]*w[1,0]
    #   oe: x[m,n]*w[2,1] + x[m+1,n]*w[0,1]
    #   oo: x[m,n]*w[2,2] + x[m,n+1]*w[2,0] + x[m+1,n]*w[0,2] + x[m+1,n+1]*w[0,0]
    w0 = jnp.concatenate([padc(w[:, :, 1, 1]), padc(w[:, :, 1, 2]),
                          padc(w[:, :, 2, 1]), padc(w[:, :, 2, 2])], axis=1)   # (Cin, 4Cp)
    w1 = jnp.concatenate([padc(w[:, :, 1, 0]), padc(w[:, :, 2, 0])], axis=1)   # (Cin, 2Cp)
    w2 = jnp.concatenate([padc(w[:, :, 0, 1]), padc(w[:, :, 0, 2])], axis=1)   # (Cin, 2Cp)
    w3 = padc(w[:, :, 0, 0])                                                   # (Cin, Cp)

    grid = (B, nH)
    cparams = pltpu.CompilerParams(
        dimension_semantics=("parallel", "parallel"),
        vmem_limit_bytes=32 * 1024 * 1024)

    flops1 = 2 * B * H * W * 9 * Cin * Cp
    bytes1 = 4 * (2 * B * H * Wp1 * Cin + 9 * Cin * Cp
                  + 4 * B * H * W * Cp + B * nH * 2 * Cp)

    conv_out, stats = pl.pallas_call(
        _convt_phase_kernel,
        grid=grid,
        in_specs=[
            pl.BlockSpec((1, TH, Wp1, Cin), lambda b, h: (b, h, 0, 0)),
            pl.BlockSpec((1, TH, Wp1, Cin), lambda b, h: (b, h, 0, 0)),
            pl.BlockSpec((Cin, 4 * Cp), lambda b, h: (0, 0)),
            pl.BlockSpec((Cin, 2 * Cp), lambda b, h: (0, 0)),
            pl.BlockSpec((Cin, 2 * Cp), lambda b, h: (0, 0)),
            pl.BlockSpec((Cin, 1 * Cp), lambda b, h: (0, 0)),
        ],
        out_specs=[
            pl.BlockSpec((1, 2, 2, TH, W, Cp), lambda b, h: (b, 0, 0, h, 0, 0)),
            pl.BlockSpec((1, 1, 2, Cp), lambda b, h: (b, h, 0, 0)),
        ],
        out_shape=[
            jax.ShapeDtypeStruct((B, 2, 2, H, W, Cp), jnp.float32),
            jax.ShapeDtypeStruct((B, nH, 2, Cp), jnp.float32),
        ],
        compiler_params=cparams,
        cost_estimate=pl.CostEstimate(flops=flops1, transcendentals=0,
                                      bytes_accessed=bytes1),
    )(xa, xb, w0, w1, w2, w3)

    # ---- tiny cross-tile BN reduction -> exact batch statistics (training mode) ----
    n_elems = jnp.float32(B * Ho * Wo)
    ssum = stats[:, :, 0, :].sum(axis=(0, 1))              # (Cp,)
    ssq = stats[:, :, 1, :].sum(axis=(0, 1))
    mean = ssum / n_elems
    var = jnp.maximum(ssq / n_elems - mean * mean, 0.0)    # biased variance, like PyTorch BN
    inv = lax.rsqrt(var + BN_EPS)
    gamma_p = jnp.pad(gamma.astype(jnp.float32), (0, Cp - Cout), constant_values=1.0)
    beta_p = jnp.pad(beta.astype(jnp.float32), (0, Cp - Cout))
    scale = (gamma_p * inv).reshape(1, 1, 1, 1, 1, Cp)
    shift = (beta_p - mean * gamma_p * inv).reshape(1, 1, 1, 1, 1, Cp)

    numel = B * 4 * H * W * Cp
    y = pl.pallas_call(
        _bn_relu_kernel,
        grid=grid,
        in_specs=[
            pl.BlockSpec((1, 2, 2, TH, W, Cp), lambda b, h: (b, 0, 0, h, 0, 0)),
            pl.BlockSpec((1, 1, 1, 1, 1, Cp), lambda b, h: (0, 0, 0, 0, 0, 0)),
            pl.BlockSpec((1, 1, 1, 1, 1, Cp), lambda b, h: (0, 0, 0, 0, 0, 0)),
        ],
        out_specs=pl.BlockSpec((1, 2, 2, TH, W, Cp), lambda b, h: (b, 0, 0, h, 0, 0)),
        out_shape=jax.ShapeDtypeStruct((B, 2, 2, H, W, Cp), jnp.float32),
        compiler_params=cparams,
        cost_estimate=pl.CostEstimate(flops=3 * numel, transcendentals=0,
                                      bytes_accessed=8 * numel),
    )(conv_out, scale, shift)

    # ---- phase interleave + channel slice + NCHW (pure layout, handled by XLA) ----
    y = y[..., :Cout]                                      # (B, 2, 2, H, W, Cout)
    y = jnp.transpose(y, (0, 5, 3, 1, 4, 2))               # (B, Cout, H, 2, W, 2)
    return y.reshape(B, Cout, Ho, Wo)


def _reference(x_nchw, w_t, gamma, beta):
    """Pure-JAX reference (XLA conv) with identical semantics, for validation."""
    Cout = w_t.shape[1]
    w_oihw = jnp.transpose(w_t[:, :, ::-1, ::-1], (1, 0, 2, 3))
    y = lax.conv_general_dilated(
        x_nchw, w_oihw, window_strides=(1, 1),
        padding=[(1, 2), (1, 2)], lhs_dilation=(2, 2),
        dimension_numbers=("NCHW", "OIHW", "NCHW"))
    mean = jnp.mean(y, axis=(0, 2, 3), keepdims=True)
    var = jnp.mean((y - mean) ** 2, axis=(0, 2, 3), keepdims=True)
    y = (y - mean) * lax.rsqrt(var + BN_EPS)
    y = y * gamma.reshape(1, Cout, 1, 1) + beta.reshape(1, Cout, 1, 1)
    return jnp.maximum(y, 0.0)


if __name__ == "__main__":
    key = jax.random.PRNGKey(0)
    kx, kw = jax.random.split(key)

    B, Cin, Cout, H, W = 2, 4, 8, 16, 16
    x = jax.random.normal(kx, (B, Cin, H, W), jnp.float32)
    # DCGAN-style ConvTranspose2d weight init N(0, 0.02), PyTorch layout (Cin, Cout, K, K)
    w_t = 0.02 * jax.random.normal(kw, (Cin, Cout, K, K), jnp.float32)
    gamma = jnp.ones((Cout,), jnp.float32)    # BatchNorm2d default affine init
    beta = jnp.zeros((Cout,), jnp.float32)

    fwd = jax.jit(conv2d_transpose_unit)
    out = jax.block_until_ready(fwd(x, w_t, gamma, beta))
    assert out.shape == (B, Cout, 2 * H, 2 * W), out.shape

    ref = jax.block_until_ready(_reference(x, w_t, gamma, beta))
    assert jnp.allclose(out, ref, atol=1e-4, rtol=1e-4), float(jnp.max(jnp.abs(out - ref)))

    print("KERNEL_OK")
</pallas_src>

<mosaic_0001>
module attributes {stable_mosaic.version = 11 : i64} {
  func.func @_convt_phase_kernel(%arg0: i32, %arg1: i32, %arg2: memref<1x8x17x4xf32, #tpu.memory_space<vmem>>, %arg3: memref<1x8x17x4xf32, #tpu.memory_space<vmem>>, %arg4: memref<4x512xf32, #tpu.memory_space<vmem>>, %arg5: memref<4x256xf32, #tpu.memory_space<vmem>>, %arg6: memref<4x256xf32, #tpu.memory_space<vmem>>, %arg7: memref<4x128xf32, #tpu.memory_space<vmem>>, %arg8: memref<1x2x2x8x16x128xf32, #tpu.memory_space<vmem>>, %arg9: memref<1x1x2x128xf32, #tpu.memory_space<vmem>>) attributes {dimension_semantics = [#tpu.dimension_semantics<parallel>, #tpu.dimension_semantics<parallel>], iteration_bounds = array<i64: 2, 2>, scalar_prefetch = 0 : i64, scratch_operands = 0 : i64, tpu.core_type = #tpu.core_type<tc>, window_params = [{transform_indices = @transform_0, window_bounds = array<i64: 1, 8, 17, 4>}, {transform_indices = @transform_1, window_bounds = array<i64: 1, 8, 17, 4>}, {pipeline_mode = #tpu.pipeline_mode<synchronous>, transform_indices = @transform_2, window_bounds = array<i64: 4, 512>}, {pipeline_mode = #tpu.pipeline_mode<synchronous>, transform_indices = @transform_3, window_bounds = array<i64: 4, 256>}, {pipeline_mode = #tpu.pipeline_mode<synchronous>, transform_indices = @transform_4, window_bounds = array<i64: 4, 256>}, {pipeline_mode = #tpu.pipeline_mode<synchronous>, transform_indices = @transform_5, window_bounds = array<i64: 4, 128>}, {transform_indices = @transform_6, window_bounds = array<i64: 1, 2, 2, 8, 16, 128>}, {transform_indices = @transform_7, window_bounds = array<i64: 1, 1, 2, 128>}]} {
    %c0 = arith.constant 0 : index
    %c0_0 = arith.constant 0 : index
    %c0_1 = arith.constant 0 : index
    %c0_2 = arith.constant 0 : index
    %0 = vector.load %arg2[%c0, %c0_0, %c0_1, %c0_2] : memref<1x8x17x4xf32, #tpu.memory_space<vmem>>, vector<1x8x17x4xf32>
    %1 = vector.shape_cast %0 : vector<1x8x17x4xf32> to vector<8x17x4xf32>
    %c0_3 = arith.constant 0 : index
    %c0_4 = arith.constant 0 : index
    %c0_5 = arith.constant 0 : index
    %c0_6 = arith.constant 0 : index
    %2 = vector.load %arg3[%c0_3, %c0_4, %c0_5, %c0_6] : memref<1x8x17x4xf32, #tpu.memory_space<vmem>>, vector<1x8x17x4xf32>
    %3 = vector.shape_cast %2 : vector<1x8x17x4xf32> to vector<8x17x4xf32>
    %4 = vector.extract_strided_slice %1 {offsets = [0, 0, 0], sizes = [8, 16, 4], strides = [1, 1, 1]} : vector<8x17x4xf32> to vector<8x16x4xf32>
    %5 = vector.extract_strided_slice %1 {offsets = [0, 1, 0], sizes = [8, 16, 4], strides = [1, 1, 1]} : vector<8x17x4xf32> to vector<8x16x4xf32>
    %6 = vector.extract_strided_slice %3 {offsets = [0, 0, 0], sizes = [8, 16, 4], strides = [1, 1, 1]} : vector<8x17x4xf32> to vector<8x16x4xf32>
    %7 = vector.extract_strided_slice %3 {offsets = [0, 1, 0], sizes = [8, 16, 4], strides = [1, 1, 1]} : vector<8x17x4xf32> to vector<8x16x4xf32>
    %c0_7 = arith.constant 0 : index
    %c0_8 = arith.constant 0 : index
    %8 = vector.load %arg4[%c0_7, %c0_8] : memref<4x512xf32, #tpu.memory_space<vmem>>, vector<4x512xf32>
    "tpu.trace_start"() <{level = 10 : i32, message = "hwc,cd->hwd"}> : () -> ()
    %cst = arith.constant dense<0.000000e+00> : vector<8x16x512xf32>
    %9 = tpu.matmul %4, %8, %cst {dimension_numbers = #tpu.dot_dimension_numbers<[2], [0], [0, 1], [1], [0, 0, 0, 1, 1, 1], [], []>} : vector<8x16x4xf32>, vector<4x512xf32>, vector<8x16x512xf32> -> vector<8x16x512xf32>
    "tpu.trace_stop"() : () -> ()
    %c0_9 = arith.constant 0 : index
    %c0_10 = arith.constant 0 : index
    %10 = vector.load %arg5[%c0_9, %c0_10] : memref<4x256xf32, #tpu.memory_space<vmem>>, vector<4x256xf32>
    "tpu.trace_start"() <{level = 10 : i32, message = "hwc,cd->hwd"}> : () -> ()
    %cst_11 = arith.constant dense<0.000000e+00> : vector<8x16x256xf32>
    %11 = tpu.matmul %5, %10, %cst_11 {dimension_numbers = #tpu.dot_dimension_numbers<[2], [0], [0, 1], [1], [0, 0, 0, 1, 1, 1], [], []>} : vector<8x16x4xf32>, vector<4x256xf32>, vector<8x16x256xf32> -> vector<8x16x256xf32>
    "tpu.trace_stop"() : () -> ()
    %c0_12 = arith.constant 0 : index
    %c0_13 = arith.constant 0 : index
    %12 = vector.load %arg6[%c0_12, %c0_13] : memref<4x256xf32, #tpu.memory_space<vmem>>, vector<4x256xf32>
    "tpu.trace_start"() <{level = 10 : i32, message = "hwc,cd->hwd"}> : () -> ()
    %cst_14 = arith.constant dense<0.000000e+00> : vector<8x16x256xf32>
    %13 = tpu.matmul %6, %12, %cst_14 {dimension_numbers = #tpu.dot_dimension_numbers<[2], [0], [0, 1], [1], [0, 0, 0, 1, 1, 1], [], []>} : vector<8x16x4xf32>, vector<4x256xf32>, vector<8x16x256xf32> -> vector<8x16x256xf32>
    "tpu.trace_stop"() : () -> ()
    %c0_15 = arith.constant 0 : index
    %c0_16 = arith.constant 0 : index
    %14 = vector.load %arg7[%c0_15, %c0_16] : memref<4x128xf32, #tpu.memory_space<vmem>>, vector<4x128xf32>
    "tpu.trace_start"() <{level = 10 : i32, message = "hwc,cd->hwd"}> : () -> ()
    %cst_17 = arith.constant dense<0.000000e+00> : vector<8x16x128xf32>
    %15 = tpu.matmul %7, %14, %cst_17 {dimension_numbers = #tpu.dot_dimension_numbers<[2], [0], [0, 1], [1], [0, 0, 0, 1, 1, 1], [], []>} : vector<8x16x4xf32>, vector<4x128xf32>, vector<8x16x128xf32> -> vector<8x16x128xf32>
    "tpu.trace_stop"() : () -> ()
    %16 = vector.extract_strided_slice %9 {offsets = [0, 0, 0], sizes = [8, 16, 128], strides = [1, 1, 1]} : vector<8x16x512xf32> to vector<8x16x128xf32>
    %17 = vector.extract_strided_slice %9 {offsets = [0, 0, 128], sizes = [8, 16, 128], strides = [1, 1, 1]} : vector<8x16x512xf32> to vector<8x16x128xf32>
    %18 = vector.extract_strided_slice %11 {offsets = [0, 0, 0], sizes = [8, 16, 128], strides = [1, 1, 1]} : vector<8x16x256xf32> to vector<8x16x128xf32>
    %19 = arith.addf %17, %18 : vector<8x16x128xf32>
    %20 = vector.extract_strided_slice %9 {offsets = [0, 0, 256], sizes = [8, 16, 128], strides = [1, 1, 1]} : vector<8x16x512xf32> to vector<8x16x128xf32>
    %21 = vector.extract_strided_slice %13 {offsets = [0, 0, 0], sizes = [8, 16, 128], strides = [1, 1, 1]} : vector<8x16x256xf32> to vector<8x16x128xf32>
    %22 = arith.addf %20, %21 : vector<8x16x128xf32>
    %23 = vector.extract_strided_slice %9 {offsets = [0, 0, 384], sizes = [8, 16, 128], strides = [1, 1, 1]} : vector<8x16x512xf32> to vector<8x16x128xf32>
    %24 = vector.extract_strided_slice %11 {offsets = [0, 0, 128], sizes = [8, 16, 128], strides = [1, 1, 1]} : vector<8x16x256xf32> to vector<8x16x128xf32>
    %25 = arith.addf %23, %24 : vector<8x16x128xf32>
    %26 = vector.extract_strided_slice %13 {offsets = [0, 0, 128], sizes = [8, 16, 128], strides = [1, 1, 1]} : vector<8x16x256xf32> to vector<8x16x128xf32>
    %27 = arith.addf %25, %26 : vector<8x16x128xf32>
    %28 = arith.addf %27, %15 : vector<8x16x128xf32>
    %c0_18 = arith.constant 0 : index
    %c0_19 = arith.constant 0 : index
    %c0_20 = arith.constant 0 : index
    %c0_21 = arith.constant 0 : index
    %c0_22 = arith.constant 0 : index
    %c0_23 = arith.constant 0 : index
    %29 = vector.load %arg8[%c0_18, %c0_19, %c0_20, %c0_21, %c0_22, %c0_23] : memref<1x2x2x8x16x128xf32, #tpu.memory_space<vmem>>, vector<1x1x1x8x16x128xf32>
    %30 = vector.shape_cast %29 : vector<1x1x1x8x16x128xf32> to vector<8x16x128xf32>
    %31 = vector.shape_cast %16 : vector<8x16x128xf32> to vector<1x1x1x8x16x128xf32>
    tpu.vector_store %arg8[%c0_18, %c0_19, %c0_20, %c0_21, %c0_22, %c0_23], %31 {strides = array<i32>} : memref<1x2x2x8x16x128xf32, #tpu.memory_space<vmem>>, vector<1x1x1x8x16x128xf32>,
    %c0_24 = arith.constant 0 : index
    %c0_25 = arith.constant 0 : index
    %c1 = arith.constant 1 : index
    %c0_26 = arith.constant 0 : index
    %c0_27 = arith.constant 0 : index
    %c0_28 = arith.constant 0 : index
    %32 = vector.load %arg8[%c0_24, %c0_25, %c1, %c0_26, %c0_27, %c0_28] : memref<1x2x2x8x16x128xf32, #tpu.memory_space<vmem>>, vector<1x1x1x8x16x128xf32>
    %33 = vector.shape_cast %32 : vector<1x1x1x8x16x128xf32> to vector<8x16x128xf32>
    %34 = vector.shape_cast %19 : vector<8x16x128xf32> to vector<1x1x1x8x16x128xf32>
    tpu.vector_store %arg8[%c0_24, %c0_25, %c1, %c0_26, %c0_27, %c0_28], %34 {strides = array<i32>} : memref<1x2x2x8x16x128xf32, #tpu.memory_space<vmem>>, vector<1x1x1x8x16x128xf32>,
    %c0_29 = arith.constant 0 : index
    %c1_30 = arith.constant 1 : index
    %c0_31 = arith.constant 0 : index
    %c0_32 = arith.constant 0 : index
    %c0_33 = arith.constant 0 : index
    %c0_34 = arith.constant 0 : index
    %35 = vector.load %arg8[%c0_29, %c1_30, %c0_31, %c0_32, %c0_33, %c0_34] : memref<1x2x2x8x16x128xf32, #tpu.memory_space<vmem>>, vector<1x1x1x8x16x128xf32>
    %36 = vector.shape_cast %35 : vector<1x1x1x8x16x128xf32> to vector<8x16x128xf32>
    %37 = vector.shape_cast %22 : vector<8x16x128xf32> to vector<1x1x1x8x16x128xf32>
    tpu.vector_store %arg8[%c0_29, %c1_30, %c0_31, %c0_32, %c0_33, %c0_34], %37 {strides = array<i32>} : memref<1x2x2x8x16x128xf32, #tpu.memory_space<vmem>>, vector<1x1x1x8x16x128xf32>,
    %c0_35 = arith.constant 0 : index
    %c1_36 = arith.constant 1 : index
    %c1_37 = arith.constant 1 : index
    %c0_38 = arith.constant 0 : index
    %c0_39 = arith.constant 0 : index
    %c0_40 = arith.constant 0 : index
    %38 = vector.load %arg8[%c0_35, %c1_36, %c1_37, %c0_38, %c0_39, %c0_40] : memref<1x2x2x8x16x128xf32, #tpu.memory_space<vmem>>, vector<1x1x1x8x16x128xf32>
    %39 = vector.shape_cast %38 : vector<1x1x1x8x16x128xf32> to vector<8x16x128xf32>
    %40 = vector.shape_cast %28 : vector<8x16x128xf32> to vector<1x1x1x8x16x128xf32>
    tpu.vector_store %arg8[%c0_35, %c1_36, %c1_37, %c0_38, %c0_39, %c0_40], %40 {strides = array<i32>} : memref<1x2x2x8x16x128xf32, #tpu.memory_space<vmem>>, vector<1x1x1x8x16x128xf32>,
    %41 = arith.addf %16, %19 : vector<8x16x128xf32>
    %42 = arith.addf %41, %22 : vector<8x16x128xf32>
    %43 = arith.addf %42, %28 : vector<8x16x128xf32>
    %cst_41 = arith.constant dense<0.000000e+00> : vector<16x128xf32>
    %44 = vector.multi_reduction <add>, %43, %cst_41 [0] : vector<8x16x128xf32> to vector<16x128xf32>
    %cst_42 = arith.constant dense<0.000000e+00> : vector<128xf32>
    %45 = vector.multi_reduction <add>, %44, %cst_42 [0] : vector<16x128xf32> to vector<128xf32>
    %46 = vector.shape_cast %45 : vector<128xf32> to vector<1x128xf32>
    %47 = arith.mulf %16, %16 : vector<8x16x128xf32>
    %48 = arith.mulf %19, %19 : vector<8x16x128xf32>
    %49 = arith.addf %47, %48 : vector<8x16x128xf32>
    %50 = arith.mulf %22, %22 : vector<8x16x128xf32>
    %51 = arith.addf %49, %50 : vector<8x16x128xf32>
    %52 = arith.mulf %28, %28 : vector<8x16x128xf32>
    %53 = arith.addf %51, %52 : vector<8x16x128xf32>
    %cst_43 = arith.constant dense<0.000000e+00> : vector<16x128xf32>
    %54 = vector.multi_reduction <add>, %53, %cst_43 [0] : vector<8x16x128xf32> to vector<16x128xf32>
    %cst_44 = arith.constant dense<0.000000e+00> : vector<128xf32>
    %55 = vector.multi_reduction <add>, %54, %cst_44 [0] : vector<16x128xf32> to vector<128xf32>
    %56 = vector.shape_cast %55 : vector<128xf32> to vector<1x128xf32>
    %c0_45 = arith.constant 0 : index
    %c0_46 = arith.constant 0 : index
    %c0_47 = arith.constant 0 : index
    %c0_48 = arith.constant 0 : index
    %57 = vector.load %arg9[%c0_45, %c0_46, %c0_47, %c0_48] : memref<1x1x2x128xf32, #tpu.memory_space<vmem>>, vector<1x1x1x128xf32>
    %58 = vector.shape_cast %57 : vector<1x1x1x128xf32> to vector<1x128xf32>
    %59 = vector.shape_cast %46 : vector<1x128xf32> to vector<1x1x1x128xf32>
    tpu.vector_store %arg9[%c0_45, %c0_46, %c0_47, %c0_48], %59 {strides = array<i32>} : memref<1x1x2x128xf32, #tpu.memory_space<vmem>>, vector<1x1x1x128xf32>,
    %c0_49 = arith.constant 0 : index
    %c0_50 = arith.constant 0 : index
    %c1_51 = arith.constant 1 : index
    %c0_52 = arith.constant 0 : index
    %60 = vector.load %arg9[%c0_49, %c0_50, %c1_51, %c0_52] : memref<1x1x2x128xf32, #tpu.memory_space<vmem>>, vector<1x1x1x128xf32>
    %61 = vector.shape_cast %60 : vector<1x1x1x128xf32> to vector<1x128xf32>
    %62 = vector.shape_cast %56 : vector<1x128xf32> to vector<1x1x1x128xf32>
    tpu.vector_store %arg9[%c0_49, %c0_50, %c1_51, %c0_52], %62 {strides = array<i32>} : memref<1x1x2x128xf32, #tpu.memory_space<vmem>>, vector<1x1x1x128xf32>,
    return
  }
  func.func @transform_0(%arg0: i32, %arg1: i32) -> (i32, i32, i32, i32) {
    %c0_i32 = arith.constant 0 : i32
    %c0_i32_0 = arith.constant 0 : i32
    %c0_i32_1 = arith.constant 0 : i32
    return %arg0, %arg1, %c0_i32, %c0_i32_0 : i32, i32, i32, i32
  }
  func.func @transform_1(%arg0: i32, %arg1: i32) -> (i32, i32, i32, i32) {
    %c0_i32 = arith.constant 0 : i32
    %c0_i32_0 = arith.constant 0 : i32
    %c0_i32_1 = arith.constant 0 : i32
    return %arg0, %arg1, %c0_i32, %c0_i32_0 : i32, i32, i32, i32
  }
  func.func @transform_2(%arg0: i32, %arg1: i32) -> (i32, i32) {
    %c0_i32 = arith.constant 0 : i32
    %c0_i32_0 = arith.constant 0 : i32
    %c0_i32_1 = arith.constant 0 : i32
    return %c0_i32, %c0_i32_0 : i32, i32
  }
  func.func @transform_3(%arg0: i32, %arg1: i32) -> (i32, i32) {
    %c0_i32 = arith.constant 0 : i32
    %c0_i32_0 = arith.constant 0 : i32
    %c0_i32_1 = arith.constant 0 : i32
    return %c0_i32, %c0_i32_0 : i32, i32
  }
  func.func @transform_4(%arg0: i32, %arg1: i32) -> (i32, i32) {
    %c0_i32 = arith.constant 0 : i32
    %c0_i32_0 = arith.constant 0 : i32
    %c0_i32_1 = arith.constant 0 : i32
    return %c0_i32, %c0_i32_0 : i32, i32
  }
  func.func @transform_5(%arg0: i32, %arg1: i32) -> (i32, i32) {
    %c0_i32 = arith.constant 0 : i32
    %c0_i32_0 = arith.constant 0 : i32
    %c0_i32_1 = arith.constant 0 : i32
    return %c0_i32, %c0_i32_0 : i32, i32
  }
  func.func @transform_6(%arg0: i32, %arg1: i32) -> (i32, i32, i32, i32, i32, i32) {
    %c0_i32 = arith.constant 0 : i32
    %c0_i32_0 = arith.constant 0 : i32
    %c0_i32_1 = arith.constant 0 : i32
    %c0_i32_2 = arith.constant 0 : i32
    %c0_i32_3 = arith.constant 0 : i32
    return %arg0, %c0_i32, %c0_i32_0, %arg1, %c0_i32_1, %c0_i32_2 : i32, i32, i32, i32, i32, i32
  }
  func.func @transform_7(%arg0: i32, %arg1: i32) -> (i32, i32, i32, i32) {
    %c0_i32 = arith.constant 0 : i32
    %c0_i32_0 = arith.constant 0 : i32
    %c0_i32_1 = arith.constant 0 : i32
    return %arg0, %arg1, %c0_i32, %c0_i32_0 : i32, i32, i32, i32
  }
}

module attributes {stable_mosaic.version = 11 : i64} {
  func.func @_bn_relu_kernel(%arg0: i32, %arg1: i32, %arg2: memref<1x2x2x8x16x128xf32, #tpu.memory_space<vmem>>, %arg3: memref<1x1x1x1x1x128xf32, #tpu.memory_space<vmem>>, %arg4: memref<1x1x1x1x1x128xf32, #tpu.memory_space<vmem>>, %arg5: memref<1x2x2x8x16x128xf32, #tpu.memory_space<vmem>>) attributes {dimension_semantics = [#tpu.dimension_semantics<parallel>, #tpu.dimension_semantics<parallel>], iteration_bounds = array<i64: 2, 2>, scalar_prefetch = 0 : i64, scratch_operands = 0 : i64, tpu.core_type = #tpu.core_type<tc>, window_params = [{transform_indices = @transform_0, window_bounds = array<i64: 1, 2, 2, 8, 16, 128>}, {pipeline_mode = #tpu.pipeline_mode<synchronous>, transform_indices = @transform_1, window_bounds = array<i64: 1, 1, 1, 1, 1, 128>}, {pipeline_mode = #tpu.pipeline_mode<synchronous>, transform_indices = @transform_2, window_bounds = array<i64: 1, 1, 1, 1, 1, 128>}, {transform_indices = @transform_3, window_bounds = array<i64: 1, 2, 2, 8, 16, 128>}]} {
    %c0 = arith.constant 0 : index
    %c0_0 = arith.constant 0 : index
    %c0_1 = arith.constant 0 : index
    %c0_2 = arith.constant 0 : index
    %c0_3 = arith.constant 0 : index
    %c0_4 = arith.constant 0 : index
    %0 = vector.load %arg2[%c0, %c0_0, %c0_1, %c0_2, %c0_3, %c0_4] : memref<1x2x2x8x16x128xf32, #tpu.memory_space<vmem>>, vector<1x2x2x8x16x128xf32>
    %c0_5 = arith.constant 0 : index
    %c0_6 = arith.constant 0 : index
    %c0_7 = arith.constant 0 : index
    %c0_8 = arith.constant 0 : index
    %c0_9 = arith.constant 0 : index
    %c0_10 = arith.constant 0 : index
    %1 = vector.load %arg3[%c0_5, %c0_6, %c0_7, %c0_8, %c0_9, %c0_10] : memref<1x1x1x1x1x128xf32, #tpu.memory_space<vmem>>, vector<1x1x1x1x1x128xf32>
    %2 = vector.broadcast %1 : vector<1x1x1x1x1x128xf32> to vector<1x2x2x8x16x128xf32>
    %3 = arith.mulf %0, %2 : vector<1x2x2x8x16x128xf32>
    %c0_11 = arith.constant 0 : index
    %c0_12 = arith.constant 0 : index
    %c0_13 = arith.constant 0 : index
    %c0_14 = arith.constant 0 : index
    %c0_15 = arith.constant 0 : index
    %c0_16 = arith.constant 0 : index
    %4 = vector.load %arg4[%c0_11, %c0_12, %c0_13, %c0_14, %c0_15, %c0_16] : memref<1x1x1x1x1x128xf32, #tpu.memory_space<vmem>>, vector<1x1x1x1x1x128xf32>
    %5 = vector.broadcast %4 : vector<1x1x1x1x1x128xf32> to vector<1x2x2x8x16x128xf32>
    %6 = arith.addf %3, %5 : vector<1x2x2x8x16x128xf32>
    %cst = arith.constant 0.000000e+00 : f32
    %7 = vector.broadcast %cst : f32 to vector<1x2x2x8x16x128xf32>
    %8 = arith.maximumf %6, %7 : vector<1x2x2x8x16x128xf32>
    %c0_17 = arith.constant 0 : index
    %c0_18 = arith.constant 0 : index
    %c0_19 = arith.constant 0 : index
    %c0_20 = arith.constant 0 : index
    %c0_21 = arith.constant 0 : index
    %c0_22 = arith.constant 0 : index
    %9 = vector.load %arg5[%c0_17, %c0_18, %c0_19, %c0_20, %c0_21, %c0_22] : memref<1x2x2x8x16x128xf32, #tpu.memory_space<vmem>>, vector<1x2x2x8x16x128xf32>
    tpu.vector_store %arg5[%c0_17, %c0_18, %c0_19, %c0_20, %c0_21, %c0_22], %8 {strides = array<i32>} : memref<1x2x2x8x16x128xf32, #tpu.memory_space<vmem>>, vector<1x2x2x8x16x128xf32>,
    return
  }
  func.func @transform_0(%arg0: i32, %arg1: i32) -> (i32, i32, i32, i32, i32, i32) {
    %c0_i32 = arith.constant 0 : i32
    %c0_i32_0 = arith.constant 0 : i32
    %c0_i32_1 = arith.constant 0 : i32
    %c0_i32_2 = arith.constant 0 : i32
    %c0_i32_3 = arith.constant 0 : i32
    return %arg0, %c0_i32, %c0_i32_0, %arg1, %c0_i32_1, %c0_i32_2 : i32, i32, i32, i32, i32, i32
  }
  func.func @transform_1(%arg0: i32, %arg1: i32) -> (i32, i32, i32, i32, i32, i32) {
    %c0_i32 = arith.constant 0 : i32
    %c0_i32_0 = arith.constant 0 : i32
    %c0_i32_1 = arith.constant 0 : i32
    %c0_i32_2 = arith.constant 0 : i32
    %c0_i32_3 = arith.constant 0 : i32
    %c0_i32_4 = arith.constant 0 : i32
    %c0_i32_5 = arith.constant 0 : i32
    return %c0_i32, %c0_i32_0, %c0_i32_1, %c0_i32_2, %c0_i32_3, %c0_i32_4 : i32, i32, i32, i32, i32, i32
  }
  func.func @transform_2(%arg0: i32, %arg1: i32) -> (i32, i32, i32, i32, i32, i32) {
    %c0_i32 = arith.constant 0 : i32
    %c0_i32_0 = arith.constant 0 : i32
    %c0_i32_1 = arith.constant 0 : i32
    %c0_i32_2 = arith.constant 0 : i32
    %c0_i32_3 = arith.constant 0 : i32
    %c0_i32_4 = arith.constant 0 : i32
    %c0_i32_5 = arith.constant 0 : i32
    return %c0_i32, %c0_i32_0, %c0_i32_1, %c0_i32_2, %c0_i32_3, %c0_i32_4 : i32, i32, i32, i32, i32, i32
  }
  func.func @transform_3(%arg0: i32, %arg1: i32) -> (i32, i32, i32, i32, i32, i32) {
    %c0_i32 = arith.constant 0 : i32
    %c0_i32_0 = arith.constant 0 : i32
    %c0_i32_1 = arith.constant 0 : i32
    %c0_i32_2 = arith.constant 0 : i32
    %c0_i32_3 = arith.constant 0 : i32
    return %arg0, %c0_i32, %c0_i32_0, %arg1, %c0_i32_1, %c0_i32_2 : i32, i32, i32, i32, i32, i32
  }
}

</mosaic_0001>

<bundles_post_ra>
// kernel: conv2d_transpose_unit.3
= control target key start
LH: loop header
LB: loop body
LE: loop exit
PB: predicated region body
PF: predicated region fallthrough
CT: control target
= control target key end

     0   :  { %s1335_s12 = smov 0   ;;  %s1337_s13 = smov 0   ;;  %s1967_s0 = inlined_call_operand.vmem [shape: f32[2,2,2,16,16,128], index: 0, kind: input, shape index: {}]   ;;  %s1968_s1 = inlined_call_operand.vmem [shape: f32[1,1,1,1,1,128], index: 1, kind: input, shape index: {}]   ;;  %s1969_s2 = inlined_call_operand.vmem [shape: f32[1,1,1,1,1,128], index: 2, kind: input, shape index: {}]   ;;  %s1970_s3 = inlined_call_operand.vmem [shape: f32[2,2,2,16,16,128], index: 3, kind: output, shape index: {}]  }
   0x1   :  { %s1339_s14 = smov 0   ;;  %s1341_s15 = smov 0  }
   0x2   :  { %s1343_s16 = smov 0   ;;  %s1345_s17 = smov 0  }
   0x3   :  { %s1347_s18 = smov 0  }
   0x4 LB: > { %s22_s19 = sadd.s32 1, %s1305_s16  ;;  %s25_s20 = sadd.s32 1, %s1309_s17  ;;  %s1313_s18 = sphi %s1347_s18, %s13_s18   ;;  %s1309_s17 = sphi %s1345_s17, %s1977_s17   ;;  %s1305_s16 = sphi %s1343_s16, %s1976_s16   ;;  %s1301_s15 = sphi %s1341_s15, %s1975_s15   ;;  %s1297_s14 = sphi %s1339_s14, %s1974_s14   ;;  %s1293_s13 = sphi %s1337_s13, %s1973_s13   ;;  %s1289_s12 = sphi %s1335_s12, %s1972_s12  }
   0x5   : > { %p23_p0 = scmp.ge.s32.totalorder %s22_s19, 2  ;;  %s1180_s21 = sadd.s32 4294967295, %s1313_s18  }
   0x6   : > { %p41_p1 = scmp.ne.s32.totalorder %s1293_s13, %s1289_s12  ;;  %p42_p2 = scmp.eq.s32.totalorder %s1313_s18, 0 }
   0x7   : > { %s1979_s19 = smov (%p23_p0, %s22_s19), 0  ;;  %s1981_s20 = smov (!%p23_p0, %s25_s20), %s1309_s17 }
   0x8   : > { %p27_p3 = scmp.ge.s32.totalorder %s1981_s20, 2  ;;  %p115_p4 = scmp.eq.s32.totalorder %s1180_s21, 3 }
   0x9   : > { %s30_s22 = ssub.s32 %s1305_s16, %s1979_s19  ;;  %p43_p5 = por %p42_p2, %p41_p1 }
   0xa   : > { %s1983_s20 = smov (%p27_p3, %s1981_s20), 0  ;;  %p1383_p6 = por %p115_p4, %p41_p1 }
   0xb   : > { %s29_s24 = ssub.s32 %s1309_s17, %s1983_s20  ;;  %s34_s26 = sadd.s32 1, %s1293_s13 }
   0xc   : > { %s31_s25 = sor.u32 %s30_s22, %s29_s24  ;;  %p1183_p8 = scmp.ge.s32.totalorder %s1313_s18, 4 }
   0xd   : > { %p32_p7 = scmp.eq.s32.totalorder %s31_s25, 0 }
   0xe   : > { %143 = sbr.rel (%p1183_p8) target bundleno = 58 (0x3a), region = 24 }
   0xf   : > { %s1391_s27 = scalar_select %p32_p7, %s1293_s13, %s34_s26  }
  0x13   : > { %146 = sbr.rel (!%p43_p5) target bundleno = 58 (0x3a), region = 28  ;;  %s148_s28 = sand.u32 (%p43_p5), 1, %s1293_s13  }
  0x14   : > { %s1201_s29 = sshll.u32 (%p43_p5), %s1305_s16, 4  ;;  %s1184_s30 = sshll.u32 (%p43_p5), %s148_s28, 9 }
  0x15   : > { %s1187_s4 = sshll.u32 (%p43_p5), %s1309_s17, 7  ;;  %s1405_s10 = scalar_lea.vmem (%p43_p5), [#allocation2], %s1184_s30 }
  0x16   : > { %s154_s5 = sadd.s32 (%p43_p5), %s1201_s29, %s1187_s4 }
  0x17   : > { %s1188_s6 = sshll.u32 (%p43_p5), %s154_s5, 3 }
  0x18   : > { %s1400_s9 = scalar_lea.vmem %s1967_s0, %s1188_s6 }
  0x19   : > { %v311_v0 = vld [vmem:[%s1400_s9] sm:$0xff]  ;;  %v313_v1 = vld [vmem:[%s1400_s9 + $0x8] sm:$0xff]  ;;  %v315_v2 = vld [vmem:[%s1400_s9 + $0x10] sm:$0xff] }
  0x1a   : > { %312 = vst [vmem:[%s1405_s10] sm:$0xff] %v311_v0  ;;  %314 = vst [vmem:[%s1405_s10 + $0x8] sm:$0xff] %v313_v1  ;;  %v317_v3 = vld [vmem:[%s1400_s9 + $0x18] sm:$0xff]  ;;  %v319_v4 = vld [vmem:[%s1400_s9 + $0x20] sm:$0xff] }
  0x1b   : > { %316 = vst [vmem:[%s1405_s10 + $0x10] sm:$0xff] %v315_v2  ;;  %v321_v5 = vld [vmem:[%s1400_s9 + $0x28] sm:$0xff]  ;;  %318 = vst [vmem:[%s1405_s10 + $0x18] sm:$0xff] %v317_v3  ;;  %v323_v6 = vld [vmem:[%s1400_s9 + $0x30] sm:$0xff] }
  0x1c   : > { %320 = vst [vmem:[%s1405_s10 + $0x20] sm:$0xff] %v319_v4  ;;  %322 = vst [vmem:[%s1405_s10 + $0x28] sm:$0xff] %v321_v5  ;;  %v325_v7 = vld [vmem:[%s1400_s9 + $0x38] sm:$0xff]  ;;  %v327_v8 = vld [vmem:[%s1400_s9 + $0x40] sm:$0xff] }
  0x1d   : > { %324 = vst [vmem:[%s1405_s10 + $0x30] sm:$0xff] %v323_v6  ;;  %326 = vst [vmem:[%s1405_s10 + $0x38] sm:$0xff] %v325_v7  ;;  %v329_v9 = vld [vmem:[%s1400_s9 + $0x48] sm:$0xff]  ;;  %v331_v10 = vld [vmem:[%s1400_s9 + $0x50] sm:$0xff] }
  0x1e   : > { %328 = vst [vmem:[%s1405_s10 + $0x40] sm:$0xff] %v327_v8  ;;  %v333_v11 = vld [vmem:[%s1400_s9 + $0x58] sm:$0xff]  ;;  %330 = vst [vmem:[%s1405_s10 + $0x48] sm:$0xff] %v329_v9  ;;  %v335_v12 = vld [vmem:[%s1400_s9 + $0x60] sm:$0xff] }
  0x1f   : > { %332 = vst [vmem:[%s1405_s10 + $0x50] sm:$0xff] %v331_v10  ;;  %334 = vst [vmem:[%s1405_s10 + $0x58] sm:$0xff] %v333_v11  ;;  %v337_v13 = vld [vmem:[%s1400_s9 + $0x68] sm:$0xff]  ;;  %v339_v14 = vld [vmem:[%s1400_s9 + $0x70] sm:$0xff] }
  0x20   : > { %336 = vst [vmem:[%s1405_s10 + $0x60] sm:$0xff] %v335_v12  ;;  %338 = vst [vmem:[%s1405_s10 + $0x68] sm:$0xff] %v337_v13  ;;  %v341_v15 = vld [vmem:[%s1400_s9 + $0x78] sm:$0xff]  ;;  %v343_v16 = vld [vmem:[%s1400_s9 + $0x100] sm:$0xff] }
  0x21   : > { %340 = vst [vmem:[%s1405_s10 + $0x70] sm:$0xff] %v339_v14  ;;  %v345_v17 = vld [vmem:[%s1400_s9 + $0x108] sm:$0xff]  ;;  %342 = vst [vmem:[%s1405_s10 + $0x78] sm:$0xff] %v341_v15  ;;  %v347_v18 = vld [vmem:[%s1400_s9 + $0x110] sm:$0xff] }
  0x22   : > { %344 = vst [vmem:[%s1405_s10 + $0x80] sm:$0xff] %v343_v16  ;;  %346 = vst [vmem:[%s1405_s10 + $0x88] sm:$0xff] %v345_v17  ;;  %v349_v19 = vld [vmem:[%s1400_s9 + $0x118] sm:$0xff]  ;;  %v351_v20 = vld [vmem:[%s1400_s9 + $0x120] sm:$0xff] }
  0x23   : > { %348 = vst [vmem:[%s1405_s10 + $0x90] sm:$0xff] %v347_v18  ;;  %350 = vst [vmem:[%s1405_s10 + $0x98] sm:$0xff] %v349_v19  ;;  %v353_v21 = vld [vmem:[%s1400_s9 + $0x128] sm:$0xff]  ;;  %v355_v22 = vld [vmem:[%s1400_s9 + $0x130] sm:$0xff] }
  0x24   : > { %352 = vst [vmem:[%s1405_s10 + $0xa0] sm:$0xff] %v351_v20  ;;  %v357_v23 = vld [vmem:[%s1400_s9 + $0x138] sm:$0xff]  ;;  %354 = vst [vmem:[%s1405_s10 + $0xa8] sm:$0xff] %v353_v21  ;;  %v359_v24 = vld [vmem:[%s1400_s9 + $0x140] sm:$0xff] }
  0x25   : > { %356 = vst [vmem:[%s1405_s10 + $0xb0] sm:$0xff] %v355_v22  ;;  %358 = vst [vmem:[%s1405_s10 + $0xb8] sm:$0xff] %v357_v23  ;;  %v361_v25 = vld [vmem:[%s1400_s9 + $0x148] sm:$0xff]  ;;  %v363_v26 = vld [vmem:[%s1400_s9 + $0x150] sm:$0xff] }
  0x26   : > { %360 = vst [vmem:[%s1405_s10 + $0xc0] sm:$0xff] %v359_v24  ;;  %362 = vst [vmem:[%s1405_s10 + $0xc8] sm:$0xff] %v361_v25  ;;  %v365_v27 = vld [vmem:[%s1400_s9 + $0x158] sm:$0xff]  ;;  %v367_v28 = vld [vmem:[%s1400_s9 + $0x160] sm:$0xff] }
  0x27   : > { %364 = vst [vmem:[%s1405_s10 + $0xd0] sm:$0xff] %v363_v26  ;;  %v369_v29 = vld [vmem:[%s1400_s9 + $0x168] sm:$0xff]  ;;  %366 = vst [vmem:[%s1405_s10 + $0xd8] sm:$0xff] %v365_v27  ;;  %v371_v30 = vld [vmem:[%s1400_s9 + $0x170] sm:$0xff] }
  0x28   : > { %368 = vst [vmem:[%s1405_s10 + $0xe0] sm:$0xff] %v367_v28  ;;  %370 = vst [vmem:[%s1405_s10 + $0xe8] sm:$0xff] %v369_v29  ;;  %v373_v31 = vld [vmem:[%s1400_s9 + $0x178] sm:$0xff]  ;;  %v375_v32 = vld [vmem:[%s1400_s9 + $0x200] sm:$0xff] }
  0x29   : > { %372 = vst [vmem:[%s1405_s10 + $0xf0] sm:$0xff] %v371_v30  ;;  %374 = vst [vmem:[%s1405_s10 + $0xf8] sm:$0xff] %v373_v31  ;;  %v377_v33 = vld [vmem:[%s1400_s9 + $0x208] sm:$0xff]  ;;  %v379_v34 = vld [vmem:[%s1400_s9 + $0x210] sm:$0xff] }
  0x2a   : > { %376 = vst [vmem:[%s1405_s10 + $0x100] sm:$0xff] %v375_v32  ;;  %v381_v35 = vld [vmem:[%s1400_s9 + $0x218] sm:$0xff]  ;;  %378 = vst [vmem:[%s1405_s10 + $0x108] sm:$0xff] %v377_v33  ;;  %v383_v36 = vld [vmem:[%s1400_s9 + $0x220] sm:$0xff] }
  0x2b   : > { %380 = vst [vmem:[%s1405_s10 + $0x110] sm:$0xff] %v379_v34  ;;  %382 = vst [vmem:[%s1405_s10 + $0x118] sm:$0xff] %v381_v35  ;;  %v385_v37 = vld [vmem:[%s1400_s9 + $0x228] sm:$0xff]  ;;  %v387_v38 = vld [vmem:[%s1400_s9 + $0x230] sm:$0xff] }
  0x2c   : > { %384 = vst [vmem:[%s1405_s10 + $0x120] sm:$0xff] %v383_v36  ;;  %386 = vst [vmem:[%s1405_s10 + $0x128] sm:$0xff] %v385_v37  ;;  %v389_v39 = vld [vmem:[%s1400_s9 + $0x238] sm:$0xff]  ;;  %v391_v40 = vld [vmem:[%s1400_s9 + $0x240] sm:$0xff] }
  0x2d   : > { %388 = vst [vmem:[%s1405_s10 + $0x130] sm:$0xff] %v387_v38  ;;  %v393_v41 = vld [vmem:[%s1400_s9 + $0x248] sm:$0xff]  ;;  %390 = vst [vmem:[%s1405_s10 + $0x138] sm:$0xff] %v389_v39  ;;  %v395_v42 = vld [vmem:[%s1400_s9 + $0x250] sm:$0xff] }
  0x2e   : > { %392 = vst [vmem:[%s1405_s10 + $0x140] sm:$0xff] %v391_v40  ;;  %394 = vst [vmem:[%s1405_s10 + $0x148] sm:$0xff] %v393_v41  ;;  %v397_v43 = vld [vmem:[%s1400_s9 + $0x258] sm:$0xff]  ;;  %v399_v44 = vld [vmem:[%s1400_s9 + $0x260] sm:$0xff] }
  0x2f   : > { %396 = vst [vmem:[%s1405_s10 + $0x150] sm:$0xff] %v395_v42  ;;  %398 = vst [vmem:[%s1405_s10 + $0x158] sm:$0xff] %v397_v43  ;;  %v401_v45 = vld [vmem:[%s1400_s9 + $0x268] sm:$0xff]  ;;  %v403_v46 = vld [vmem:[%s1400_s9 + $0x270] sm:$0xff] }
  0x30   : > { %400 = vst [vmem:[%s1405_s10 + $0x160] sm:$0xff] %v399_v44  ;;  %v405_v47 = vld [vmem:[%s1400_s9 + $0x278] sm:$0xff]  ;;  %402 = vst [vmem:[%s1405_s10 + $0x168] sm:$0xff] %v401_v45  ;;  %v407_v48 = vld [vmem:[%s1400_s9 + $0x300] sm:$0xff] }
  0x31   : > { %404 = vst [vmem:[%s1405_s10 + $0x170] sm:$0xff] %v403_v46  ;;  %406 = vst [vmem:[%s1405_s10 + $0x178] sm:$0xff] %v405_v47  ;;  %v409_v49 = vld [vmem:[%s1400_s9 + $0x308] sm:$0xff]  ;;  %v411_v50 = vld [vmem:[%s1400_s9 + $0x310] sm:$0xff] }
  0x32   : > { %408 = vst [vmem:[%s1405_s10 + $0x180] sm:$0xff] %v407_v48  ;;  %410 = vst [vmem:[%s1405_s10 + $0x188] sm:$0xff] %v409_v49  ;;  %v413_v51 = vld [vmem:[%s1400_s9 + $0x318] sm:$0xff]  ;;  %v415_v52 = vld [vmem:[%s1400_s9 + $0x320] sm:$0xff] }
  0x33   : > { %412 = vst [vmem:[%s1405_s10 + $0x190] sm:$0xff] %v411_v50  ;;  %v417_v53 = vld [vmem:[%s1400_s9 + $0x328] sm:$0xff]  ;;  %414 = vst [vmem:[%s1405_s10 + $0x198] sm:$0xff] %v413_v51  ;;  %v419_v54 = vld [vmem:[%s1400_s9 + $0x330] sm:$0xff] }
  0x34   : > { %416 = vst [vmem:[%s1405_s10 + $0x1a0] sm:$0xff] %v415_v52  ;;  %418 = vst [vmem:[%s1405_s10 + $0x1a8] sm:$0xff] %v417_v53  ;;  %v421_v55 = vld [vmem:[%s1400_s9 + $0x338] sm:$0xff]  ;;  %v423_v56 = vld [vmem:[%s1400_s9 + $0x340] sm:$0xff] }
  0x35   : > { %420 = vst [vmem:[%s1405_s10 + $0x1b0] sm:$0xff] %v419_v54  ;;  %422 = vst [vmem:[%s1405_s10 + $0x1b8] sm:$0xff] %v421_v55  ;;  %v425_v57 = vld [vmem:[%s1400_s9 + $0x348] sm:$0xff]  ;;  %v427_v58 = vld [vmem:[%s1400_s9 + $0x350] sm:$0xff] }
  0x36   : > { %424 = vst [vmem:[%s1405_s10 + $0x1c0] sm:$0xff] %v423_v56  ;;  %v429_v59 = vld [vmem:[%s1400_s9 + $0x358] sm:$0xff]  ;;  %426 = vst [vmem:[%s1405_s10 + $0x1c8] sm:$0xff] %v425_v57  ;;  %v431_v60 = vld [vmem:[%s1400_s9 + $0x360] sm:$0xff] }
  0x37   : > { %428 = vst [vmem:[%s1405_s10 + $0x1d0] sm:$0xff] %v427_v58  ;;  %430 = vst [vmem:[%s1405_s10 + $0x1d8] sm:$0xff] %v429_v59  ;;  %v433_v61 = vld [vmem:[%s1400_s9 + $0x368] sm:$0xff]  ;;  %v435_v62 = vld [vmem:[%s1400_s9 + $0x370] sm:$0xff] }
  0x38   : > { %432 = vst [vmem:[%s1405_s10 + $0x1e0] sm:$0xff] %v431_v60  ;;  %434 = vst [vmem:[%s1405_s10 + $0x1e8] sm:$0xff] %v433_v61  ;;  %v437_v63 = vld [vmem:[%s1400_s9 + $0x378] sm:$0xff] }
  0x39   : > { %436 = vst [vmem:[%s1405_s10 + $0x1f0] sm:$0xff] %v435_v62  ;;  %438 = vst [vmem:[%s1405_s10 + $0x1f8] sm:$0xff] %v437_v63 }
  0x3a PF: > { %p1189_p9 = scmp.ge.s32.totalorder %s1313_s18, 1  ;;  %p443_p10 = scmp.lt.s32.totalorder %s1313_s18, 5 }
  0x3c   : > { %p444_p11 = pnand %p1189_p9, %p443_p10 }
  0x3d   : > { %s450_s11 = sand.u32 (!%p444_p11), 1, %s1289_s12  }
  0x3e   : > { %447 = sbr.rel (%p444_p11) target bundleno = 152 (0x98), region = 66  ;;  %s1535_s21 = sshll.u32 (!%p444_p11), %s450_s11, 9 }
  0x3f   : > { %s1548_s28 = scalar_lea.vmem (!%p444_p11), [#allocation2], %s1535_s21  ;;  %s1582_s12 = scalar_lea.vmem (!%p444_p11), [#allocation3], %s1535_s21 }
  0x43   : > { %v1540_v0 = vld [vmem:[%s1968_s1] ss:$0 sm:$0xff]  ;;  %v475_v3 = vld [vmem:[%s1548_s28 + $0x8] sm:$0xff]  ;;  %v476_v4 = vld [vmem:[%s1548_s28 + $0x10] sm:$0xff]  ;;  %s1202_s29 = sshll.u32 (%p1383_p6), %s1297_s14, 4  ;;  %s1197_s30 = sshll.u32 (%p1383_p6), %s1301_s15, 7 }
  0x44   : > { %v1545_v1 = vld [vmem:[%s1969_s2] ss:$0 sm:$0xff]  ;;  %v546_v6 = vmul.f32 %v1540_v0, %v475_v3  ;;  %v547_v7 = vmul.f32 %v1540_v0, %v476_v4  ;;  %v477_v8 = vld [vmem:[%s1548_s28 + $0x18] sm:$0xff]  ;;  %v479_v10 = vld [vmem:[%s1548_s28 + $0x28] sm:$0xff]  ;;  %s818_s23 = sadd.s32 (%p1383_p6), %s1202_s29, %s1197_s30 }
  0x45   : > { %v474_v2 = vld [vmem:[%s1548_s28] sm:$0xff]  ;;  %v548_v11 = vmul.f32 %v1540_v0, %v477_v8  ;;  %v550_v13 = vmul.f32 %v1540_v0, %v479_v10  ;;  %v480_v14 = vld [vmem:[%s1548_s28 + $0x30] sm:$0xff]  ;;  %v481_v15 = vld [vmem:[%s1548_s28 + $0x38] sm:$0xff]  ;;  %s1198_s4 = sshll.u32 (%p1383_p6), %s818_s23, 3 }
  0x46   : > { %v545_v5 = vmul.f32 %v1540_v0, %v474_v2  ;;  %v478_v9 = vld [vmem:[%s1548_s28 + $0x20] sm:$0xff]  ;;  %v617_v17 = vadd.f32 %v1545_v1, %v546_v6  ;;  %v618_v18 = vadd.f32 %v1545_v1, %v547_v7  ;;  %v551_v19 = vmul.f32 %v1540_v0, %v480_v14  ;;  %v483_v25 = vld [vmem:[%s1548_s28 + $0x48] sm:$0xff]  ;;  %v484_v26 = vld [vmem:[%s1548_s28 + $0x50] sm:$0xff]  ;;  %s1825_s7 = scalar_lea.vmem (%p1383_p6), %s1970_s3, %s1198_s4 }
  0x47   : > { %v549_v12 = vmul.f32 %v1540_v0, %v478_v9  ;;  %v619_v20 = vadd.f32 %v1545_v1, %v548_v11  ;;  %v621_v22 = vadd.f32 %v1545_v1, %v550_v13  ;;  %v552_v23 = vmul.f32 %v1540_v0, %v481_v15  ;;  %v482_v24 = vld [vmem:[%s1548_s28 + $0x40] sm:$0xff]  ;;  %v485_v31 = vld [vmem:[%s1548_s28 + $0x58] sm:$0xff]  ;;  %v487_v33 = vld [vmem:[%s1548_s28 + $0x68] sm:$0xff] }
  0x48   : > { %v616_v16 = vadd.f32 %v1545_v1, %v545_v5  ;;  %v681_v28 = vmax.f32 %v617_v17, 0.0  ;;  %v682_v29 = vmax.f32 %v618_v18, 0.0  ;;  %v622_v30 = vadd.f32 %v1545_v1, %v551_v19  ;;  %v486_v32 = vld [vmem:[%s1548_s28 + $0x60] sm:$0xff]  ;;  %v488_v38 = vld [vmem:[%s1548_s28 + $0x70] sm:$0xff]  ;;  %v489_v43 = vld [vmem:[%s1548_s28 + $0x78] sm:$0xff] }
  0x49   : > { %v620_v21 = vadd.f32 %v1545_v1, %v549_v12  ;;  %v683_v34 = vmax.f32 %v619_v20, 0.0  ;;  %v685_v36 = vmax.f32 %v621_v22, 0.0  ;;  %v623_v37 = vadd.f32 %v1545_v1, %v552_v23  ;;  %v490_v56 = vld [vmem:[%s1548_s28 + $0x80] sm:$0xff]  ;;  %v491_v57 = vld [vmem:[%s1548_s28 + $0x88] sm:$0xff]  ;;  %v492_v58 = vld [vmem:[%s1548_s28 + $0x90] sm:$0xff] }
  0x4a   : > { %v680_v27 = vmax.f32 %v616_v16, 0.0  ;;  %745 = vst [vmem:[%s1582_s12 + $0x8] sm:$0xff] %v681_v28  ;;  %746 = vst [vmem:[%s1582_s12 + $0x10] sm:$0xff] %v682_v29  ;;  %v686_v39 = vmax.f32 %v622_v30, 0.0  ;;  %v553_v40 = vmul.f32 %v1540_v0, %v482_v24  ;;  %v554_v41 = vmul.f32 %v1540_v0, %v483_v25  ;;  %v493_v63 = vld [vmem:[%s1548_s28 + $0x98] sm:$0xff]  ;;  %v494_v2 = vld [vmem:[%s1548_s28 + $0xa0] sm:$0xff] }
  0x4b   : > { %v684_v35 = vmax.f32 %v620_v21, 0.0  ;;  %v555_v42 = vmul.f32 %v1540_v0, %v484_v26  ;;  %747 = vst [vmem:[%s1582_s12 + $0x18] sm:$0xff] %v683_v34  ;;  %749 = vst [vmem:[%s1582_s12 + $0x28] sm:$0xff] %v685_v36  ;;  %v687_v44 = vmax.f32 %v623_v37, 0.0  ;;  %v556_v45 = vmul.f32 %v1540_v0, %v485_v31  ;;  %v495_v3 = vld [vmem:[%s1548_s28 + $0xa8] sm:$0xff]  ;;  %v496_v8 = vld [vmem:[%s1548_s28 + $0xb0] sm:$0xff] }
  0x4c   : > { %744 = vst [vmem:[%s1582_s12] sm:$0xff] %v680_v27  ;;  %v557_v46 = vmul.f32 %v1540_v0, %v486_v32  ;;  %v558_v47 = vmul.f32 %v1540_v0, %v487_v33  ;;  %750 = vst [vmem:[%s1582_s12 + $0x30] sm:$0xff] %v686_v39  ;;  %v624_v48 = vadd.f32 %v1545_v1, %v553_v40  ;;  %v497_v13 = vld [vmem:[%s1548_s28 + $0xb8] sm:$0xff]  ;;  %v498_v26 = vld [vmem:[%s1548_s28 + $0xc0] sm:$0xff] }
  0x4d   : > { %748 = vst [vmem:[%s1582_s12 + $0x20] sm:$0xff] %v684_v35  ;;  %v625_v49 = vadd.f32 %v1545_v1, %v554_v41  ;;  %v626_v50 = vadd.f32 %v1545_v1, %v555_v42  ;;  %v559_v51 = vmul.f32 %v1540_v0, %v488_v38  ;;  %751 = vst [vmem:[%s1582_s12 + $0x38] sm:$0xff] %v687_v44  ;;  %v499_v27 = vld [vmem:[%s1548_s28 + $0xc8] sm:$0xff]  ;;  %v500_v28 = vld [vmem:[%s1548_s28 + $0xd0] sm:$0xff] }
  0x4e   : > { %v627_v52 = vadd.f32 %v1545_v1, %v556_v45  ;;  %v628_v53 = vadd.f32 %v1545_v1, %v557_v46  ;;  %v629_v54 = vadd.f32 %v1545_v1, %v558_v47  ;;  %v560_v55 = vmul.f32 %v1540_v0, %v489_v43  ;;  %v501_v33 = vld [vmem:[%s1548_s28 + $0xd8] sm:$0xff]  ;;  %v502_v34 = vld [vmem:[%s1548_s28 + $0xe0] sm:$0xff]  ;;  %v503_v35 = vld [vmem:[%s1548_s28 + $0xe8] sm:$0xff] }
  0x4f   : > { %v688_v59 = vmax.f32 %v624_v48, 0.0  ;;  %v689_v60 = vmax.f32 %v625_v49, 0.0  ;;  %v690_v61 = vmax.f32 %v626_v50, 0.0  ;;  %v630_v62 = vadd.f32 %v1545_v1, %v559_v51  ;;  %v504_v40 = vld [vmem:[%s1548_s28 + $0xf0] sm:$0xff]  ;;  %v505_v45 = vld [vmem:[%s1548_s28 + $0xf8] sm:$0xff] }
  0x50   : > { %v691_v4 = vmax.f32 %v627_v52, 0.0  ;;  %v692_v5 = vmax.f32 %v628_v53, 0.0  ;;  %v693_v6 = vmax.f32 %v629_v54, 0.0  ;;  %v631_v7 = vadd.f32 %v1545_v1, %v560_v55 }
  0x51   : > { %752 = vst [vmem:[%s1582_s12 + $0x40] sm:$0xff] %v688_v59  ;;  %753 = vst [vmem:[%s1582_s12 + $0x48] sm:$0xff] %v689_v60  ;;  %v694_v9 = vmax.f32 %v630_v62, 0.0  ;;  %v561_v10 = vmul.f32 %v1540_v0, %v490_v56  ;;  %v562_v11 = vmul.f32 %v1540_v0, %v491_v57  ;;  %v563_v12 = vmul.f32 %v1540_v0, %v492_v58  ;;  %v506_v58 = vld [vmem:[%s1548_s28 + $0x100] sm:$0xff]  ;;  %v507_v59 = vld [vmem:[%s1548_s28 + $0x108] sm:$0xff] }
  0x52   : > { %754 = vst [vmem:[%s1582_s12 + $0x50] sm:$0xff] %v690_v61  ;;  %755 = vst [vmem:[%s1582_s12 + $0x58] sm:$0xff] %v691_v4  ;;  %v695_v14 = vmax.f32 %v631_v7, 0.0  ;;  %v564_v15 = vmul.f32 %v1540_v0, %v493_v63  ;;  %v565_v16 = vmul.f32 %v1540_v0, %v494_v2  ;;  %v566_v17 = vmul.f32 %v1540_v0, %v495_v3  ;;  %v508_v60 = vld [vmem:[%s1548_s28 + $0x110] sm:$0xff]  ;;  %v509_v3 = vld [vmem:[%s1548_s28 + $0x118] sm:$0xff] }
  0x53   : > { %756 = vst [vmem:[%s1582_s12 + $0x60] sm:$0xff] %v692_v5  ;;  %757 = vst [vmem:[%s1582_s12 + $0x68] sm:$0xff] %v693_v6  ;;  %v632_v18 = vadd.f32 %v1545_v1, %v561_v10  ;;  %v633_v19 = vadd.f32 %v1545_v1, %v562_v11  ;;  %v634_v20 = vadd.f32 %v1545_v1, %v563_v12  ;;  %v510_v4 = vld [vmem:[%s1548_s28 + $0x120] sm:$0xff]  ;;  %v511_v5 = vld [vmem:[%s1548_s28 + $0x128] sm:$0xff] }
  0x54   : > { %758 = vst [vmem:[%s1582_s12 + $0x70] sm:$0xff] %v694_v9  ;;  %v567_v21 = vmul.f32 %v1540_v0, %v496_v8  ;;  %759 = vst [vmem:[%s1582_s12 + $0x78] sm:$0xff] %v695_v14  ;;  %v635_v22 = vadd.f32 %v1545_v1, %v564_v15  ;;  %v636_v23 = vadd.f32 %v1545_v1, %v565_v16  ;;  %v512_v10 = vld [vmem:[%s1548_s28 + $0x130] sm:$0xff]  ;;  %v513_v15 = vld [vmem:[%s1548_s28 + $0x138] sm:$0xff] }
  0x55   : > { %v637_v24 = vadd.f32 %v1545_v1, %v566_v17  ;;  %v568_v25 = vmul.f32 %v1540_v0, %v497_v13  ;;  %v696_v29 = vmax.f32 %v632_v18, 0.0  ;;  %v697_v30 = vmax.f32 %v633_v19, 0.0 }
  0x56   : > { %v698_v31 = vmax.f32 %v634_v20, 0.0  ;;  %v638_v32 = vadd.f32 %v1545_v1, %v567_v21  ;;  %v699_v36 = vmax.f32 %v635_v22, 0.0  ;;  %v700_v37 = vmax.f32 %v636_v23, 0.0 }
  0x57   : > { %v701_v38 = vmax.f32 %v637_v24, 0.0  ;;  %v639_v39 = vadd.f32 %v1545_v1, %v568_v25  ;;  %760 = vst [vmem:[%s1582_s12 + $0x80] sm:$0xff] %v696_v29  ;;  %761 = vst [vmem:[%s1582_s12 + $0x88] sm:$0xff] %v697_v30  ;;  %v569_v42 = vmul.f32 %v1540_v0, %v498_v26  ;;  %v570_v43 = vmul.f32 %v1540_v0, %v499_v27  ;;  %v515_v29 = vld [vmem:[%s1548_s28 + $0x148] sm:$0xff]  ;;  %v516_v30 = vld [vmem:[%s1548_s28 + $0x150] sm:$0xff] }
  0x58   : > { %762 = vst [vmem:[%s1582_s12 + $0x90] sm:$0xff] %v698_v31  ;;  %v702_v41 = vmax.f32 %v638_v32, 0.0  ;;  %v571_v44 = vmul.f32 %v1540_v0, %v500_v28  ;;  %763 = vst [vmem:[%s1582_s12 + $0x98] sm:$0xff] %v699_v36  ;;  %v572_v47 = vmul.f32 %v1540_v0, %v501_v33  ;;  %v573_v48 = vmul.f32 %v1540_v0, %v502_v34  ;;  %v514_v28 = vld [vmem:[%s1548_s28 + $0x140] sm:$0xff] }
  0x59   : > { %764 = vst [vmem:[%s1582_s12 + $0xa0] sm:$0xff] %v700_v37  ;;  %765 = vst [vmem:[%s1582_s12 + $0xa8] sm:$0xff] %v701_v38  ;;  %v703_v46 = vmax.f32 %v639_v39, 0.0  ;;  %v574_v49 = vmul.f32 %v1540_v0, %v503_v35  ;;  %v640_v50 = vadd.f32 %v1545_v1, %v569_v42  ;;  %v641_v51 = vadd.f32 %v1545_v1, %v570_v43  ;;  %v517_v35 = vld [vmem:[%s1548_s28 + $0x158] sm:$0xff]  ;;  %v518_v36 = vld [vmem:[%s1548_s28 + $0x160] sm:$0xff] }
  0x5a   : > { %766 = vst [vmem:[%s1582_s12 + $0xb0] sm:$0xff] %v702_v41  ;;  %v642_v52 = vadd.f32 %v1545_v1, %v571_v44  ;;  %v575_v53 = vmul.f32 %v1540_v0, %v504_v40  ;;  %v643_v54 = vadd.f32 %v1545_v1, %v572_v47  ;;  %v644_v55 = vadd.f32 %v1545_v1, %v573_v48  ;;  %v519_v37 = vld [vmem:[%s1548_s28 + $0x168] sm:$0xff]  ;;  %v520_v42 = vld [vmem:[%s1548_s28 + $0x170] sm:$0xff]  ;;  %v521_v47 = vld [vmem:[%s1548_s28 + $0x178] sm:$0xff] }
  0x5b   : > { %767 = vst [vmem:[%s1582_s12 + $0xb8] sm:$0xff] %v703_v46  ;;  %v645_v56 = vadd.f32 %v1545_v1, %v574_v49  ;;  %v576_v57 = vmul.f32 %v1540_v0, %v505_v45  ;;  %v704_v61 = vmax.f32 %v640_v50, 0.0  ;;  %v705_v62 = vmax.f32 %v641_v51, 0.0 }
  0x5c   : > { %v706_v63 = vmax.f32 %v642_v52, 0.0  ;;  %v646_v2 = vadd.f32 %v1545_v1, %v575_v53  ;;  %v707_v6 = vmax.f32 %v643_v54, 0.0  ;;  %v708_v7 = vmax.f32 %v644_v55, 0.0 }
  0x5d   : > { %v709_v8 = vmax.f32 %v645_v56, 0.0  ;;  %v647_v9 = vadd.f32 %v1545_v1, %v576_v57  ;;  %768 = vst [vmem:[%s1582_s12 + $0xc0] sm:$0xff] %v704_v61  ;;  %769 = vst [vmem:[%s1582_s12 + $0xc8] sm:$0xff] %v705_v62  ;;  %v577_v12 = vmul.f32 %v1540_v0, %v506_v58  ;;  %v578_v13 = vmul.f32 %v1540_v0, %v507_v59  ;;  %v523_v61 = vld [vmem:[%s1548_s28 + $0x188] sm:$0xff]  ;;  %v524_v62 = vld [vmem:[%s1548_s28 + $0x190] sm:$0xff] }
  0x5e   : > { %770 = vst [vmem:[%s1582_s12 + $0xd0] sm:$0xff] %v706_v63  ;;  %v710_v11 = vmax.f32 %v646_v2, 0.0  ;;  %v579_v14 = vmul.f32 %v1540_v0, %v508_v60  ;;  %771 = vst [vmem:[%s1582_s12 + $0xd8] sm:$0xff] %v707_v6  ;;  %v580_v17 = vmul.f32 %v1540_v0, %v509_v3  ;;  %v581_v18 = vmul.f32 %v1540_v0, %v510_v4  ;;  %v522_v60 = vld [vmem:[%s1548_s28 + $0x180] sm:$0xff] }
  0x5f   : > { %772 = vst [vmem:[%s1582_s12 + $0xe0] sm:$0xff] %v708_v7  ;;  %773 = vst [vmem:[%s1582_s12 + $0xe8] sm:$0xff] %v709_v8  ;;  %v711_v16 = vmax.f32 %v647_v9, 0.0  ;;  %v582_v19 = vmul.f32 %v1540_v0, %v511_v5  ;;  %v648_v20 = vadd.f32 %v1545_v1, %v577_v12  ;;  %v649_v21 = vadd.f32 %v1545_v1, %v578_v13  ;;  %v525_v5 = vld [vmem:[%s1548_s28 + $0x198] sm:$0xff]  ;;  %v526_v6 = vld [vmem:[%s1548_s28 + $0x1a0] sm:$0xff] }
  0x60   : > { %774 = vst [vmem:[%s1582_s12 + $0xf0] sm:$0xff] %v710_v11  ;;  %v650_v22 = vadd.f32 %v1545_v1, %v579_v14  ;;  %v583_v23 = vmul.f32 %v1540_v0, %v512_v10  ;;  %v651_v24 = vadd.f32 %v1545_v1, %v580_v17  ;;  %v652_v25 = vadd.f32 %v1545_v1, %v581_v18  ;;  %v527_v7 = vld [vmem:[%s1548_s28 + $0x1a8] sm:$0xff]  ;;  %v528_v12 = vld [vmem:[%s1548_s28 + $0x1b0] sm:$0xff]  ;;  %v529_v17 = vld [vmem:[%s1548_s28 + $0x1b8] sm:$0xff] }
  0x61   : > { %775 = vst [vmem:[%s1582_s12 + $0xf8] sm:$0xff] %v711_v16  ;;  %v653_v26 = vadd.f32 %v1545_v1, %v582_v19  ;;  %v584_v27 = vmul.f32 %v1540_v0, %v513_v15  ;;  %v712_v31 = vmax.f32 %v648_v20, 0.0  ;;  %v713_v32 = vmax.f32 %v649_v21, 0.0 }
  0x62   : > { %v714_v33 = vmax.f32 %v650_v22, 0.0  ;;  %v654_v34 = vadd.f32 %v1545_v1, %v583_v23  ;;  %v715_v38 = vmax.f32 %v651_v24, 0.0  ;;  %v716_v39 = vmax.f32 %v652_v25, 0.0 }
  0x63   : > { %v717_v40 = vmax.f32 %v653_v26, 0.0  ;;  %v655_v41 = vadd.f32 %v1545_v1, %v584_v27  ;;  %776 = vst [vmem:[%s1582_s12 + $0x100] sm:$0xff] %v712_v31  ;;  %777 = vst [vmem:[%s1582_s12 + $0x108] sm:$0xff] %v713_v32  ;;  %v585_v44 = vmul.f32 %v1540_v0, %v514_v28  ;;  %v586_v45 = vmul.f32 %v1540_v0, %v515_v29  ;;  %v531_v31 = vld [vmem:[%s1548_s28 + $0x1c8] sm:$0xff]  ;;  %v532_v32 = vld [vmem:[%s1548_s28 + $0x1d0] sm:$0xff] }
  0x64   : > { %778 = vst [vmem:[%s1582_s12 + $0x110] sm:$0xff] %v714_v33  ;;  %v718_v43 = vmax.f32 %v654_v34, 0.0  ;;  %v587_v46 = vmul.f32 %v1540_v0, %v516_v30  ;;  %779 = vst [vmem:[%s1582_s12 + $0x118] sm:$0xff] %v715_v38  ;;  %v588_v49 = vmul.f32 %v1540_v0, %v517_v35  ;;  %v589_v50 = vmul.f32 %v1540_v0, %v518_v36  ;;  %v530_v30 = vld [vmem:[%s1548_s28 + $0x1c0] sm:$0xff] }
  0x65   : > { %780 = vst [vmem:[%s1582_s12 + $0x120] sm:$0xff] %v716_v39  ;;  %781 = vst [vmem:[%s1582_s12 + $0x128] sm:$0xff] %v717_v40  ;;  %v719_v48 = vmax.f32 %v655_v41, 0.0  ;;  %v590_v51 = vmul.f32 %v1540_v0, %v519_v37  ;;  %v656_v52 = vadd.f32 %v1545_v1, %v585_v44  ;;  %v657_v53 = vadd.f32 %v1545_v1, %v586_v45  ;;  %v533_v37 = vld [vmem:[%s1548_s28 + $0x1d8] sm:$0xff]  ;;  %v534_v38 = vld [vmem:[%s1548_s28 + $0x1e0] sm:$0xff] }
  0x66   : > { %782 = vst [vmem:[%s1582_s12 + $0x130] sm:$0xff] %v718_v43  ;;  %v658_v54 = vadd.f32 %v1545_v1, %v587_v46  ;;  %v591_v55 = vmul.f32 %v1540_v0, %v520_v42  ;;  %v659_v56 = vadd.f32 %v1545_v1, %v588_v49  ;;  %v660_v57 = vadd.f32 %v1545_v1, %v589_v50  ;;  %v535_v39 = vld [vmem:[%s1548_s28 + $0x1e8] sm:$0xff]  ;;  %v536_v44 = vld [vmem:[%s1548_s28 + $0x1f0] sm:$0xff]  ;;  %v537_v49 = vld [vmem:[%s1548_s28 + $0x1f8] sm:$0xff] }
  0x67   : > { %783 = vst [vmem:[%s1582_s12 + $0x138] sm:$0xff] %v719_v48  ;;  %v661_v58 = vadd.f32 %v1545_v1, %v590_v51  ;;  %v592_v59 = vmul.f32 %v1540_v0, %v521_v47  ;;  %v720_v63 = vmax.f32 %v656_v52, 0.0  ;;  %v721_v2 = vmax.f32 %v657_v53, 0.0 }
  0x68   : > { %v722_v3 = vmax.f32 %v658_v54, 0.0  ;;  %v662_v4 = vadd.f32 %v1545_v1, %v591_v55  ;;  %v723_v8 = vmax.f32 %v659_v56, 0.0  ;;  %v724_v9 = vmax.f32 %v660_v57, 0.0 }
  0x69   : > { %v725_v10 = vmax.f32 %v661_v58, 0.0  ;;  %v663_v11 = vadd.f32 %v1545_v1, %v592_v59  ;;  %784 = vst [vmem:[%s1582_s12 + $0x140] sm:$0xff] %v720_v63  ;;  %785 = vst [vmem:[%s1582_s12 + $0x148] sm:$0xff] %v721_v2  ;;  %v593_v14 = vmul.f32 %v1540_v0, %v522_v60  ;;  %v594_v15 = vmul.f32 %v1540_v0, %v523_v61 }
  0x6a   : > { %786 = vst [vmem:[%s1582_s12 + $0x150] sm:$0xff] %v722_v3  ;;  %v726_v13 = vmax.f32 %v662_v4, 0.0  ;;  %v595_v16 = vmul.f32 %v1540_v0, %v524_v62  ;;  %787 = vst [vmem:[%s1582_s12 + $0x158] sm:$0xff] %v723_v8  ;;  %v596_v19 = vmul.f32 %v1540_v0, %v525_v5  ;;  %v597_v20 = vmul.f32 %v1540_v0, %v526_v6 }
  0x6b   : > { %788 = vst [vmem:[%s1582_s12 + $0x160] sm:$0xff] %v724_v9  ;;  %789 = vst [vmem:[%s1582_s12 + $0x168] sm:$0xff] %v725_v10  ;;  %v727_v18 = vmax.f32 %v663_v11, 0.0  ;;  %v598_v21 = vmul.f32 %v1540_v0, %v527_v7  ;;  %v664_v22 = vadd.f32 %v1545_v1, %v593_v14  ;;  %v665_v23 = vadd.f32 %v1545_v1, %v594_v15  ;;  %v977_v9 = vld [vmem:[%s1582_s12 + $0x8] sm:$0xff] (%p1383_p6)  ;;  %v979_v10 = vld [vmem:[%s1582_s12 + $0x10] sm:$0xff] (%p1383_p6) }
  0x6c   : > { %790 = vst [vmem:[%s1582_s12 + $0x170] sm:$0xff] %v726_v13  ;;  %v666_v24 = vadd.f32 %v1545_v1, %v595_v16  ;;  %v599_v25 = vmul.f32 %v1540_v0, %v528_v12  ;;  %v667_v26 = vadd.f32 %v1545_v1, %v596_v19  ;;  %v668_v27 = vadd.f32 %v1545_v1, %v597_v20  ;;  %v981_v11 = vld [vmem:[%s1582_s12 + $0x18] sm:$0xff] (%p1383_p6)  ;;  %v983_v12 = vld [vmem:[%s1582_s12 + $0x20] sm:$0xff] (%p1383_p6)  ;;  %v985_v13 = vld [vmem:[%s1582_s12 + $0x28] sm:$0xff] (%p1383_p6) }
  0x6d   : > { %791 = vst [vmem:[%s1582_s12 + $0x178] sm:$0xff] %v727_v18  ;;  %v669_v28 = vadd.f32 %v1545_v1, %v598_v21  ;;  %v600_v29 = vmul.f32 %v1540_v0, %v529_v17  ;;  %v728_v33 = vmax.f32 %v664_v22, 0.0  ;;  %v729_v34 = vmax.f32 %v665_v23, 0.0  ;;  %v987_v14 = vld [vmem:[%s1582_s12 + $0x30] sm:$0xff] (%p1383_p6)  ;;  %v989_v15 = vld [vmem:[%s1582_s12 + $0x38] sm:$0xff] (%p1383_p6)  ;;  %v991_v16 = vld [vmem:[%s1582_s12 + $0x40] sm:$0xff] (%p1383_p6) }
  0x6e   : > { %v730_v35 = vmax.f32 %v666_v24, 0.0  ;;  %v670_v36 = vadd.f32 %v1545_v1, %v599_v25  ;;  %v731_v40 = vmax.f32 %v667_v26, 0.0  ;;  %v732_v41 = vmax.f32 %v668_v27, 0.0  ;;  %v993_v17 = vld [vmem:[%s1582_s12 + $0x48] sm:$0xff] (%p1383_p6)  ;;  %v995_v18 = vld [vmem:[%s1582_s12 + $0x50] sm:$0xff] (%p1383_p6)  ;;  %v997_v19 = vld [vmem:[%s1582_s12 + $0x58] sm:$0xff] (%p1383_p6) }
  0x6f   : > { %v733_v42 = vmax.f32 %v669_v28, 0.0  ;;  %v671_v43 = vadd.f32 %v1545_v1, %v600_v29  ;;  %792 = vst [vmem:[%s1582_s12 + $0x180] sm:$0xff] %v728_v33  ;;  %793 = vst [vmem:[%s1582_s12 + $0x188] sm:$0xff] %v729_v34  ;;  %v601_v46 = vmul.f32 %v1540_v0, %v530_v30  ;;  %v602_v47 = vmul.f32 %v1540_v0, %v531_v31  ;;  %v999_v20 = vld [vmem:[%s1582_s12 + $0x60] sm:$0xff] (%p1383_p6)  ;;  %v1001_v21 = vld [vmem:[%s1582_s12 + $0x68] sm:$0xff] (%p1383_p6) }
  0x70   : > { %794 = vst [vmem:[%s1582_s12 + $0x190] sm:$0xff] %v730_v35  ;;  %v734_v45 = vmax.f32 %v670_v36, 0.0  ;;  %v603_v48 = vmul.f32 %v1540_v0, %v532_v32  ;;  %795 = vst [vmem:[%s1582_s12 + $0x198] sm:$0xff] %v731_v40  ;;  %v604_v51 = vmul.f32 %v1540_v0, %v533_v37  ;;  %v605_v52 = vmul.f32 %v1540_v0, %v534_v38  ;;  %v1003_v22 = vld [vmem:[%s1582_s12 + $0x70] sm:$0xff] (%p1383_p6)  ;;  %v1005_v23 = vld [vmem:[%s1582_s12 + $0x78] sm:$0xff] (%p1383_p6) }
  0x71   : > { %796 = vst [vmem:[%s1582_s12 + $0x1a0] sm:$0xff] %v732_v41  ;;  %797 = vst [vmem:[%s1582_s12 + $0x1a8] sm:$0xff] %v733_v42  ;;  %v735_v50 = vmax.f32 %v671_v43, 0.0  ;;  %v606_v53 = vmul.f32 %v1540_v0, %v535_v39  ;;  %v672_v54 = vadd.f32 %v1545_v1, %v601_v46  ;;  %v673_v55 = vadd.f32 %v1545_v1, %v602_v47  ;;  %v1007_v24 = vld [vmem:[%s1582_s12 + $0x80] sm:$0xff] (%p1383_p6)  ;;  %v1009_v25 = vld [vmem:[%s1582_s12 + $0x88] sm:$0xff] (%p1383_p6) }
  0x72   : > { %798 = vst [vmem:[%s1582_s12 + $0x1b0] sm:$0xff] %v734_v45  ;;  %v674_v56 = vadd.f32 %v1545_v1, %v603_v48  ;;  %v607_v57 = vmul.f32 %v1540_v0, %v536_v44  ;;  %v675_v58 = vadd.f32 %v1545_v1, %v604_v51  ;;  %v676_v59 = vadd.f32 %v1545_v1, %v605_v52  ;;  %v1011_v26 = vld [vmem:[%s1582_s12 + $0x90] sm:$0xff] (%p1383_p6)  ;;  %v1013_v27 = vld [vmem:[%s1582_s12 + $0x98] sm:$0xff] (%p1383_p6)  ;;  %v1015_v28 = vld [vmem:[%s1582_s12 + $0xa0] sm:$0xff] (%p1383_p6) }
  0x73   : > { %799 = vst [vmem:[%s1582_s12 + $0x1b8] sm:$0xff] %v735_v50  ;;  %v677_v60 = vadd.f32 %v1545_v1, %v606_v53  ;;  %v608_v61 = vmul.f32 %v1540_v0, %v537_v49  ;;  %v736_v62 = vmax.f32 %v672_v54, 0.0  ;;  %v737_v63 = vmax.f32 %v673_v55, 0.0  ;;  %978 = vst [vmem:[%s1825_s7 + $0x8] sm:$0xff] (%p1383_p6), %v977_v9  ;;  %v1017_v29 = vld [vmem:[%s1582_s12 + $0xa8] sm:$0xff] (%p1383_p6)  ;;  %v1019_v30 = vld [vmem:[%s1582_s12 + $0xb0] sm:$0xff] (%p1383_p6) }
  0x74   : > { %v738_v2 = vmax.f32 %v674_v56, 0.0  ;;  %v678_v3 = vadd.f32 %v1545_v1, %v607_v57  ;;  %v739_v4 = vmax.f32 %v675_v58, 0.0  ;;  %v740_v5 = vmax.f32 %v676_v59, 0.0  ;;  %980 = vst [vmem:[%s1825_s7 + $0x10] sm:$0xff] (%p1383_p6), %v979_v10  ;;  %982 = vst [vmem:[%s1825_s7 + $0x18] sm:$0xff] (%p1383_p6), %v981_v11  ;;  %v1021_v31 = vld [vmem:[%s1582_s12 + $0xb8] sm:$0xff] (%p1383_p6) }
  0x75   : > { %v741_v6 = vmax.f32 %v677_v60, 0.0  ;;  %v679_v7 = vadd.f32 %v1545_v1, %v608_v61  ;;  %800 = vst [vmem:[%s1582_s12 + $0x1c0] sm:$0xff] %v736_v62  ;;  %801 = vst [vmem:[%s1582_s12 + $0x1c8] sm:$0xff] %v737_v63  ;;  %814 = sbr.rel (!%p1383_p6) target bundleno = 152 (0x98), region = 74  ;;  %v975_v1 = vld [vmem:[%s1582_s12] sm:$0xff] (%p1383_p6)  ;;  %v1025_v33 = vld [vmem:[%s1582_s12 + $0xc8] sm:$0xff] (%p1383_p6) }
  0x76   : > { %802 = vst [vmem:[%s1582_s12 + $0x1d0] sm:$0xff] %v738_v2  ;;  %v742_v8 = vmax.f32 %v678_v3, 0.0  ;;  %803 = vst [vmem:[%s1582_s12 + $0x1d8] sm:$0xff] %v739_v4  ;;  %v1023_v32 = vld [vmem:[%s1582_s12 + $0xc0] sm:$0xff] (%p1383_p6)  ;;  %v1027_v34 = vld [vmem:[%s1582_s12 + $0xd0] sm:$0xff] (%p1383_p6) }
  0x77   : > { %804 = vst [vmem:[%s1582_s12 + $0x1e0] sm:$0xff] %v740_v5  ;;  %805 = vst [vmem:[%s1582_s12 + $0x1e8] sm:$0xff] %v741_v6  ;;  %v743_v0 = vmax.f32 %v679_v7, 0.0  ;;  %v1029_v35 = vld [vmem:[%s1582_s12 + $0xd8] sm:$0xff] (%p1383_p6)  ;;  %v1031_v36 = vld [vmem:[%s1582_s12 + $0xe0] sm:$0xff] (%p1383_p6) }
  0x78   : > { %806 = vst [vmem:[%s1582_s12 + $0x1f0] sm:$0xff] %v742_v8  ;;  %976 = vst [vmem:[%s1825_s7] sm:$0xff] (%p1383_p6), %v975_v1  ;;  %v1033_v37 = vld [vmem:[%s1582_s12 + $0xe8] sm:$0xff] (%p1383_p6)  ;;  %v1035_v38 = vld [vmem:[%s1582_s12 + $0xf0] sm:$0xff] (%p1383_p6) }
  0x79   : > { %807 = vst [vmem:[%s1582_s12 + $0x1f8] sm:$0xff] %v743_v0  ;;  %984 = vst [vmem:[%s1825_s7 + $0x20] sm:$0xff] (%p1383_p6), %v983_v12  ;;  %v1037_v39 = vld [vmem:[%s1582_s12 + $0xf8] sm:$0xff] (%p1383_p6)  ;;  %v1039_v40 = vld [vmem:[%s1582_s12 + $0x100] sm:$0xff] (%p1383_p6) }
  0x7a   : > { %986 = vst [vmem:[%s1825_s7 + $0x28] sm:$0xff] %v985_v13  ;;  %988 = vst [vmem:[%s1825_s7 + $0x30] sm:$0xff] %v987_v14  ;;  %v1041_v41 = vld [vmem:[%s1582_s12 + $0x108] sm:$0xff]  ;;  %v1043_v42 = vld [vmem:[%s1582_s12 + $0x110] sm:$0xff] }
  0x7b   : > { %990 = vst [vmem:[%s1825_s7 + $0x38] sm:$0xff] %v989_v15  ;;  %992 = vst [vmem:[%s1825_s7 + $0x40] sm:$0xff] %v991_v16  ;;  %v1045_v43 = vld [vmem:[%s1582_s12 + $0x118] sm:$0xff]  ;;  %v1047_v44 = vld [vmem:[%s1582_s12 + $0x120] sm:$0xff] }
  0x7c   : > { %994 = vst [vmem:[%s1825_s7 + $0x48] sm:$0xff] %v993_v17  ;;  %996 = vst [vmem:[%s1825_s7 + $0x50] sm:$0xff] %v995_v18  ;;  %v1049_v45 = vld [vmem:[%s1582_s12 + $0x128] sm:$0xff]  ;;  %v1051_v46 = vld [vmem:[%s1582_s12 + $0x130] sm:$0xff] }
  0x7d   : > { %998 = vst [vmem:[%s1825_s7 + $0x58] sm:$0xff] %v997_v19  ;;  %1000 = vst [vmem:[%s1825_s7 + $0x60] sm:$0xff] %v999_v20  ;;  %v1053_v47 = vld [vmem:[%s1582_s12 + $0x138] sm:$0xff]  ;;  %v1055_v48 = vld [vmem:[%s1582_s12 + $0x140] sm:$0xff] }
  0x7e   : > { %1002 = vst [vmem:[%s1825_s7 + $0x68] sm:$0xff] %v1001_v21  ;;  %1004 = vst [vmem:[%s1825_s7 + $0x70] sm:$0xff] %v1003_v22  ;;  %v1057_v49 = vld [vmem:[%s1582_s12 + $0x148] sm:$0xff]  ;;  %v1059_v50 = vld [vmem:[%s1582_s12 + $0x150] sm:$0xff] }
  0x7f   : > { %1006 = vst [vmem:[%s1825_s7 + $0x78] sm:$0xff] %v1005_v23  ;;  %1008 = vst [vmem:[%s1825_s7 + $0x100] sm:$0xff] %v1007_v24  ;;  %v1061_v51 = vld [vmem:[%s1582_s12 + $0x158] sm:$0xff]  ;;  %v1063_v52 = vld [vmem:[%s1582_s12 + $0x160] sm:$0xff] }
  0x80   : > { %1010 = vst [vmem:[%s1825_s7 + $0x108] sm:$0xff] %v1009_v25  ;;  %1012 = vst [vmem:[%s1825_s7 + $0x110] sm:$0xff] %v1011_v26  ;;  %v1065_v53 = vld [vmem:[%s1582_s12 + $0x168] sm:$0xff]  ;;  %v1067_v54 = vld [vmem:[%s1582_s12 + $0x170] sm:$0xff] }
  0x81   : > { %1014 = vst [vmem:[%s1825_s7 + $0x118] sm:$0xff] %v1013_v27  ;;  %1016 = vst [vmem:[%s1825_s7 + $0x120] sm:$0xff] %v1015_v28  ;;  %v1069_v55 = vld [vmem:[%s1582_s12 + $0x178] sm:$0xff]  ;;  %v1071_v56 = vld [vmem:[%s1582_s12 + $0x180] sm:$0xff] }
  0x82   : > { %1018 = vst [vmem:[%s1825_s7 + $0x128] sm:$0xff] %v1017_v29  ;;  %1020 = vst [vmem:[%s1825_s7 + $0x130] sm:$0xff] %v1019_v30  ;;  %v1073_v57 = vld [vmem:[%s1582_s12 + $0x188] sm:$0xff]  ;;  %v1075_v58 = vld [vmem:[%s1582_s12 + $0x190] sm:$0xff] }
  0x83   : > { %1022 = vst [vmem:[%s1825_s7 + $0x138] sm:$0xff] %v1021_v31  ;;  %1024 = vst [vmem:[%s1825_s7 + $0x140] sm:$0xff] %v1023_v32  ;;  %v1077_v59 = vld [vmem:[%s1582_s12 + $0x198] sm:$0xff]  ;;  %v1079_v60 = vld [vmem:[%s1582_s12 + $0x1a0] sm:$0xff] }
  0x84   : > { %1026 = vst [vmem:[%s1825_s7 + $0x148] sm:$0xff] %v1025_v33  ;;  %1028 = vst [vmem:[%s1825_s7 + $0x150] sm:$0xff] %v1027_v34  ;;  %v1081_v61 = vld [vmem:[%s1582_s12 + $0x1a8] sm:$0xff]  ;;  %v1083_v62 = vld [vmem:[%s1582_s12 + $0x1b0] sm:$0xff] }
  0x85   : > { %1030 = vst [vmem:[%s1825_s7 + $0x158] sm:$0xff] %v1029_v35  ;;  %1032 = vst [vmem:[%s1825_s7 + $0x160] sm:$0xff] %v1031_v36  ;;  %v1085_v63 = vld [vmem:[%s1582_s12 + $0x1b8] sm:$0xff]  ;;  %v1087_v2 = vld [vmem:[%s1582_s12 + $0x1c0] sm:$0xff] }
  0x86   : > { %1034 = vst [vmem:[%s1825_s7 + $0x168] sm:$0xff] %v1033_v37  ;;  %1036 = vst [vmem:[%s1825_s7 + $0x170] sm:$0xff] %v1035_v38  ;;  %v1089_v3 = vld [vmem:[%s1582_s12 + $0x1c8] sm:$0xff]  ;;  %v1091_v4 = vld [vmem:[%s1582_s12 + $0x1d0] sm:$0xff] }
  0x87   : > { %1038 = vst [vmem:[%s1825_s7 + $0x178] sm:$0xff] %v1037_v39  ;;  %1040 = vst [vmem:[%s1825_s7 + $0x200] sm:$0xff] %v1039_v40  ;;  %v1093_v5 = vld [vmem:[%s1582_s12 + $0x1d8] sm:$0xff]  ;;  %v1095_v6 = vld [vmem:[%s1582_s12 + $0x1e0] sm:$0xff] }
  0x88   : > { %1042 = vst [vmem:[%s1825_s7 + $0x208] sm:$0xff] %v1041_v41  ;;  %1044 = vst [vmem:[%s1825_s7 + $0x210] sm:$0xff] %v1043_v42  ;;  %v1097_v7 = vld [vmem:[%s1582_s12 + $0x1e8] sm:$0xff]  ;;  %v1099_v8 = vld [vmem:[%s1582_s12 + $0x1f0] sm:$0xff] }
  0x89   : > { %1046 = vst [vmem:[%s1825_s7 + $0x218] sm:$0xff] %v1045_v43  ;;  %1048 = vst [vmem:[%s1825_s7 + $0x220] sm:$0xff] %v1047_v44  ;;  %v1101_v0 = vld [vmem:[%s1582_s12 + $0x1f8] sm:$0xff] }
  0x8a   : > { %1050 = vst [vmem:[%s1825_s7 + $0x228] sm:$0xff] %v1049_v45  ;;  %1052 = vst [vmem:[%s1825_s7 + $0x230] sm:$0xff] %v1051_v46 }
  0x8b   : > { %1054 = vst [vmem:[%s1825_s7 + $0x238] sm:$0xff] %v1053_v47  ;;  %1056 = vst [vmem:[%s1825_s7 + $0x240] sm:$0xff] %v1055_v48 }
  0x8c   : > { %1058 = vst [vmem:[%s1825_s7 + $0x248] sm:$0xff] %v1057_v49  ;;  %1060 = vst [vmem:[%s1825_s7 + $0x250] sm:$0xff] %v1059_v50 }
  0x8d   : > { %1062 = vst [vmem:[%s1825_s7 + $0x258] sm:$0xff] %v1061_v51  ;;  %1064 = vst [vmem:[%s1825_s7 + $0x260] sm:$0xff] %v1063_v52 }
  0x8e   : > { %1066 = vst [vmem:[%s1825_s7 + $0x268] sm:$0xff] %v1065_v53  ;;  %1068 = vst [vmem:[%s1825_s7 + $0x270] sm:$0xff] %v1067_v54 }
  0x8f   : > { %1070 = vst [vmem:[%s1825_s7 + $0x278] sm:$0xff] %v1069_v55  ;;  %1072 = vst [vmem:[%s1825_s7 + $0x300] sm:$0xff] %v1071_v56 }
  0x90   : > { %1074 = vst [vmem:[%s1825_s7 + $0x308] sm:$0xff] %v1073_v57  ;;  %1076 = vst [vmem:[%s1825_s7 + $0x310] sm:$0xff] %v1075_v58 }
  0x91   : > { %1078 = vst [vmem:[%s1825_s7 + $0x318] sm:$0xff] %v1077_v59  ;;  %1080 = vst [vmem:[%s1825_s7 + $0x320] sm:$0xff] %v1079_v60 }
  0x92   : > { %1082 = vst [vmem:[%s1825_s7 + $0x328] sm:$0xff] %v1081_v61  ;;  %1084 = vst [vmem:[%s1825_s7 + $0x330] sm:$0xff] %v1083_v62 }
  0x93   : > { %1086 = vst [vmem:[%s1825_s7 + $0x338] sm:$0xff] %v1085_v63  ;;  %1088 = vst [vmem:[%s1825_s7 + $0x340] sm:$0xff] %v1087_v2 }
  0x94   : > { %1090 = vst [vmem:[%s1825_s7 + $0x348] sm:$0xff] %v1089_v3  ;;  %1092 = vst [vmem:[%s1825_s7 + $0x350] sm:$0xff] %v1091_v4 }
  0x95   : > { %1094 = vst [vmem:[%s1825_s7 + $0x358] sm:$0xff] %v1093_v5  ;;  %1096 = vst [vmem:[%s1825_s7 + $0x360] sm:$0xff] %v1095_v6 }
  0x96   : > { %1098 = vst [vmem:[%s1825_s7 + $0x368] sm:$0xff] %v1097_v7  ;;  %1100 = vst [vmem:[%s1825_s7 + $0x370] sm:$0xff] %v1099_v8 }
  0x97   : > { %1102 = vst [vmem:[%s1825_s7 + $0x378] sm:$0xff] %v1101_v0 }
  0x98 PF: > { %s13_s18 = sadd.s32 1, %s1313_s18   ;;  %s1972_s12 = smov %s1293_s13 }
  0x99   : > { %p10_p12 = scmp.ge.s32.totalorder %s13_s18, 6   ;;  %s1973_s13 = smov %s1391_s27 }
  0x9a   : > { %s1974_s14 = smov %s1305_s16  ;;  %s1975_s15 = smov %s1309_s17 }
  0x9b   : > { %s1976_s16 = smov %s1979_s19  ;;  %s1977_s17 = smov %s1983_s20 }
  0x9c   :  { %12 = sbr.rel (!%p10_p12) target bundleno = 4 (0x4), region = 143 }

// kernel: conv2d_transpose_unit.2
= control target key start
LH: loop header
LB: loop body
LE: loop exit
PB: predicated region body
PF: predicated region fallthrough
CT: control target
= control target key end

     0   :  { %s2648_s24 = smov 0   ;;  %s2650_s25 = smov 0   ;;  %s3958_s0 = inlined_call_operand.vmem [shape: f32[2,16,17,4], index: 0, kind: input, shape index: {}]   ;;  %s3959_s1 = inlined_call_operand.vmem [shape: f32[2,16,17,4], index: 1, kind: input, shape index: {}]   ;;  %s3960_s2 = inlined_call_operand.vmem [shape: f32[4,512], index: 2, kind: input, shape index: {}]   ;;  %s3961_s3 = inlined_call_operand.vmem [shape: f32[4,256], index: 3, kind: input, shape index: {}]   ;;  %s3962_s4 = inlined_call_operand.vmem [shape: f32[4,256], index: 4, kind: input, shape index: {}]   ;;  %s3963_s5 = inlined_call_operand.vmem [shape: f32[4,128], index: 5, kind: input, shape index: {}]   ;;  %s3964_s6 = inlined_call_operand.vmem [shape: f32[2,2,2,16,16,128], index: 6, kind: output, shape index: {0}]   ;;  %s3965_s7 = inlined_call_operand.vmem [shape: f32[2,2,2,128], index: 7, kind: output, shape index: {1}]  }
   0x1   :  { %s2652_s26 = smov 0   ;;  %s2654_s27 = smov 0  }
   0x2   :  { %s2656_s28 = smov 0   ;;  %s2658_s29 = smov 0  }
   0x3   :  { %s2660_s30 = smov 0  }
   0x4 LB: > { %s27_s8 = sadd.s32 1, %s2597_s28  ;;  %s30_s9 = sadd.s32 1, %s2601_s29  ;;  %s2605_s30 = sphi %s2660_s30, %s18_s30   ;;  %s2601_s29 = sphi %s2658_s29, %s4038_s29   ;;  %s2597_s28 = sphi %s2656_s28, %s4037_s28   ;;  %s2593_s27 = sphi %s2654_s27, %s4036_s27   ;;  %s2589_s26 = sphi %s2652_s26, %s4035_s26   ;;  %s2585_s25 = sphi %s2650_s25, %s4034_s25   ;;  %s2581_s24 = sphi %s2648_s24, %s4033_s24  }
   0x5   : > { %p28_p0 = scmp.ge.s32.totalorder %s27_s8, 2  ;;  %s2286_s10 = sadd.s32 4294967295, %s2605_s30  }
   0x6   : > { %p189_p1 = scmp.ne.s32.totalorder %s2585_s25, %s2581_s24  ;;  %p190_p2 = scmp.eq.s32.totalorder %s2286_s10, 3 }
   0x7   : > { %s4040_s8 = smov (%p28_p0, %s27_s8), 0  ;;  %s4042_s9 = smov (!%p28_p0, %s30_s9), %s2601_s29 }
   0x8   : > { %s175_s11 = ssub.s32 %s2597_s28, %s4040_s8  ;;  %p32_p3 = scmp.ge.s32.totalorder %s4042_s9, 2 }
   0x9   : > { %p2290_p4 = scmp.ge.s32.totalorder %s2605_s30, 1  ;;  %p2694_p5 = por %p190_p2, %p189_p1 }
   0xa   : > { %p282_p6 = scmp.lt.s32.totalorder %s2605_s30, 5  ;;  %s4044_s9 = smov (%p32_p3, %s4042_s9), 0 }
   0xb   : > { %s174_s13 = ssub.s32 %s2601_s29, %s4044_s9  ;;  %s179_s15 = sadd.s32 1, %s2585_s25 }
   0xc   : > { %p283_p7 = pnand %p2290_p4, %p282_p6  ;;  %s176_s14 = sor.u32 %s175_s11, %s174_s13 }
   0xd   : > { %p177_p8 = scmp.eq.s32.totalorder %s176_s14, 0 }
   0xe   : > { %286 = sbr.rel (%p283_p7) target bundleno = 402 (0x192), region = 44 }
   0xf   : > { %s2705_s16 = scalar_select %p177_p8, %s2585_s25, %s179_s15  }
  0x13   : > { %v415_v0 = vld [vmem:[%s3960_s2] sm:$0xff]  ;;  %vm470_vm0 = vcmask 1043456   ;;  %v416_v1 = vld [vmem:[%s3960_s2 + $0x8] sm:$0xff]  ;;  %s2292_s21 = sshll.u32 %s2589_s26, 3  ;;  %p337_p9 = scmp.lt.s32.totalorder %s2593_s27, 1  ;;  %v2607_v3 = vmov 0.0  }
  0x14   : > { %v419_v2 = vcombine.high %v415_v0, %v415_v0  ;;  %543 = vmatprep.mubr.f32.mxu0 %v2607_v3  ;;  %615 = vmatprep.mubr.f32.mxu1 %v2607_v3  ;;  %v420_v4 = vcombine.high %v416_v1, %v416_v1  ;;  %p339_p10 = scmp.lt.s32.totalorder %s2292_s21, 15  ;;  %v801_v5 = vld [vmem:[%s3961_s3] sm:$0xff]  ;;  %vm421_vm1 = vcmask 31744   ;;  %vm810_vm2 = vcmask 1046528   ;;  %s323_s15 = sand.u32 1, %s2581_s24  }
  0x15   : > { %s2721_s10 = scalar_select %p337_p9, %s2593_s27, 1  ;;  %v852_v6 = vcombine.high %v801_v5, %v801_v5  ;;  %v2733_v7 = vld [vmem:[%s3962_s4] sm:$0xff] }
  0x16   : > { %2486 = vmatprep.subr.msk.mxu1 %vm470_vm0, %v419_v2  ;;  %2298 = vmatprep.subr.msk.mxu0 %vm470_vm0, %v419_v2  ;;  %s4046_s21 = smov (!%p339_p10, %s2292_s21), 15  ;;  %v1052_v10 = vcombine.high %v2733_v7, %v2733_v7  ;;  %v2755_v11 = vld [vmem:[%s3963_s5] sm:$0xf]  ;;  %s2291_s17 = sshll.u32 %s323_s15, 9 }
  0x17   : > { %2487 = vmatpush1.msk.msra.mxu1 %vm470_vm0, %v415_v0  ;;  %2299 = vmatpush1.msk.msra.mxu0 %vm470_vm0, %v415_v0  ;;  %s2489_s11 = smul.u32 48, %s2721_s10  ;;  %p361_p11 = scmp.lt.s32.totalorder %s2589_s26, 1 }
  0x18   : > { %2316 = vmatprep.subr.msk.mxu1 %vm470_vm0, %v420_v4  ;;  %s2488_s13 = smul.u32 3, %s4046_s21  ;;  %2334 = vmatprep.subr.msk.mxu0 %vm470_vm0, %v852_v6  ;;  %s2296_s19 = sshll.u32 %s2721_s10, 1 }
  0x19   : > { %s362_s24 = scalar_select %p361_p11, %s2589_s26, 1 }
  0x1a   : > { %s343_s14 = sadd.s32 %s2489_s11, %s2488_s13  ;;  %s2442_s10 = sshll.u32 (%p2694_p5), %s2589_s26, 4 }
  0x1b   : > { %s2293_s18 = sshll.u32 %s343_s14, 3  ;;  %s364_s20 = sadd.s32 %s2296_s19, %s362_s24 }
  0x1c   : > { %s2738_s22 = scalar_lea.vmem %s3958_s0, %s2293_s18  ;;  %s2785_s14 = scalar_lea.vmem %s3959_s1, %s2293_s18 }
  0x1d   : > { %v2741_v8 = vld [vmem:[%s2738_s22] sm:$0xff]  ;;  %v2744_v9 = vld [vmem:[%s2738_s22 + $0x90] sm:$0xff]  ;;  %v2760_v12 = vld [vmem:[%s2738_s22 + $0x8] sm:$0xff]  ;;  %s3177_s18 = scalar_lea.vmem [#allocation2], %s2291_s17  ;;  %s2438_s13 = sshll.u32 (%p2694_p5), %s2593_s27, 7 }
  0x1e   : > { %2300 = vmatmul.mubr.msk.f32.vlgmr.msra.gmra.mxu0 %vm421_vm1, %v2741_v8  ;;  %2312 = vmatmul.mubr.msk.f32.vlgmr.msra.gmra.mxu1 %vm421_vm1, %v2744_v9  ;;  %v2763_v13 = vld [vmem:[%s2738_s22 + $0x98] sm:$0xff]  ;;  %v2780_v15 = vld [vmem:[%s2738_s22 + $0xa8] sm:$0xff]  ;;  %v2795_v17 = vld [vmem:[%s2738_s22 + $0x20] sm:$0xff]  ;;  %s1864_s12 = sadd.s32 (%p2694_p5), %s2442_s10, %s2438_s13 }
  0x1f   : > { %2317 = vmatpush1.msk.msra.mxu1 %vm470_vm0, %v416_v1  ;;  %2335 = vmatpush1.msk.msra.mxu0 %vm470_vm0, %v801_v5  ;;  %v2777_v14 = vld [vmem:[%s2738_s22 + $0x18] sm:$0xff]  ;;  %v2798_v18 = vld [vmem:[%s2738_s22 + $0xb0] sm:$0xff]  ;;  %v2802_v20 = vld [vmem:[%s2785_s14 + $0x20] sm:$0xff] }
  0x20   : > { %549 = vmatprep.mubr.f32.mxu0 %v2607_v3  ;;  %621 = vmatprep.mubr.f32.mxu1 %v2607_v3  ;;  %v2788_v16 = vld [vmem:[%s2785_s14 + $0x18] sm:$0xff]  ;;  %v2807_v21 = vld [vmem:[%s2785_s14 + $0x8] sm:$0xff]  ;;  %v1281_v22 = vrot.slane %v2802_v20, 1  ;;  %v2811_v23 = vld [vmem:[%s2785_s14 + $0x30] sm:$0xff] }
  0x21   : > { %2352 = vmatprep.subr.msk.mxu1 %vm470_vm0, %v1052_v10  ;;  %2460 = vmatprep.subr.msk.mxu0 %vm470_vm0, %v2755_v11  ;;  %v1280_v19 = vrot.slane %v2788_v16, 1  ;;  %v2814_v24 = vld [vmem:[%s2785_s14 + $0x38] sm:$0xff]  ;;  %v1276_v25 = vrot.slane %v2807_v21, 1  ;;  %v1285_v26 = vrot.slane %v2811_v23, 1  ;;  %v2820_v28 = vld [vmem:[%s2785_s14 + $0x48] sm:$0xff]  ;;  %v2823_v29 = vld [vmem:[%s2785_s14 + $0x50] sm:$0xff] }
  0x22   : > { %2301 = vmatmul.mubr.msk.f32.gmra.mxu0 %vm421_vm1, %v2760_v12  ;;  %2313 = vmatmul.mubr.msk.f32.gmra.mxu1 %vm421_vm1, %v2763_v13  ;;  %v1286_v27 = vrot.slane %v2814_v24, 1  ;;  %v2826_v30 = vld [vmem:[%s2738_s22 + $0x30] sm:$0xff]  ;;  %v1290_v31 = vrot.slane %v2820_v28, 1  ;;  %v1291_v32 = vrot.slane %v2823_v29, 1  ;;  %v2831_v33 = vld [vmem:[%s2785_s14 + $0x60] sm:$0xff]  ;;  %v2843_v38 = vld [vmem:[%s2785_s14 + $0x68] sm:$0xff] }
  0x23   : > { %555 = vmatprep.mubr.f32.mxu0 %v2607_v3  ;;  %627 = vmatprep.mubr.f32.mxu1 %v2607_v3  ;;  %v393_v34 = vld [vmem:[%s2785_s14 + $0x10] sm:$0x1]  ;;  %v1295_v35 = vrot.slane %v2831_v33, 1  ;;  %v2840_v37 = vsel %vm810_vm2, %v1280_v19, %v1281_v22  ;;  %v396_v39 = vld [vmem:[%s2785_s14 + $0x28] sm:$0x1]  ;;  %v2847_v40 = vld [vmem:[%s2785_s14 + $0x78] sm:$0xff] }
  0x24   : > { %v1278_v36 = vrot.slane %v393_v34, 1  ;;  %v1296_v41 = vrot.slane %v2843_v38, 1  ;;  %v1283_v42 = vrot.slane %v396_v39, 1  ;;  %v399_v43 = vld [vmem:[%s2785_s14 + $0x40] sm:$0x1]  ;;  %v2857_v45 = vld [vmem:[%s2785_s14 + $0x90] sm:$0xff]  ;;  %v2865_v47 = vsel %vm810_vm2, %v1285_v26, %v1286_v27 }
  0x25   : > { %v2854_v44 = vld [vmem:[%s2785_s14 + $0x80] sm:$0xff]  ;;  %v1300_v48 = vrot.slane %v2847_v40, 1  ;;  %v1288_v49 = vrot.slane %v399_v43, 1  ;;  %v402_v50 = vld [vmem:[%s2785_s14 + $0x58] sm:$0x1]  ;;  %v2874_v53 = vsel %vm810_vm2, %v1290_v31, %v1291_v32  ;;  %v2882_v58 = vld [vmem:[%s2785_s14 + $0xa8] sm:$0xff] }
  0x26   : > { %2302 = vmatmul.mubr.msk.f32.gmra.mxu0 %vm421_vm1, %v2777_v14  ;;  %2314 = vmatmul.mubr.msk.f32.gmra.mxu1 %vm421_vm1, %v2780_v15  ;;  %v2862_v46 = vsel %vm810_vm2, %v1276_v25, %v1278_v36  ;;  %v405_v51 = vld [vmem:[%s2785_s14 + $0x70] sm:$0x1]  ;;  %v2871_v52 = vsel %vm810_vm2, %v1281_v22, %v1283_v42  ;;  %v1301_v54 = vrot.slane %v2854_v44, 1  ;;  %v1293_v55 = vrot.slane %v402_v50, 1  ;;  %v2878_v56 = vld [vmem:[%s2785_s14 + $0x98] sm:$0xff]  ;;  %v2938_v36 = vld [vmem:[%s2738_s22 + $0x48] sm:$0xff] }
  0x27   : > { %561 = vmatprep.mubr.f32.mxu0 %v2607_v3  ;;  %633 = vmatprep.mubr.f32.mxu1 %v2607_v3  ;;  %v408_v57 = vld [vmem:[%s2785_s14 + $0x88] sm:$0x1]  ;;  %v2889_v59 = vsel %vm810_vm2, %v1286_v27, %v1288_v49  ;;  %v2892_v60 = vsel %vm810_vm2, %v1295_v35, %v1296_v41  ;;  %v1305_v61 = vrot.slane %v2857_v45, 1  ;;  %v1298_v62 = vrot.slane %v405_v51, 1  ;;  %v411_v63 = vld [vmem:[%s2785_s14 + $0xa0] sm:$0x1] }
  0x28   : > { %v2897_v0 = vld [vmem:[%s2785_s14 + $0xb0] sm:$0xff]  ;;  %v2903_v1 = vld [vmem:[%s2738_s22 + $0x38] sm:$0xff]  ;;  %v2906_v2 = vsel %vm810_vm2, %v1291_v32, %v1293_v55  ;;  %v2909_v4 = vsel %vm810_vm2, %v1300_v48, %v1301_v54  ;;  %v1306_v5 = vrot.slane %v2878_v56, 1  ;;  %v1303_v6 = vrot.slane %v408_v57, 1  ;;  %v2959_v42 = vld [vmem:[%s2738_s22 + $0x60] sm:$0xff] }
  0x29   : > { %v414_v10 = vld [vmem:[%s2785_s14 + $0xb8] sm:$0x1]  ;;  %v2915_v19 = vsel %vm810_vm2, %v1296_v41, %v1298_v62  ;;  %v1308_v22 = vrot.slane %v411_v63, 1  ;;  %v1311_v26 = vrot.slane %v2897_v0, 1  ;;  %v2950_v41 = vld [vmem:[%s2738_s22 + $0x50] sm:$0xff]  ;;  %v2968_v43 = vld [vmem:[%s2738_s22 + $0x68] sm:$0xff] }
  0x2a   : > { %2303 = vmatmul.mubr.msk.f32.gmra.mxu0 %vm421_vm1, %v2795_v17  ;;  %2315 = vmatmul.mubr.msk.f32.gmra.mxu1 %vm421_vm1, %v2798_v18  ;;  %v2920_v27 = vsel %vm810_vm2, %v1301_v54, %v1303_v6  ;;  %v2923_v31 = vsel %vm810_vm2, %v1305_v61, %v1306_v5  ;;  %v1313_v32 = vrot.slane %v414_v10, 1  ;;  %v2977_v48 = vld [vmem:[%s2738_s22 + $0x78] sm:$0xff]  ;;  %v811_v49 = vrot.slane %v2741_v8, 1  ;;  %v2988_v51 = vld [vmem:[%s2738_s22 + $0x80] sm:$0xff]  ;;  %v369_v54 = vld [vmem:[%s2738_s22 + $0x10] sm:$0x1] }
  0x2b   : > { %567 = vmatprep.mubr.f32.mxu0 %v2607_v3  ;;  %704 = vmatprep.mubr.f32.mxu1 %v2607_v3  ;;  %v2930_v34 = vsel %vm810_vm2, %v1306_v5, %v1308_v22  ;;  %v812_v50 = vrot.slane %v2760_v12, 1  ;;  %v816_v55 = vrot.slane %v2777_v14, 1  ;;  %v817_v57 = vrot.slane %v2795_v17, 1  ;;  %v372_v62 = vld [vmem:[%s2738_s22 + $0x28] sm:$0x1] }
  0x2c   : > { %v2941_v39 = vsel %vm810_vm2, %v1311_v26, %v1313_v32  ;;  %v822_v63 = vrot.slane %v2903_v1, 1  ;;  %v375_v6 = vld [vmem:[%s2738_s22 + $0x40] sm:$0x1]  ;;  %v826_v10 = vrot.slane %v2938_v36, 1 }
  0x2e   : > { %2304 = vmatmul.mubr.msk.f32.gmra.mxu0 %vm421_vm1, %v2826_v30  ;;  %2318 = vmatmul.mubr.msk.f32.vlgmr.msra.gmra.mxu1 %vm421_vm1, %v2741_v8  ;;  %v813_v8 = vsel %vm810_vm2, %v811_v49, %v812_v50  ;;  %v832_v49 = vrot.slane %v2968_v43, 1 }
  0x2f   : > { %2353 = vmatpush1.msk.msra.mxu1 %vm470_vm0, %v2733_v7  ;;  %573 = vmatprep.mubr.f32.mxu0 %v2607_v3  ;;  %v1310_v7 = vrot.slane %v2882_v58, 1 }
  0x30   : > { %710 = vmatprep.mubr.f32.mxu1 %v2607_v3 }
  0x31   : > { %v2933_v35 = vsel %vm810_vm2, %v1310_v7, %v1311_v26  ;;  %v827_v7 = vrot.slane %v2950_v41, 1  ;;  %v378_v26 = vld [vmem:[%s2738_s22 + $0x58] sm:$0x1] }
  0x32   : > { %2305 = vmatmul.mubr.msk.f32.gmra.mxu0 %vm421_vm1, %v2903_v1  ;;  %2319 = vmatmul.mubr.msk.f32.gmra.mxu1 %vm421_vm1, %v2760_v12  ;;  %v814_v12 = vrot.slane %v369_v54, 1  ;;  %v381_v54 = vld [vmem:[%s2738_s22 + $0x70] sm:$0x1] }
  0x33   : > { %579 = vmatprep.mubr.f32.mxu0 %v2607_v3  ;;  %716 = vmatprep.mubr.f32.mxu1 %v2607_v3  ;;  %v828_v32 = vsel %vm810_vm2, %v826_v10, %v827_v7 }
  0x34   : > { %v815_v61 = vsel %vm810_vm2, %v812_v50, %v814_v12  ;;  %v836_v12 = vrot.slane %v2977_v48, 1 }
  0x36   : > { %2306 = vmatmul.mubr.msk.f32.gmra.mxu0 %vm421_vm1, %v2938_v36  ;;  %2320 = vmatmul.mubr.msk.f32.gmra.mxu1 %vm421_vm1, %v2777_v14  ;;  %v818_v14 = vsel %vm810_vm2, %v816_v55, %v817_v57  ;;  %v837_v55 = vrot.slane %v2988_v51, 1 }
  0x37   : > { %585 = vmatprep.mubr.f32.mxu0 %v2607_v3  ;;  %722 = vmatprep.mubr.f32.mxu1 %v2607_v3 }
  0x3a   : > { %2307 = vmatmul.mubr.msk.f32.gmra.mxu0 %vm421_vm1, %v2950_v41  ;;  %2321 = vmatmul.mubr.msk.f32.gmra.mxu1 %vm421_vm1, %v2795_v17  ;;  %v821_v17 = vrot.slane %v2826_v30, 1 }
  0x3b   : > { %591 = vmatprep.mubr.f32.mxu0 %v2607_v3  ;;  %728 = vmatprep.mubr.f32.mxu1 %v2607_v3 }
  0x3e   : > { %2308 = vmatmul.mubr.msk.f32.gmra.mxu0 %vm421_vm1, %v2959_v42  ;;  %2322 = vmatmul.mubr.msk.f32.gmra.mxu1 %vm421_vm1, %v2826_v30  ;;  %v823_v30 = vsel %vm810_vm2, %v821_v17, %v822_v63  ;;  %v387_v17 = vld [vmem:[%s2738_s22 + $0xa0] sm:$0x1] }
  0x3f   : > { %597 = vmatprep.mubr.f32.mxu0 %v2607_v3  ;;  %734 = vmatprep.mubr.f32.mxu1 %v2607_v3 }
  0x42   : > { %2309 = vmatmul.mubr.msk.f32.gmra.mxu0 %vm421_vm1, %v2968_v43  ;;  %2323 = vmatmul.mubr.msk.f32.gmra.mxu1 %vm421_vm1, %v2903_v1  ;;  %v824_v1 = vrot.slane %v375_v6, 1 }
  0x43   : > { %603 = vmatprep.mubr.f32.mxu0 %v2607_v3  ;;  %740 = vmatprep.mubr.f32.mxu1 %v2607_v3 }
  0x44   : > { %v825_v22 = vsel %vm810_vm2, %v822_v63, %v824_v1  ;;  %v847_v63 = vrot.slane %v2798_v18, 1 }
  0x46   : > { %2310 = vmatmul.mubr.msk.f32.gmra.mxu0 %vm421_vm1, %v2977_v48  ;;  %2324 = vmatmul.mubr.msk.f32.gmra.mxu1 %vm421_vm1, %v2938_v36  ;;  %v829_v36 = vrot.slane %v378_v26, 1 }
  0x47   : > { %609 = vmatprep.mubr.f32.mxu0 %v2607_v3  ;;  %746 = vmatprep.mubr.f32.mxu1 %v2607_v3 }
  0x48   : > { %v830_v50 = vsel %vm810_vm2, %v827_v7, %v829_v36 }
  0x4a   : > { %2311 = vmatmul.mubr.msk.f32.gmra.mxu0 %vm421_vm1, %v2988_v51  ;;  %2325 = vmatmul.mubr.msk.f32.gmra.mxu1 %vm421_vm1, %v2950_v41  ;;  %v831_v41 = vrot.slane %v2959_v42, 1 }
  0x4b   : > { %752 = vmatprep.mubr.f32.mxu1 %v2607_v3  ;;  %953 = vmatprep.mubr.f32.mxu0 %v2607_v3 }
  0x4e   : > { %2326 = vmatmul.mubr.msk.f32.gmra.mxu1 %vm421_vm1, %v2959_v42  ;;  %2336 = vmatmul.mubr.msk.f32.vlgmr.msra.gmra.mxu0 %vm421_vm1, %v813_v8  ;;  %v833_v42 = vsel %vm810_vm2, %v831_v41, %v832_v49  ;;  %v834_v8 = vrot.slane %v381_v54, 1 }
  0x4f   : > { %2461 = vmatpush3.msk.msra.mxu0 %vm470_vm0, %v2755_v11  ;;  %758 = vmatprep.mubr.f32.mxu1 %v2607_v3  ;;  %v819_v11 = vrot.slane %v372_v62, 1  ;;  %v841_v62 = vrot.slane %v2744_v9, 1 }
  0x50   : > { %959 = vmatprep.mubr.f32.mxu0 %v2607_v3 }
  0x51   : > { %v820_v5 = vsel %vm810_vm2, %v817_v57, %v819_v11  ;;  %v835_v57 = vsel %vm810_vm2, %v832_v49, %v834_v8 }
  0x52   : > { %2327 = vmatmul.mubr.msk.f32.gmra.mxu1 %vm421_vm1, %v2968_v43  ;;  %2337 = vmatmul.mubr.msk.f32.gmra.mxu0 %vm421_vm1, %v815_v61  ;;  %v391_v43 = vld [vmem:[%s2785_s14] sm:$0xff]  ;;  %v384_v61 = vld [vmem:[%s2738_s22 + $0x88] sm:$0x1]  ;;  %s2439_s14 = sshll.u32 (%p2694_p5), %s1864_s12, 3 }
  0x53   : > { %764 = vmatprep.mubr.f32.mxu1 %v2607_v3  ;;  %965 = vmatprep.mubr.f32.mxu0 %v2607_v3  ;;  %s3816_s24 = scalar_lea.vmem (%p2694_p5), %s3964_s6, %s2439_s14 }
  0x56   : > { %2328 = vmatmul.mubr.msk.f32.gmra.mxu1 %vm421_vm1, %v2977_v48  ;;  %2338 = vmatmul.mubr.msk.f32.gmra.mxu0 %vm421_vm1, %v818_v14  ;;  %v838_v48 = vsel %vm810_vm2, %v836_v12, %v837_v55  ;;  %v842_v14 = vrot.slane %v2763_v13, 1 }
  0x57   : > { %770 = vmatprep.mubr.f32.mxu1 %v2607_v3  ;;  %971 = vmatprep.mubr.f32.mxu0 %v2607_v3 }
  0x5a   : > { %2329 = vmatmul.mubr.msk.f32.gmra.mxu1 %vm421_vm1, %v2988_v51  ;;  %2339 = vmatmul.mubr.msk.f32.gmra.mxu0 %vm421_vm1, %v820_v5  ;;  %v839_v51 = vrot.slane %v384_v61, 1  ;;  %v390_v5 = vld [vmem:[%s2738_s22 + $0xb8] sm:$0x1]  ;;  %s2297_s22 = sshll.u32 %s364_s20, 1 }
  0x5b   : > { %776 = vmatprep.mubr.f32.mxu1 %v2607_v3  ;;  %977 = vmatprep.mubr.f32.mxu0 %v2607_v3  ;;  %s366_s11 = scalar_lea.vmem %s3965_s7, %s2297_s22 }
  0x5c   : > { %v840_v11 = vsel %vm810_vm2, %v837_v55, %v839_v51 }
  0x5e   : > { %2330 = vmatmul.mubr.msk.f32.gmra.mxu1 %vm421_vm1, %v2744_v9  ;;  %2340 = vmatmul.mubr.msk.f32.gmra.mxu0 %vm421_vm1, %v823_v30  ;;  %v843_v9 = vsel %vm810_vm2, %v841_v62, %v842_v14 }
  0x5f   : > { %782 = vmatprep.mubr.f32.mxu1 %v2607_v3  ;;  %983 = vmatprep.mubr.f32.mxu0 %v2607_v3 }
  0x62   : > { %2331 = vmatmul.mubr.msk.f32.gmra.mxu1 %vm421_vm1, %v2763_v13  ;;  %2341 = vmatmul.mubr.msk.f32.gmra.mxu0 %vm421_vm1, %v825_v22  ;;  %v844_v13 = vrot.slane %v387_v17, 1 }
  0x63   : > { %788 = vmatprep.mubr.f32.mxu1 %v2607_v3  ;;  %989 = vmatprep.mubr.f32.mxu0 %v2607_v3 }
  0x66   : > { %2332 = vmatmul.mubr.msk.f32.gmra.mxu1 %vm421_vm1, %v2780_v15  ;;  %2342 = vmatmul.mubr.msk.f32.gmra.mxu0 %vm421_vm1, %v828_v32 }
  0x67   : > { %794 = vmatprep.mubr.f32.mxu1 %v2607_v3  ;;  %995 = vmatprep.mubr.f32.mxu0 %v2607_v3 }
  0x6a   : > { %2333 = vmatmul.mubr.msk.f32.gmra.mxu1 %vm421_vm1, %v2798_v18  ;;  %2343 = vmatmul.mubr.msk.f32.gmra.mxu0 %vm421_vm1, %v830_v50  ;;  %v1275_v18 = vrot.slane %v391_v43, 1 }
  0x6b   : > { %1001 = vmatprep.mubr.f32.mxu0 %v2607_v3  ;;  %1169 = vmatprep.mubr.f32.mxu1 %v2607_v3 }
  0x6e   : > { %2344 = vmatmul.mubr.msk.f32.gmra.mxu0 %vm421_vm1, %v833_v42  ;;  %2354 = vmatmul.mubr.msk.f32.vlgmr.msra.gmra.mxu1 %vm421_vm1, %v391_v43 }
  0x6f   : > { %1007 = vmatprep.mubr.f32.mxu0 %v2607_v3  ;;  %1175 = vmatprep.mubr.f32.mxu1 %v2607_v3 }
  0x72   : > { %2345 = vmatmul.mubr.msk.f32.gmra.mxu0 %vm421_vm1, %v835_v57  ;;  %2355 = vmatmul.mubr.msk.f32.gmra.mxu1 %vm421_vm1, %v2807_v21 }
  0x73   : > { %1013 = vmatprep.mubr.f32.mxu0 %v2607_v3  ;;  %1181 = vmatprep.mubr.f32.mxu1 %v2607_v3 }
  0x76   : > { %2346 = vmatmul.mubr.msk.f32.gmra.mxu0 %vm421_vm1, %v838_v48  ;;  %2356 = vmatmul.mubr.msk.f32.gmra.mxu1 %vm421_vm1, %v2788_v16  ;;  %v846_v16 = vrot.slane %v2780_v15, 1 }
  0x77   : > { %1019 = vmatprep.mubr.f32.mxu0 %v2607_v3  ;;  %1187 = vmatprep.mubr.f32.mxu1 %v2607_v3 }
  0x78   : > { %v848_v15 = vsel %vm810_vm2, %v846_v16, %v847_v63 }
  0x7a   : > { %2347 = vmatmul.mubr.msk.f32.gmra.mxu0 %vm421_vm1, %v840_v11  ;;  %2357 = vmatmul.mubr.msk.f32.gmra.mxu1 %vm421_vm1, %v2802_v20  ;;  %v845_v20 = vsel %vm810_vm2, %v842_v14, %v844_v13 }
  0x7b   : > { %1025 = vmatprep.mubr.f32.mxu0 %v2607_v3  ;;  %1193 = vmatprep.mubr.f32.mxu1 %v2607_v3 }
  0x7e   : > { %2348 = vmatmul.mubr.msk.f32.gmra.mxu0 %vm421_vm1, %v843_v9  ;;  %2358 = vmatmul.mubr.msk.f32.gmra.mxu1 %vm421_vm1, %v2811_v23  ;;  %v849_v23 = vrot.slane %v390_v5, 1 }
  0x7f   : > { %1031 = vmatprep.mubr.f32.mxu0 %v2607_v3  ;;  %1199 = vmatprep.mubr.f32.mxu1 %v2607_v3 }
  0x80   : > { %v850_v6 = vsel %vm810_vm2, %v847_v63, %v849_v23 }
  0x82   : > { %2349 = vmatmul.mubr.msk.f32.gmra.mxu0 %vm421_vm1, %v845_v20  ;;  %2359 = vmatmul.mubr.msk.f32.gmra.mxu1 %vm421_vm1, %v2814_v24  ;;  %v1277_v24 = vsel %vm810_vm2, %v1275_v18, %v1276_v25 }
  0x83   : > { %1037 = vmatprep.mubr.f32.mxu0 %v2607_v3  ;;  %1205 = vmatprep.mubr.f32.mxu1 %v2607_v3 }
  0x86   : > { %2350 = vmatmul.mubr.msk.f32.gmra.mxu0 %vm421_vm1, %v848_v15  ;;  %2360 = vmatmul.mubr.msk.f32.gmra.mxu1 %vm421_vm1, %v2820_v28 }
  0x87   : > { %1043 = vmatprep.mubr.f32.mxu0 %v2607_v3  ;;  %1211 = vmatprep.mubr.f32.mxu1 %v2607_v3 }
  0x8a   : > { %2351 = vmatmul.mubr.msk.f32.gmra.mxu0 %vm421_vm1, %v850_v6  ;;  %2361 = vmatmul.mubr.msk.f32.gmra.mxu1 %vm421_vm1, %v2823_v29 }
  0x8b   : > { %1217 = vmatprep.mubr.f32.mxu1 %v2607_v3  ;;  %2462 = vmatprep.mubr.msk.f32.mxu0 %vm421_vm1, %v1277_v24 }
  0x8e   : > { %2362 = vmatmul.mubr.msk.f32.gmra.mxu1 %vm421_vm1, %v2831_v33  ;;  %2463 = vmatmul.mubr.msk.f32.vlgmr.msra.gmra.mxu0 %vm421_vm1, %v2862_v46 }
  0x8f   : > { %1223 = vmatprep.mubr.f32.mxu1 %v2607_v3  ;;  %2465 = vmatprep.mubr.msk.f32.mxu0 %vm421_vm1, %v2840_v37 }
  0x92   : > { %2363 = vmatmul.mubr.msk.f32.gmra.mxu1 %vm421_vm1, %v2843_v38  ;;  %2466 = vmatmul.mubr.msk.f32.gmra.mxu0 %vm421_vm1, %v2871_v52 }
  0x93   : > { %1229 = vmatprep.mubr.f32.mxu1 %v2607_v3  ;;  %2468 = vmatprep.mubr.msk.f32.mxu0 %vm421_vm1, %v2865_v47 }
  0x96   : > { %2364 = vmatmul.mubr.msk.f32.gmra.mxu1 %vm421_vm1, %v2847_v40  ;;  %2469 = vmatmul.mubr.msk.f32.gmra.mxu0 %vm421_vm1, %v2889_v59 }
  0x97   : > { %1235 = vmatprep.mubr.f32.mxu1 %v2607_v3  ;;  %2471 = vmatprep.mubr.msk.f32.mxu0 %vm421_vm1, %v2874_v53 }
  0x9a   : > { %2365 = vmatmul.mubr.msk.f32.gmra.mxu1 %vm421_vm1, %v2854_v44  ;;  %2472 = vmatmul.mubr.msk.f32.gmra.mxu0 %vm421_vm1, %v2906_v2 }
  0x9b   : > { %1241 = vmatprep.mubr.f32.mxu1 %v2607_v3  ;;  %2474 = vmatprep.mubr.msk.f32.mxu0 %vm421_vm1, %v2892_v60 }
  0x9e   : > { %2366 = vmatmul.mubr.msk.f32.gmra.mxu1 %vm421_vm1, %v2857_v45  ;;  %2475 = vmatmul.mubr.msk.f32.gmra.mxu0 %vm421_vm1, %v2915_v19 }
  0x9f   : > { %1247 = vmatprep.mubr.f32.mxu1 %v2607_v3  ;;  %2477 = vmatprep.mubr.msk.f32.mxu0 %vm421_vm1, %v2909_v4 }
  0xa2   : > { %2367 = vmatmul.mubr.msk.f32.gmra.mxu1 %vm421_vm1, %v2878_v56  ;;  %2478 = vmatmul.mubr.msk.f32.gmra.mxu0 %vm421_vm1, %v2920_v27 }
  0xa3   : > { %1253 = vmatprep.mubr.f32.mxu1 %v2607_v3  ;;  %2480 = vmatprep.mubr.msk.f32.mxu0 %vm421_vm1, %v2923_v31 }
  0xa6   : > { %2368 = vmatmul.mubr.msk.f32.gmra.mxu1 %vm421_vm1, %v2882_v58  ;;  %2481 = vmatmul.mubr.msk.f32.gmra.mxu0 %vm421_vm1, %v2930_v34 }
  0xa7   : > { %1259 = vmatprep.mubr.f32.mxu1 %v2607_v3  ;;  %2483 = vmatprep.mubr.msk.f32.mxu0 %vm421_vm1, %v2933_v35 }
  0xaa   : > { %2369 = vmatmul.mubr.msk.f32.gmra.mxu1 %vm421_vm1, %v2897_v0  ;;  %2484 = vmatmul.mubr.msk.f32.gmra.mxu0 %vm421_vm1, %v2941_v39 }
  0xde   : > { %v3173_v21 = vpop.f32.mrf.mxu0  ;;  %v3175_v25 = vpop.f32.mrf.mxu1 }
  0xdf   : > { %1575 = vst [vmem:[%s3177_s18] sm:$0xff] %v3173_v21  ;;  %1587 = vst [vmem:[%s3177_s18 + $0x60] sm:$0xff] %v3175_v25  ;;  %v1711_v9 = vmul.f32 %v3173_v21, %v3173_v21 }
  0xe0   : > { %v547_v3 = vpop.f32.mrf.mxu0  ;;  %v3183_v28 = vpop.f32.mrf.mxu1 }
  0xe2   : > { %v3185_v29 = vpop.f32.mrf.mxu0  ;;  %v3187_v33 = vpop.f32.mrf.mxu1 }
  0xe3   : > { %1576 = vst [vmem:[%s3177_s18 + $0x8] sm:$0xff] %v3185_v29  ;;  %1588 = vst [vmem:[%s3177_s18 + $0x68] sm:$0xff] %v3187_v33  ;;  %v1712_v6 = vmul.f32 %v3185_v29, %v3185_v29 }
  0xe4   : > { %v3193_v37 = vpop.f32.mrf.mxu0  ;;  %v3195_v38 = vpop.f32.mrf.mxu1 }
  0xe6   : > { %v3197_v40 = vpop.f32.mrf.mxu0  ;;  %v3199_v44 = vpop.f32.mrf.mxu1 }
  0xe7   : > { %3969 = vst [vmem:[#allocation3_spill] sm:$0xff] %v3199_v44  ;;  %1577 = vst [vmem:[%s3177_s18 + $0x10] sm:$0xff] %v3197_v40 }
  0xe8   : > { %1589 = vst [vmem:[%s3177_s18 + $0x70] sm:$0xff] %v3199_v44  ;;  %v3205_v45 = vpop.f32.mrf.mxu0  ;;  %v3207_v46 = vpop.f32.mrf.mxu1 }
  0xe9   : > { %3970 = vst [vmem:[#allocation4_spill] sm:$0xff] %v3207_v46 }
  0xea   : > { %v3209_v47 = vpop.f32.mrf.mxu0  ;;  %v3211_v52 = vpop.f32.mrf.mxu1 }
  0xeb   : > { %3971 = vst [vmem:[#allocation5_spill] sm:$0xff] %v3211_v52  ;;  %1578 = vst [vmem:[%s3177_s18 + $0x18] sm:$0xff] %v3209_v47 }
  0xec   : > { %1590 = vst [vmem:[%s3177_s18 + $0x78] sm:$0xff] %v3211_v52  ;;  %v3217_v53 = vpop.f32.mrf.mxu0  ;;  %v3219_v56 = vpop.f32.mrf.mxu1 }
  0xed   : > { %3972 = vst [vmem:[#allocation6_spill] sm:$0xff] %v3219_v56 }
  0xee   : > { %v3221_v58 = vpop.f32.mrf.mxu0  ;;  %v3223_v59 = vpop.f32.mrf.mxu1 }
  0xef   : > { %1579 = vst [vmem:[%s3177_s18 + $0x20] sm:$0xff] %v3221_v58 }
  0xf0   : > { %v3227_v60 = vpop.f32.mrf.mxu0  ;;  %v3229_v0 = vpop.f32.mrf.mxu1 }
  0xf2   : > { %v3231_v2 = vpop.f32.mrf.mxu0  ;;  %v3233_v4 = vpop.f32.mrf.mxu1 }
  0xf3   : > { %1580 = vst [vmem:[%s3177_s18 + $0x28] sm:$0xff] %v3231_v2 }
  0xf4   : > { %v3237_v19 = vpop.f32.mrf.mxu0  ;;  %v3239_v27 = vpop.f32.mrf.mxu1 }
  0xf6   : > { %v3241_v31 = vpop.f32.mrf.mxu0  ;;  %v3243_v34 = vpop.f32.mrf.mxu1 }
  0xf7   : > { %1581 = vst [vmem:[%s3177_s18 + $0x30] sm:$0xff] %v3241_v31 }
  0xf8   : > { %v3247_v35 = vpop.f32.mrf.mxu0  ;;  %v3249_v39 = vpop.f32.mrf.mxu1 }
  0xfa   : > { %v3251_v30 = vpop.f32.mrf.mxu0  ;;  %v3253_v1 = vpop.f32.mrf.mxu1 }
  0xfb   : > { %1582 = vst [vmem:[%s3177_s18 + $0x38] sm:$0xff] %v3251_v30 }
  0xfc   : > { %v3257_v10 = vpop.f32.mrf.mxu0  ;;  %v3259_v7 = vpop.f32.mrf.mxu1 }
  0xfe   : > { %v3261_v22 = vpop.f32.mrf.mxu0  ;;  %v3263_v26 = vpop.f32.mrf.mxu1 }
  0xff   : > { %1583 = vst [vmem:[%s3177_s18 + $0x40] sm:$0xff] %v3261_v22 }
 0x100   : > { %v3267_v32 = vpop.f32.mrf.mxu0  ;;  %v3269_v36 = vpop.f32.mrf.mxu1 }
 0x102   : > { %v3271_v41 = vpop.f32.mrf.mxu0  ;;  %v3273_v49 = vpop.f32.mrf.mxu1 }
 0x103   : > { %1584 = vst [vmem:[%s3177_s18 + $0x48] sm:$0xff] %v3271_v41 }
 0x104   : > { %v3277_v50 = vpop.f32.mrf.mxu0  ;;  %v3279_v54 = vpop.f32.mrf.mxu1 }
 0x106   : > { %v3281_v42 = vpop.f32.mrf.mxu0  ;;  %v3283_v43 = vpop.f32.mrf.mxu1 }
 0x107   : > { %3973 = vst [vmem:[#allocation7_spill] sm:$0xff] %v3283_v43  ;;  %1585 = vst [vmem:[%s3177_s18 + $0x50] sm:$0xff] %v3281_v42 }
 0x108   : > { %v3287_v8 = vpop.f32.mrf.mxu0  ;;  %v3289_v12 = vpop.f32.mrf.mxu1 }
 0x10a   : > { %v3291_v55 = vpop.f32.mrf.mxu0  ;;  %v3293_v57 = vpop.f32.mrf.mxu1 }
 0x10b   : > { %3974 = vst [vmem:[#allocation8_spill] sm:$0xff] %v3293_v57  ;;  %1586 = vst [vmem:[%s3177_s18 + $0x58] sm:$0xff] %v3291_v55 }
 0x10c   : > { %v3297_v61 = vpop.f32.mrf.mxu0  ;;  %v3299_v48 = vpop.f32.mrf.mxu1 }
 0x10e   : > { %v3301_v51 = vpop.f32.mrf.mxu1  ;;  %v955_v62 = vpop.f32.mrf.mxu0 }
 0x10f   : > { %3975 = vst [vmem:[#allocation9_spill] sm:$0xff] %v3301_v51  ;;  %v1495_v14 = vadd.f32 %v955_v62, %v547_v3  ;;  %v1714_v51 = vmul.f32 %v3209_v47, %v3209_v47 }
 0x110   : > { %v3303_v11 = vpop.f32.mrf.mxu1  ;;  %v3305_v17 = vpop.f32.mrf.mxu0 }
 0x111   : > { %2387 = vst [vmem:[%s3177_s18 + $0x80] sm:$0xff] %v1495_v14  ;;  %v3311_v13 = vadd.f32 %v1495_v14, %v3173_v21  ;;  %v1727_v16 = vmul.f32 %v1495_v14, %v1495_v14 }
 0x112   : > { %v3313_v63 = vpop.f32.mrf.mxu1  ;;  %v961_v20 = vpop.f32.mrf.mxu0 }
 0x113   : > { %3976 = vst [vmem:[#allocation10_spill] sm:$0xff] %v3313_v63  ;;  %v3315_v5 = vadd.f32 %v1727_v16, %v1711_v9  ;;  %v1496_v15 = vadd.f32 %v961_v20, %v3193_v37  ;;  %v1713_v20 = vmul.f32 %v3197_v40, %v3197_v40 }
 0x114   : > { %v3318_v23 = vpop.f32.mrf.mxu1  ;;  %v3320_v18 = vpop.f32.mrf.mxu0 }
 0x115   : > { %3977 = vst [vmem:[#allocation11_spill] sm:$0xff] %v3318_v23  ;;  %2388 = vst [vmem:[%s3177_s18 + $0x88] sm:$0xff] %v1496_v15  ;;  %v3326_v24 = vadd.f32 %v1496_v15, %v3185_v29  ;;  %v1728_v21 = vmul.f32 %v1496_v15, %v1496_v15 }
 0x116   : > { %v3328_v3 = vpop.f32.mrf.mxu1  ;;  %v967_v62 = vpop.f32.mrf.mxu0 }
 0x117   : > { %3978 = vst [vmem:[#allocation12_spill] sm:$0xff] %v3328_v3  ;;  %v3330_v14 = vadd.f32 %v1728_v21, %v1712_v6  ;;  %v1497_v37 = vadd.f32 %v967_v62, %v3205_v45 }
 0x118   : > { %v3333_v9 = vpop.f32.mrf.mxu1  ;;  %v3335_v16 = vpop.f32.mrf.mxu0 }
 0x119   : > { %3979 = vst [vmem:[#allocation13_spill] sm:$0xff] %v3333_v9  ;;  %2389 = vst [vmem:[%s3177_s18 + $0x90] sm:$0xff] %v1497_v37  ;;  %v3341_v29 = vadd.f32 %v1497_v37, %v3197_v40  ;;  %v1729_v15 = vmul.f32 %v1497_v37, %v1497_v37 }
 0x11a   : > { %v3343_v63 = vpop.f32.mrf.mxu1  ;;  %v973_v3 = vpop.f32.mrf.mxu0 }
 0x11b   : > { %3980 = vst [vmem:[#allocation14_spill] sm:$0xff] %v3343_v63  ;;  %v3345_v6 = vadd.f32 %v1729_v15, %v1713_v20  ;;  %v1498_v45 = vadd.f32 %v973_v3, %v3217_v53 }
 0x11c   : > { %v3348_v21 = vpop.f32.mrf.mxu1  ;;  %v3350_v62 = vpop.f32.mrf.mxu0 }
 0x11d   : > { %3981 = vst [vmem:[#allocation15_spill] sm:$0xff] %v3348_v21  ;;  %2390 = vst [vmem:[%s3177_s18 + $0x98] sm:$0xff] %v1498_v45  ;;  %v3356_v40 = vadd.f32 %v1498_v45, %v3209_v47  ;;  %v1730_v37 = vmul.f32 %v1498_v45, %v1498_v45  ;;  %v1715_v21 = vmul.f32 %v3221_v58, %v3221_v58 }
 0x11e   : > { %v3358_v57 = vpop.f32.mrf.mxu1  ;;  %v979_v63 = vpop.f32.mrf.mxu0 }
 0x11f   : > { %3982 = vst [vmem:[#allocation16_spill] sm:$0xff] %v3358_v57  ;;  %v3360_v20 = vadd.f32 %v1730_v37, %v1714_v51  ;;  %v1499_v53 = vadd.f32 %v979_v63, %v3227_v60 }
 0x120   : > { %v3363_v3 = vpop.f32.mrf.mxu1  ;;  %v3365_v15 = vpop.f32.mrf.mxu0 }
 0x121   : > { %3983 = vst [vmem:[#allocation17_spill] sm:$0xff] %v3363_v3  ;;  %2391 = vst [vmem:[%s3177_s18 + $0xa0] sm:$0xff] %v1499_v53  ;;  %v3371_v47 = vadd.f32 %v1499_v53, %v3221_v58  ;;  %v1731_v45 = vmul.f32 %v1499_v53, %v1499_v53  ;;  %v1716_v3 = vmul.f32 %v3231_v2, %v3231_v2 }
 0x122   : > { %v3373_v56 = vpop.f32.mrf.mxu1  ;;  %v985_v57 = vpop.f32.mrf.mxu0 }
 0x123   : > { %3984 = vst [vmem:[#allocation18_spill] sm:$0xff] %v3373_v56  ;;  %v3375_v51 = vadd.f32 %v1731_v45, %v1715_v21  ;;  %v1500_v60 = vadd.f32 %v985_v57, %v3237_v19 }
 0x124   : > { %v3378_v63 = vpop.f32.mrf.mxu1  ;;  %v3380_v37 = vpop.f32.mrf.mxu0 }
 0x125   : > { %3985 = vst [vmem:[#allocation19_spill] sm:$0xff] %v3378_v63  ;;  %2392 = vst [vmem:[%s3177_s18 + $0xa8] sm:$0xff] %v1500_v60  ;;  %v3386_v58 = vadd.f32 %v1500_v60, %v3231_v2  ;;  %v1732_v53 = vmul.f32 %v1500_v60, %v1500_v60 }
 0x126   : > { %v3388_v56 = vpop.f32.mrf.mxu1  ;;  %v991_v9 = vpop.f32.mrf.mxu0 }
 0x127   : > { %3986 = vst [vmem:[#allocation20_spill] sm:$0xff] %v3388_v56  ;;  %v3390_v21 = vadd.f32 %v1732_v53, %v1716_v3  ;;  %v3393_v19 = vadd.f32 %v991_v9, %v3247_v35 }
 0x128   : > { %v3395_v57 = vpop.f32.mrf.mxu1  ;;  %v3397_v45 = vpop.f32.mrf.mxu0 }
 0x129   : > { %3987 = vst [vmem:[#allocation21_spill] sm:$0xff] %v3395_v57  ;;  %2393 = vst [vmem:[%s3177_s18 + $0xb0] sm:$0xff] %v3393_v19 }
 0x12a   : > { %v3401_v63 = vpop.f32.mrf.mxu1  ;;  %v997_v2 = vpop.f32.mrf.mxu0 }
 0x12b   : > { %3988 = vst [vmem:[#allocation22_spill] sm:$0xff] %v3401_v63  ;;  %v3404_v60 = vadd.f32 %v997_v2, %v3257_v10 }
 0x12c   : > { %v3406_v56 = vpop.f32.mrf.mxu1  ;;  %v3408_v3 = vpop.f32.mrf.mxu0 }
 0x12d   : > { %3989 = vst [vmem:[#allocation23_spill] sm:$0xff] %v3406_v56  ;;  %2394 = vst [vmem:[%s3177_s18 + $0xb8] sm:$0xff] %v3404_v60 }
 0x12e   : > { %v1003_v35 = vpop.f32.mrf.mxu0  ;;  %v1171_v9 = vpop.f32.mrf.mxu1 }
 0x12f   : > { %v3413_v53 = vadd.f32 %v1003_v35, %v3267_v32  ;;  %v1511_v57 = vadd.f32 %v1171_v9, %v3223_v59 }
 0x130   : > { %v3416_v63 = vpop.f32.mrf.mxu0  ;;  %v3418_v23 = vpop.f32.mrf.mxu1 }
 0x131   : > { %2395 = vst [vmem:[%s3177_s18 + $0xc0] sm:$0xff] %v3413_v53  ;;  %2403 = vst [vmem:[%s3177_s18 + $0x100] sm:$0xff] %v1511_v57  ;;  %v3424_v10 = vadd.f32 %v3311_v13, %v1511_v57  ;;  %v1759_v2 = vmul.f32 %v1511_v57, %v1511_v57 }
 0x132   : > { %v1009_v56 = vpop.f32.mrf.mxu0  ;;  %v1177_v43 = vpop.f32.mrf.mxu1 }
 0x133   : > { %3990 = vst [vmem:[#allocation24_spill] sm:$0xff] %v3424_v10  ;;  %v3427_v46 = vadd.f32 %v1759_v2, %v3315_v5  ;;  %v3430_v32 = vadd.f32 %v1009_v56, %v3277_v50  ;;  %v1512_v59 = vadd.f32 %v1177_v43, %v3233_v4 }
 0x134   : > { %v3433_v35 = vpop.f32.mrf.mxu0  ;;  %v3435_v9 = vpop.f32.mrf.mxu1 }
 0x135   : > { %3991 = vst [vmem:[#allocation25_spill] sm:$0xff] %v3427_v46  ;;  %2396 = vst [vmem:[%s3177_s18 + $0xc8] sm:$0xff] %v3430_v32  ;;  %v3441_v13 = vadd.f32 %v3326_v24, %v1512_v59  ;;  %v1760_v57 = vmul.f32 %v1512_v59, %v1512_v59 }
 0x136   : > { %2404 = vst [vmem:[%s3177_s18 + $0x108] sm:$0xff] %v1512_v59  ;;  %v1015_v5 = vpop.f32.mrf.mxu0  ;;  %v1183_v2 = vpop.f32.mrf.mxu1 }
 0x137   : > { %3992 = vst [vmem:[#allocation26_spill] sm:$0xff] %v3441_v13  ;;  %v3444_v46 = vadd.f32 %v1760_v57, %v3330_v14  ;;  %v3447_v56 = vadd.f32 %v1015_v5, %v3287_v8  ;;  %v1513_v4 = vadd.f32 %v1183_v2, %v3243_v34 }
 0x138   : > { %v3450_v50 = vpop.f32.mrf.mxu0  ;;  %v3452_v43 = vpop.f32.mrf.mxu1 }
 0x139   : > { %3993 = vst [vmem:[#allocation27_spill] sm:$0xff] %v3444_v46  ;;  %2397 = vst [vmem:[%s3177_s18 + $0xd0] sm:$0xff] %v3447_v56  ;;  %v3458_v24 = vadd.f32 %v3341_v29, %v1513_v4  ;;  %v1761_v59 = vmul.f32 %v1513_v4, %v1513_v4  ;;  %v3473_v46 = vmul.f32 %v3175_v25, %v3175_v25 }
 0x13a   : > { %2405 = vst [vmem:[%s3177_s18 + $0x110] sm:$0xff] %v1513_v4  ;;  %v1021_v14 = vpop.f32.mrf.mxu0  ;;  %v1189_v57 = vpop.f32.mrf.mxu1  ;;  %v3491_v4 = vmul.f32 %v3211_v52, %v3211_v52  ;;  %v1720_v52 = vmul.f32 %v3271_v41, %v3271_v41 }
 0x13b   : > { %3994 = vst [vmem:[#allocation28_spill] sm:$0xff] %v3458_v24  ;;  %v3461_v8 = vadd.f32 %v1761_v59, %v3345_v6  ;;  %v3464_v5 = vadd.f32 %v1021_v14, %v3297_v61  ;;  %v1514_v34 = vadd.f32 %v1189_v57, %v3253_v1  ;;  %v3483_v61 = vmul.f32 %v3187_v33, %v3187_v33 }
 0x13c   : > { %v3467_v2 = vpop.f32.mrf.mxu0  ;;  %v3469_v10 = vpop.f32.mrf.mxu1  ;;  %v3487_v1 = vmul.f32 %v3199_v44, %v3199_v44  ;;  %3999 = vst [vmem:[#allocation33_spill] sm:$0xff] %v3491_v4  ;;  %v1717_v59 = vmul.f32 %v3241_v31, %v3241_v31  ;;  %v1718_v57 = vmul.f32 %v3251_v30, %v3251_v30  ;;  %v1719_v4 = vmul.f32 %v3261_v22, %v3261_v22 }
 0x13d   : > { %3995 = vst [vmem:[#allocation29_spill] sm:$0xff] %v3461_v8  ;;  %2398 = vst [vmem:[%s3177_s18 + $0xd8] sm:$0xff] %v3464_v5  ;;  %v3479_v29 = vadd.f32 %v3356_v40, %v1514_v34  ;;  %v1762_v6 = vmul.f32 %v1514_v34, %v1514_v34  ;;  %v1529_v44 = vadd.f32 %v3335_v16, %v3249_v39 }
 0x13e   : > { %2406 = vst [vmem:[%s3177_s18 + $0x118] sm:$0xff] %v1514_v34  ;;  %3997 = vst [vmem:[#allocation31_spill] sm:$0xff] %v3483_v61  ;;  %v1027_v40 = vpop.f32.mrf.mxu0  ;;  %v1195_v14 = vpop.f32.mrf.mxu1  ;;  %v1530_v61 = vadd.f32 %v3350_v62, %v3259_v7  ;;  %v3549_v7 = vadd.f32 %v3380_v37, %v3279_v54  ;;  %v3555_v16 = vadd.f32 %v3397_v45, %v3289_v12 }
 0x13f   : > { %3996 = vst [vmem:[#allocation30_spill] sm:$0xff] %v3479_v29  ;;  %3998 = vst [vmem:[#allocation32_spill] sm:$0xff] %v3487_v1  ;;  %v3498_v34 = vadd.f32 %v1762_v6, %v3360_v20  ;;  %v3501_v8 = vadd.f32 %v1027_v40, %v3183_v28  ;;  %v1515_v24 = vadd.f32 %v1195_v14, %v3263_v26 }
 0x140   : > { %v3510_v29 = vmul.f32 %v3281_v42, %v3281_v42  ;;  %v3514_v1 = vmul.f32 %v3291_v55, %v3291_v55  ;;  %v3516_v20 = vpop.f32.mrf.mxu0  ;;  %v3518_v28 = vpop.f32.mrf.mxu1  ;;  %v1527_v26 = vadd.f32 %v3305_v17, %v3229_v0  ;;  %v1733_v6 = vmul.f32 %v3393_v19, %v3393_v19 }
 0x141   : > { %4000 = vst [vmem:[#allocation34_spill] sm:$0xff] %v3498_v34  ;;  %2399 = vst [vmem:[%s3177_s18 + $0xe0] sm:$0xff] %v3501_v8  ;;  %v3528_v40 = vadd.f32 %v3371_v47, %v1515_v24  ;;  %v1763_v14 = vmul.f32 %v1515_v24, %v1515_v24  ;;  %v1528_v34 = vadd.f32 %v3320_v18, %v3239_v27 }
 0x142   : > { %2407 = vst [vmem:[%s3177_s18 + $0x120] sm:$0xff] %v1515_v24  ;;  %v1734_v0 = vmul.f32 %v3404_v60, %v3404_v60  ;;  %v1033_v17 = vpop.f32.mrf.mxu0  ;;  %v1201_v13 = vpop.f32.mrf.mxu1  ;;  %v1531_v47 = vadd.f32 %v3365_v15, %v3269_v36  ;;  %v1648_v18 = vadd.f32 %v3393_v19, %v3241_v31  ;;  %v1735_v36 = vmul.f32 %v3413_v53, %v3413_v53 }
 0x143   : > { %v3541_v24 = vadd.f32 %v1763_v14, %v3375_v51  ;;  %v3544_v27 = vadd.f32 %v1033_v17, %v3195_v38  ;;  %v1516_v39 = vadd.f32 %v1201_v13, %v3273_v49  ;;  %v1749_v15 = vadd.f32 %v1733_v6, %v1717_v59  ;;  %v4001_v13 = vld [vmem:[#allocation4_spill] sm:$0xff]  ;;  %v4004_v17 = vld [vmem:[#allocation13_spill] sm:$0xff] }
 0x144   : > { %v3559_v62 = vpop.f32.mrf.mxu0  ;;  %v3561_v38 = vpop.f32.mrf.mxu1  ;;  %v1649_v49 = vadd.f32 %v3404_v60, %v3251_v30  ;;  %v1750_v12 = vadd.f32 %v1734_v0, %v1718_v57  ;;  %v3573_v51 = vadd.f32 %v3408_v3, %v3299_v48  ;;  %v1650_v37 = vadd.f32 %v3413_v53, %v3261_v22  ;;  %v4002_v3 = vld [vmem:[#allocation7_spill] sm:$0xff] }
 0x145   : > { %2400 = vst [vmem:[%s3177_s18 + $0xe8] sm:$0xff] %v3544_v27  ;;  %2408 = vst [vmem:[%s3177_s18 + $0x128] sm:$0xff] %v1516_v39  ;;  %v3569_v31 = vadd.f32 %v3386_v58, %v1516_v39  ;;  %v1764_v54 = vmul.f32 %v1516_v39, %v1516_v39  ;;  %v1736_v19 = vmul.f32 %v3430_v32, %v3430_v32 }
 0x146   : > { %v1039_v30 = vpop.f32.mrf.mxu0  ;;  %v1207_v45 = vpop.f32.mrf.mxu1  ;;  %v3581_v58 = vadd.f32 %v3416_v63, %v3303_v11  ;;  %v1751_v57 = vadd.f32 %v1735_v36, %v1719_v4  ;;  %v1543_v22 = vadd.f32 %v1527_v26, %v3418_v23  ;;  %v3591_v53 = vadd.f32 %v3430_v32, %v3271_v41  ;;  %v4003_v63 = vld [vmem:[#allocation11_spill] sm:$0xff] }
 0x147   : > { %v3584_v60 = vadd.f32 %v1764_v54, %v3390_v21  ;;  %v1509_v48 = vadd.f32 %v1039_v30, %v4001_v13  ;;  %v1517_v59 = vadd.f32 %v1207_v45, %v4002_v3  ;;  %v1737_v6 = vmul.f32 %v3447_v56, %v3447_v56  ;;  %v4007_v30 = vld [vmem:[#allocation15_spill] sm:$0xff] }
 0x148   : > { %v1041_v14 = vpop.f32.mrf.mxu0  ;;  %v1209_v11 = vpop.f32.mrf.mxu1  ;;  %v3597_v21 = vadd.f32 %v3433_v35, %v4003_v63  ;;  %v1738_v0 = vmul.f32 %v3464_v5, %v3464_v5  ;;  %v3605_v26 = vadd.f32 %v1736_v19, %v1720_v52  ;;  %v1544_v41 = vadd.f32 %v1528_v34, %v3435_v9  ;;  %v4005_v52 = vld [vmem:[#allocation6_spill] sm:$0xff]  ;;  %v4006_v9 = vld [vmem:[#allocation8_spill] sm:$0xff] }
 0x149   : > { %2401 = vst [vmem:[%s3177_s18 + $0xf0] sm:$0xff] %v1509_v48  ;;  %2409 = vst [vmem:[%s3177_s18 + $0x130] sm:$0xff] %v1517_v59  ;;  %v3603_v4 = vadd.f32 %v1648_v18, %v1517_v59  ;;  %v1765_v23 = vmul.f32 %v1517_v59, %v1517_v59  ;;  %v3610_v32 = vadd.f32 %v3447_v56, %v3281_v42 }
 0x14a   : > { %v3614_v35 = vadd.f32 %v3450_v50, %v4004_v17  ;;  %v1045_v39 = vpop.f32.mrf.mxu0  ;;  %v1213_v36 = vpop.f32.mrf.mxu1  ;;  %v1739_v18 = vmul.f32 %v3501_v8, %v3501_v8  ;;  %v3623_v42 = vadd.f32 %v1737_v6, %v3510_v29  ;;  %v1545_v56 = vadd.f32 %v1529_v44, %v3452_v43 }
 0x14b   : > { %v3618_v54 = vadd.f32 %v1765_v23, %v1749_v15  ;;  %v1510_v19 = vadd.f32 %v1045_v39, %v4005_v52  ;;  %v1518_v34 = vadd.f32 %v1213_v36, %v4006_v9  ;;  %v3628_v50 = vadd.f32 %v3464_v5, %v3291_v55  ;;  %v4008_v5 = vld [vmem:[#allocation17_spill] sm:$0xff]  ;;  %v4012_v36 = vld [vmem:[#allocation31_spill] sm:$0xff] }
 0x14c   : > { %v3632_v45 = vadd.f32 %v3467_v2, %v4007_v30  ;;  %v3634_v13 = vpop.f32.mrf.mxu0  ;;  %v3636_v15 = vpop.f32.mrf.mxu1  ;;  %v3639_v3 = vadd.f32 %v1738_v0, %v3514_v1  ;;  %v1546_v29 = vadd.f32 %v1530_v61, %v3469_v10  ;;  %v3648_v55 = vadd.f32 %v3501_v8, %v3175_v25  ;;  %v4009_v25 = vld [vmem:[#allocation9_spill] sm:$0xff] }
 0x14d   : > { %2402 = vst [vmem:[%s3177_s18 + $0xf8] sm:$0xff] %v1510_v19  ;;  %2410 = vst [vmem:[%s3177_s18 + $0x138] sm:$0xff] %v1518_v34  ;;  %v3644_v44 = vadd.f32 %v1649_v49, %v1518_v34  ;;  %v1766_v43 = vmul.f32 %v1518_v34, %v1518_v34  ;;  %v3652_v2 = vadd.f32 %v3516_v20, %v4008_v5 }
 0x14e   : > { %v3655_v59 = vadd.f32 %v1531_v47, %v3518_v28  ;;  %v1740_v10 = vmul.f32 %v3544_v27, %v3544_v27  ;;  %v1219_v61 = vpop.f32.mrf.mxu1  ;;  %v2464_v1 = vpop.f32.mrf.mxu0  ;;  %v3660_v49 = vadd.f32 %v1739_v18, %v3473_v46  ;;  %v3667_v20 = vadd.f32 %v3544_v27, %v3187_v33  ;;  %v4010_v28 = vld [vmem:[#allocation19_spill] sm:$0xff] }
 0x14f   : > { %v3662_v6 = vadd.f32 %v1766_v43, %v1750_v12  ;;  %v1519_v8 = vadd.f32 %v1219_v61, %v4009_v25  ;;  %v1560_v63 = vadd.f32 %v2464_v1, %v1544_v41  ;;  %v3671_v47 = vadd.f32 %v3559_v62, %v4010_v28  ;;  %v4011_v41 = vld [vmem:[#allocation26_spill] sm:$0xff]  ;;  %v4013_v62 = vld [vmem:[#allocation3_spill] sm:$0xff] }
 0x150   : > { %v1548_v0 = vadd.f32 %v3549_v7, %v3561_v38  ;;  %v1741_v23 = vmul.f32 %v1509_v48, %v1509_v48  ;;  %v3675_v17 = vpop.f32.mrf.mxu1  ;;  %v1416_v46 = vpop.f32.mrf.mxu0  ;;  %v3683_v18 = vadd.f32 %v1740_v10, %v4012_v36  ;;  %v3686_v52 = vadd.f32 %v1509_v48, %v4013_v62  ;;  %v4014_v7 = vld [vmem:[#allocation21_spill] sm:$0xff]  ;;  %v4015_v43 = vld [vmem:[#allocation27_spill] sm:$0xff]  ;;  %v4016_v61 = vld [vmem:[#allocation10_spill] sm:$0xff] }
 0x151   : > { %2411 = vst [vmem:[%s3177_s18 + $0x140] sm:$0xff] %v1519_v8  ;;  %v3678_v12 = vadd.f32 %v1650_v37, %v1519_v8  ;;  %v1767_v39 = vmul.f32 %v1519_v8, %v1519_v8  ;;  %2420 = vst [vmem:[%s3177_s18 + $0x188] sm:$0xff] %v1560_v63  ;;  %v1675_v33 = vadd.f32 %v4011_v41, %v1560_v63  ;;  %v4017_v10 = vld [vmem:[#allocation32_spill] sm:$0xff] }
 0x152   : > { %v1792_v27 = vmul.f32 %v1560_v63, %v1560_v63  ;;  %v3689_v38 = vadd.f32 %v1041_v14, %v4014_v7  ;;  %v1559_v9 = vadd.f32 %v1543_v22, %v1416_v46  ;;  %v1225_v34 = vpop.f32.mrf.mxu1  ;;  %v2467_v37 = vpop.f32.mrf.mxu0  ;;  %v3696_v8 = vadd.f32 %v1741_v23, %v4017_v10  ;;  %v4018_v14 = vld [vmem:[#allocation24_spill] sm:$0xff]  ;;  %v4024_v10 = vld [vmem:[#allocation23_spill] sm:$0xff] }
 0x153   : > { %v3691_v30 = vadd.f32 %v1767_v39, %v1751_v57  ;;  %v1520_v1 = vadd.f32 %v1225_v34, %v4016_v61  ;;  %v1562_v25 = vadd.f32 %v2467_v37, %v1546_v29  ;;  %v3699_v48 = vadd.f32 %v3555_v16, %v1209_v11  ;;  %v4019_v29 = vld [vmem:[#allocation30_spill] sm:$0xff]  ;;  %v4021_v11 = vld [vmem:[#allocation25_spill] sm:$0xff] }
 0x154   : > { %v1808_v5 = vadd.f32 %v1792_v27, %v4015_v43  ;;  %2419 = vst [vmem:[%s3177_s18 + $0x180] sm:$0xff] %v1559_v9  ;;  %v1674_v63 = vadd.f32 %v4018_v14, %v1559_v9  ;;  %v1791_v22 = vmul.f32 %v1559_v9, %v1559_v9  ;;  %v1227_v28 = vpop.f32.mrf.mxu1  ;;  %v1426_v46 = vpop.f32.mrf.mxu0  ;;  %v4020_v27 = vld [vmem:[#allocation5_spill] sm:$0xff]  ;;  %v3712_v16 = vmul.f32 %v1510_v19, %v1510_v19  ;;  %v4022_v43 = vld [vmem:[#allocation34_spill] sm:$0xff] }
 0x155   : > { %2412 = vst [vmem:[%s3177_s18 + $0x148] sm:$0xff] %v1520_v1  ;;  %v3705_v57 = vadd.f32 %v3591_v53, %v1520_v1  ;;  %v1768_v39 = vmul.f32 %v1520_v1, %v1520_v1  ;;  %2422 = vst [vmem:[%s3177_s18 + $0x198] sm:$0xff] %v1562_v25  ;;  %v1677_v41 = vadd.f32 %v4019_v29, %v1562_v25  ;;  %v4023_v1 = vld [vmem:[#allocation12_spill] sm:$0xff] }
 0x156   : > { %v1794_v23 = vmul.f32 %v1562_v25, %v1562_v25  ;;  %v3710_v36 = vadd.f32 %v1510_v19, %v4020_v27  ;;  %v1807_v62 = vadd.f32 %v1791_v22, %v4021_v11  ;;  %v1561_v7 = vadd.f32 %v1545_v56, %v1426_v46  ;;  %v1231_v9 = vpop.f32.mrf.mxu1  ;;  %v2470_v34 = vpop.f32.mrf.mxu0  ;;  %v4025_v19 = vld [vmem:[#allocation28_spill] sm:$0xff]  ;;  %v4026_v11 = vld [vmem:[#allocation29_spill] sm:$0xff] }
 0x157   : > { %v3716_v53 = vadd.f32 %v1768_v39, %v3605_v26  ;;  %v1697_v37 = vadd.f32 %v1677_v41, %v1675_v33  ;;  %v1521_v25 = vadd.f32 %v1231_v9, %v4023_v1  ;;  %v3722_v14 = vadd.f32 %v3634_v13, %v4024_v10 }
 0x158   : > { %v1810_v61 = vadd.f32 %v1794_v23, %v4022_v43  ;;  %2421 = vst [vmem:[%s3177_s18 + $0x190] sm:$0xff] %v1561_v7  ;;  %v1676_v22 = vadd.f32 %v4025_v19, %v1561_v7  ;;  %v1793_v56 = vmul.f32 %v1561_v7, %v1561_v7  ;;  %v1564_v46 = vadd.f32 %v2470_v34, %v1548_v0  ;;  %v1233_v29 = vpop.f32.mrf.mxu1  ;;  %v1436_v27 = vpop.f32.mrf.mxu0 }
 0x159   : > { %v1550_v26 = vadd.f32 %v3573_v51, %v3636_v15  ;;  %2413 = vst [vmem:[%s3177_s18 + $0x150] sm:$0xff] %v1521_v25  ;;  %v3730_v39 = vadd.f32 %v3610_v32, %v1521_v25  ;;  %v1769_v41 = vmul.f32 %v1521_v25, %v1521_v25  ;;  %v1563_v51 = vadd.f32 %v3655_v59, %v1436_v27  ;;  %v4027_v32 = vld [vmem:[#allocation14_spill] sm:$0xff] }
 0x15a   : > { %v1830_v33 = vadd.f32 %v1810_v61, %v1808_v5  ;;  %v1690_v23 = vadd.f32 %v1676_v22, %v1674_v63  ;;  %v1809_v13 = vadd.f32 %v1793_v56, %v4026_v11  ;;  %2424 = vst [vmem:[%s3177_s18 + $0x1a8] sm:$0xff] %v1564_v46  ;;  %v1679_v9 = vadd.f32 %v3569_v31, %v1564_v46  ;;  %v1237_v0 = vpop.f32.mrf.mxu1  ;;  %v2473_v34 = vpop.f32.mrf.mxu0 }
 0x15b   : > { %v1796_v7 = vmul.f32 %v1564_v46, %v1564_v46  ;;  %v3736_v43 = vadd.f32 %v1769_v41, %v3623_v42  ;;  %v1522_v15 = vadd.f32 %v1237_v0, %v4027_v32  ;;  %v1566_v5 = vadd.f32 %v2473_v34, %v1550_v26  ;;  %2423 = vst [vmem:[%s3177_s18 + $0x1a0] sm:$0xff] %v1563_v51 }
 0x15c   : > { %v1551_v63 = vadd.f32 %v3581_v58, %v3675_v17  ;;  %v1823_v61 = vadd.f32 %v1809_v13, %v1807_v62  ;;  %v1698_v1 = vadd.f32 %v1697_v37, %v1679_v9  ;;  %v1239_v25 = vpop.f32.mrf.mxu1  ;;  %v1446_v10 = vpop.f32.mrf.mxu0  ;;  %v1678_v19 = vadd.f32 %v3528_v40, %v1563_v51 }
 0x15d   : > { %v1812_v31 = vadd.f32 %v1796_v7, %v3584_v60  ;;  %v1795_v42 = vmul.f32 %v1563_v51, %v1563_v51  ;;  %2414 = vst [vmem:[%s3177_s18 + $0x158] sm:$0xff] %v1522_v15  ;;  %v1669_v22 = vadd.f32 %v3628_v50, %v1522_v15  ;;  %v1770_v59 = vmul.f32 %v1522_v15, %v1522_v15 }
 0x15e   : > { %2426 = vst [vmem:[%s3177_s18 + $0x1b8] sm:$0xff] %v1566_v5  ;;  %v1552_v56 = vadd.f32 %v3597_v21, %v1227_v28  ;;  %v1681_v58 = vadd.f32 %v3644_v44, %v1566_v5  ;;  %v1798_v17 = vmul.f32 %v1566_v5, %v1566_v5  ;;  %v1243_v62 = vpop.f32.mrf.mxu1  ;;  %v2476_v60 = vpop.f32.mrf.mxu0  ;;  %v1691_v37 = vadd.f32 %v1690_v23, %v1678_v19  ;;  %v4028_v21 = vld [vmem:[#allocation16_spill] sm:$0xff]  ;;  %v4029_v5 = vld [vmem:[#allocation18_spill] sm:$0xff] }
 0x15f   : > { %v1831_v46 = vadd.f32 %v1830_v33, %v1812_v31  ;;  %v1811_v27 = vadd.f32 %v1795_v42, %v3541_v24  ;;  %v1786_v40 = vadd.f32 %v1770_v59, %v3639_v3  ;;  %v1565_v50 = vadd.f32 %v3699_v48, %v1446_v10 }
 0x160   : > { %v1699_v26 = vadd.f32 %v1698_v1, %v1681_v58  ;;  %v1814_v41 = vadd.f32 %v1798_v17, %v3662_v6  ;;  %v1523_v28 = vadd.f32 %v1243_v62, %v4028_v21  ;;  %v1568_v33 = vadd.f32 %v2476_v60, %v1552_v56  ;;  %v1245_v44 = vpop.f32.mrf.mxu1  ;;  %v1456_v11 = vpop.f32.mrf.mxu0 }
 0x161   : > { %v1553_v13 = vadd.f32 %v3614_v35, %v1233_v29  ;;  %v1824_v9 = vadd.f32 %v1823_v61, %v1811_v27  ;;  %2425 = vst [vmem:[%s3177_s18 + $0x1b0] sm:$0xff] %v1565_v50  ;;  %v1680_v24 = vadd.f32 %v3603_v4, %v1565_v50  ;;  %v1797_v23 = vmul.f32 %v1565_v50, %v1565_v50 }
 0x162   : > { %v1832_v7 = vadd.f32 %v1831_v46, %v1814_v41  ;;  %v1554_v3 = vadd.f32 %v3632_v45, %v1239_v25  ;;  %2415 = vst [vmem:[%s3177_s18 + $0x160] sm:$0xff] %v1523_v28  ;;  %2428 = vst [vmem:[%s3177_s18 + $0x1c8] sm:$0xff] %v1568_v33  ;;  %v1683_v48 = vadd.f32 %v3705_v57, %v1568_v33  ;;  %v1249_v0 = vpop.f32.mrf.mxu1  ;;  %v2479_v34 = vpop.f32.mrf.mxu0 }
 0x163   : > { %v1555_v6 = vadd.f32 %v3652_v2, %v1245_v44  ;;  %v1692_v51 = vadd.f32 %v1691_v37, %v1680_v24  ;;  %v1813_v35 = vadd.f32 %v1797_v23, %v3618_v54  ;;  %v1800_v29 = vmul.f32 %v1568_v33, %v1568_v33 }
 0x164   : > { %v1567_v4 = vadd.f32 %v1551_v63, %v1456_v11  ;;  %v1771_v32 = vmul.f32 %v1523_v28, %v1523_v28  ;;  %v1700_v15 = vadd.f32 %v1699_v26, %v1683_v48  ;;  %v1524_v45 = vadd.f32 %v1249_v0, %v4029_v5  ;;  %v1251_v1 = vpop.f32.mrf.mxu1  ;;  %v1466_v31 = vpop.f32.mrf.mxu0  ;;  %v4030_v26 = vld [vmem:[#allocation20_spill] sm:$0xff]  ;;  %v4032_v5 = vld [vmem:[#allocation33_spill] sm:$0xff] }
 0x165   : > { %v1570_v61 = vadd.f32 %v2479_v34, %v1554_v3  ;;  %v1825_v57 = vadd.f32 %v1824_v9, %v1813_v35  ;;  %v1816_v25 = vadd.f32 %v1800_v29, %v3716_v53  ;;  %v1670_v19 = vadd.f32 %v3648_v55, %v1523_v28  ;;  %v4031_v34 = vld [vmem:[#allocation22_spill] sm:$0xff] }
 0x166   : > { %2427 = vst [vmem:[%s3177_s18 + $0x1c0] sm:$0xff] %v1567_v4  ;;  %v1682_v2 = vadd.f32 %v3678_v12, %v1567_v4  ;;  %v1799_v10 = vmul.f32 %v1567_v4, %v1567_v4  ;;  %2416 = vst [vmem:[%s3177_s18 + $0x168] sm:$0xff] %v1524_v45  ;;  %v1772_v54 = vmul.f32 %v1524_v45, %v1524_v45  ;;  %v1255_v59 = vpop.f32.mrf.mxu1  ;;  %v2482_v56 = vpop.f32.mrf.mxu0 }
 0x167   : > { %2430 = vst [vmem:[%s3177_s18 + $0x1d8] sm:$0xff] %v1570_v61  ;;  %v1685_v63 = vadd.f32 %v1669_v22, %v1570_v61  ;;  %v1802_v42 = vmul.f32 %v1570_v61, %v1570_v61  ;;  %v1833_v46 = vadd.f32 %v1832_v7, %v1816_v25  ;;  %v1556_v53 = vadd.f32 %v3671_v47, %v1251_v1 }
 0x168   : > { %v1693_v58 = vadd.f32 %v1692_v51, %v1682_v2  ;;  %v1815_v17 = vadd.f32 %v1799_v10, %v3691_v30  ;;  %v1787_v62 = vadd.f32 %v1771_v32, %v3660_v49  ;;  %v1569_v55 = vadd.f32 %v1553_v13, %v1466_v31  ;;  %v1257_v37 = vpop.f32.mrf.mxu1  ;;  %v1476_v27 = vpop.f32.mrf.mxu0 }
 0x169   : > { %v1701_v12 = vadd.f32 %v1700_v15, %v1685_v63  ;;  %v1818_v60 = vadd.f32 %v1802_v42, %v1786_v40  ;;  %v1671_v50 = vadd.f32 %v3667_v20, %v1524_v45  ;;  %v1525_v41 = vadd.f32 %v1255_v59, %v4030_v26  ;;  %v2023_v26 = vld [vmem:[%s3177_s18 + $0x8] sm:$0xff] (%p2694_p5) }
 0x16a   : > { %v1826_v22 = vadd.f32 %v1825_v57, %v1815_v17  ;;  %v1572_v21 = vadd.f32 %v2482_v56, %v1556_v53  ;;  %2429 = vst [vmem:[%s3177_s18 + $0x1d0] sm:$0xff] %v1569_v55  ;;  %v1684_v47 = vadd.f32 %v3730_v39, %v1569_v55  ;;  %v1801_v30 = vmul.f32 %v1569_v55, %v1569_v55  ;;  %v1261_v33 = vpop.f32.mrf.mxu1  ;;  %v2485_v40 = vpop.f32.mrf.mxu0 }
 0x16b   : > { %v1834_v28 = vadd.f32 %v1833_v46, %v1818_v60  ;;  %v1571_v49 = vadd.f32 %v1555_v6, %v1476_v27  ;;  %v1788_v44 = vadd.f32 %v1772_v54, %v3683_v18  ;;  %2417 = vst [vmem:[%s3177_s18 + $0x170] sm:$0xff] %v1525_v41  ;;  %v1557_v20 = vadd.f32 %v3689_v38, %v1257_v37 }
 0x16c   : > { %2432 = vst [vmem:[%s3177_s18 + $0x1e8] sm:$0xff] %v1572_v21  ;;  %v1687_v11 = vadd.f32 %v1671_v50, %v1572_v21  ;;  %v1804_v13 = vmul.f32 %v1572_v21, %v1572_v21  ;;  %v1694_v9 = vadd.f32 %v1693_v58, %v1684_v47  ;;  %v1817_v24 = vadd.f32 %v1801_v30, %v3736_v43  ;;  %v1263_v39 = vpop.f32.mrf.mxu1  ;;  %v1486_v3 = vpop.f32.mrf.mxu0  ;;  %v2021_v50 = vld [vmem:[%s3177_s18] sm:$0xff] (%p2694_p5)  ;;  %v2027_v21 = vld [vmem:[%s3177_s18 + $0x18] sm:$0xff] (%p2694_p5)  ;;  %v2031_v47 = vld [vmem:[%s3177_s18 + $0x28] sm:$0xff] (%p2694_p5) }
 0x16d   : > { %2431 = vst [vmem:[%s3177_s18 + $0x1e0] sm:$0xff] %v1571_v49  ;;  %v1686_v23 = vadd.f32 %v1670_v19, %v1571_v49  ;;  %v1803_v7 = vmul.f32 %v1571_v49, %v1571_v49  ;;  %v1773_v48 = vmul.f32 %v1525_v41, %v1525_v41  ;;  %v1526_v18 = vadd.f32 %v1261_v33, %v4031_v34  ;;  %v2033_v30 = vld [vmem:[%s3177_s18 + $0x30] sm:$0xff] (%p2694_p5)  ;;  %v2035_v49 = vld [vmem:[%s3177_s18 + $0x38] sm:$0xff] (%p2694_p5)  ;;  %v2037_v33 = vld [vmem:[%s3177_s18 + $0x40] sm:$0xff] (%p2694_p5) }
 0x16e   : > { %v1702_v6 = vadd.f32 %v1701_v12, %v1687_v11  ;;  %v1820_v0 = vadd.f32 %v1804_v13, %v1788_v44  ;;  %v1827_v51 = vadd.f32 %v1826_v22, %v1817_v24  ;;  %v1558_v38 = vadd.f32 %v3722_v14, %v1263_v39  ;;  %v2041_v44 = vld [vmem:[%s3177_s18 + $0x50] sm:$0xff] (%p2694_p5)  ;;  %v2043_v11 = vld [vmem:[%s3177_s18 + $0x58] sm:$0xff] (%p2694_p5)  ;;  %2022 = vst [vmem:[%s3816_s24] sm:$0xff] (%p2694_p5), %v2021_v50  ;;  %v2045_v13 = vld [vmem:[%s3177_s18 + $0x60] sm:$0xff] (%p2694_p5) }
 0x16f   : > { %v1695_v35 = vadd.f32 %v1694_v9, %v1686_v23  ;;  %v1819_v29 = vadd.f32 %v1803_v7, %v1787_v62  ;;  %v1672_v43 = vadd.f32 %v3686_v52, %v1525_v41  ;;  %2418 = vst [vmem:[%s3177_s18 + $0x178] sm:$0xff] %v1526_v18  ;;  %v1774_v32 = vmul.f32 %v1526_v18, %v1526_v18  ;;  %v2025_v41 = vld [vmem:[%s3177_s18 + $0x10] sm:$0xff] (%p2694_p5)  ;;  %v2051_v24 = vld [vmem:[%s3177_s18 + $0x78] sm:$0xff] (%p2694_p5)  ;;  %v2053_v23 = vld [vmem:[%s3177_s18 + $0x80] sm:$0xff] (%p2694_p5) }
 0x170   : > { %v1835_v4 = vadd.f32 %v1834_v28, %v1820_v0  ;;  %v1573_v15 = vadd.f32 %v1557_v20, %v1486_v3  ;;  %v1758_v45 = vadd.f32 %v3712_v16, %v4032_v5  ;;  %v1673_v1 = vadd.f32 %v3710_v36, %v1526_v18  ;;  %v2029_v28 = vld [vmem:[%s3177_s18 + $0x20] sm:$0xff] (%p2694_p5)  ;;  %2024 = vst [vmem:[%s3816_s24 + $0x8] sm:$0xff] (%p2694_p5), %v2023_v26  ;;  %v2047_v20 = vld [vmem:[%s3177_s18 + $0x68] sm:$0xff] (%p2694_p5)  ;;  %v2049_v9 = vld [vmem:[%s3177_s18 + $0x70] sm:$0xff] (%p2694_p5) }
 0x171   : > { %v1828_v61 = vadd.f32 %v1827_v51, %v1819_v29  ;;  %v1574_v31 = vadd.f32 %v2485_v40, %v1558_v38  ;;  %v1789_v57 = vadd.f32 %v1773_v48, %v3696_v8  ;;  %v2039_v40 = vld [vmem:[%s3177_s18 + $0x48] sm:$0xff] (%p2694_p5)  ;;  %2026 = vst [vmem:[%s3816_s24 + $0x10] sm:$0xff] (%p2694_p5), %v2025_v41  ;;  %2028 = vst [vmem:[%s3816_s24 + $0x18] sm:$0xff] (%p2694_p5), %v2027_v21  ;;  %v2057_v39 = vld [vmem:[%s3177_s18 + $0x90] sm:$0xff] (%p2694_p5) }
 0x172   : > { %2433 = vst [vmem:[%s3177_s18 + $0x1f0] sm:$0xff] %v1573_v15  ;;  %v1688_v14 = vadd.f32 %v1672_v43, %v1573_v15  ;;  %v1805_v25 = vmul.f32 %v1573_v15, %v1573_v15  ;;  %v1790_v52 = vadd.f32 %v1774_v32, %v1758_v45  ;;  %2030 = vst [vmem:[%s3816_s24 + $0x20] sm:$0xff] (%p2694_p5), %v2029_v28  ;;  %v2055_v7 = vld [vmem:[%s3177_s18 + $0x88] sm:$0xff] (%p2694_p5)  ;;  %v2059_v3 = vld [vmem:[%s3177_s18 + $0x98] sm:$0xff] (%p2694_p5) }
 0x173   : > { %2434 = vst [vmem:[%s3177_s18 + $0x1f8] sm:$0xff] %v1574_v31  ;;  %v1689_v2 = vadd.f32 %v1673_v1, %v1574_v31  ;;  %v1806_v10 = vmul.f32 %v1574_v31, %v1574_v31  ;;  %2032 = vst [vmem:[%s3816_s24 + $0x28] sm:$0xff] (%p2694_p5), %v2031_v47  ;;  %v2061_v48 = vld [vmem:[%s3177_s18 + $0xa0] sm:$0xff] (%p2694_p5)  ;;  %v2065_v0 = vld [vmem:[%s3177_s18 + $0xb0] sm:$0xff] (%p2694_p5) }
 0x174   : > { %v1696_v19 = vadd.f32 %v1695_v35, %v1688_v14  ;;  %v1821_v54 = vadd.f32 %v1805_v25, %v1789_v57  ;;  %2034 = vst [vmem:[%s3816_s24 + $0x30] sm:$0xff] (%p2694_p5), %v2033_v30  ;;  %2036 = vst [vmem:[%s3816_s24 + $0x38] sm:$0xff] (%p2694_p5), %v2035_v49  ;;  %v2067_v34 = vld [vmem:[%s3177_s18 + $0xb8] sm:$0xff] (%p2694_p5)  ;;  %v2069_v18 = vld [vmem:[%s3177_s18 + $0xc0] sm:$0xff] (%p2694_p5) }
 0x175   : > { %v1703_v63 = vadd.f32 %v1702_v6, %v1689_v2  ;;  %v1822_v16 = vadd.f32 %v1806_v10, %v1790_v52  ;;  %2038 = vst [vmem:[%s3816_s24 + $0x40] sm:$0xff] (%p2694_p5), %v2037_v33  ;;  %2040 = vst [vmem:[%s3816_s24 + $0x48] sm:$0xff] (%p2694_p5), %v2039_v40  ;;  %v2063_v6 = vld [vmem:[%s3177_s18 + $0xa8] sm:$0xff] (%p2694_p5)  ;;  %v2073_v35 = vld [vmem:[%s3177_s18 + $0xd0] sm:$0xff] (%p2694_p5) }
 0x176   : > { %v1829_v42 = vadd.f32 %v1828_v61, %v1821_v54  ;;  %2042 = vst [vmem:[%s3816_s24 + $0x50] sm:$0xff] (%p2694_p5), %v2041_v44  ;;  %2044 = vst [vmem:[%s3816_s24 + $0x58] sm:$0xff] (%p2694_p5), %v2043_v11  ;;  %v2071_v51 = vld [vmem:[%s3177_s18 + $0xc8] sm:$0xff] (%p2694_p5)  ;;  %v2075_v29 = vld [vmem:[%s3177_s18 + $0xd8] sm:$0xff] (%p2694_p5) }
 0x177   : > { %v1836_v59 = vadd.f32 %v1835_v4, %v1822_v16  ;;  %v1704_v36 = vadd.f32 %v1703_v63, %v1696_v19  ;;  %2046 = vst [vmem:[%s3816_s24 + $0x60] sm:$0xff] (%p2694_p5), %v2045_v13  ;;  %2048 = vst [vmem:[%s3816_s24 + $0x68] sm:$0xff] (%p2694_p5), %v2047_v20  ;;  %v2077_v38 = vld [vmem:[%s3177_s18 + $0xe0] sm:$0xff] (%p2694_p5)  ;;  %v2079_v43 = vld [vmem:[%s3177_s18 + $0xe8] sm:$0xff] (%p2694_p5) }
 0x178   : > { %2050 = vst [vmem:[%s3816_s24 + $0x70] sm:$0xff] (%p2694_p5), %v2049_v9  ;;  %2052 = vst [vmem:[%s3816_s24 + $0x78] sm:$0xff] (%p2694_p5), %v2051_v24  ;;  %v2081_v4 = vld [vmem:[%s3177_s18 + $0xf0] sm:$0xff] (%p2694_p5)  ;;  %v2083_v32 = vld [vmem:[%s3177_s18 + $0xf8] sm:$0xff] (%p2694_p5) }
 0x179   : > { %v1705_v8 = vrot.slane %v1704_v36, 4  ;;  %v1837_v56 = vadd.f32 %v1836_v59, %v1829_v42  ;;  %2054 = vst [vmem:[%s3816_s24 + $0x100] sm:$0xff] (%p2694_p5), %v2053_v23  ;;  %2056 = vst [vmem:[%s3816_s24 + $0x108] sm:$0xff] (%p2694_p5), %v2055_v7  ;;  %v2085_v15 = vld [vmem:[%s3177_s18 + $0x100] sm:$0xff] (%p2694_p5)  ;;  %v2087_v5 = vld [vmem:[%s3177_s18 + $0x108] sm:$0xff] (%p2694_p5) }
 0x17a   : > { %2058 = vst [vmem:[%s3816_s24 + $0x110] sm:$0xff] (%p2694_p5), %v2057_v39  ;;  %2060 = vst [vmem:[%s3816_s24 + $0x118] sm:$0xff] (%p2694_p5), %v2059_v3  ;;  %v2089_v45 = vld [vmem:[%s3177_s18 + $0x110] sm:$0xff] (%p2694_p5)  ;;  %v2091_v61 = vld [vmem:[%s3177_s18 + $0x118] sm:$0xff] (%p2694_p5) }
 0x17b   : > { %v1706_v46 = vadd.f32 %v1705_v8, %v1704_v36  ;;  %v1838_v58 = vrot.slane %v1837_v56, 4  ;;  %2062 = vst [vmem:[%s3816_s24 + $0x120] sm:$0xff] (%p2694_p5), %v2061_v48  ;;  %2064 = vst [vmem:[%s3816_s24 + $0x128] sm:$0xff] (%p2694_p5), %v2063_v6  ;;  %v2093_v1 = vld [vmem:[%s3177_s18 + $0x120] sm:$0xff] (%p2694_p5)  ;;  %v2095_v31 = vld [vmem:[%s3177_s18 + $0x128] sm:$0xff] (%p2694_p5) }
 0x17c   : > { %2066 = vst [vmem:[%s3816_s24 + $0x130] sm:$0xff] (%p2694_p5), %v2065_v0  ;;  %2068 = vst [vmem:[%s3816_s24 + $0x138] sm:$0xff] (%p2694_p5), %v2067_v34  ;;  %v2097_v57 = vld [vmem:[%s3177_s18 + $0x130] sm:$0xff] (%p2694_p5)  ;;  %v2099_v14 = vld [vmem:[%s3177_s18 + $0x138] sm:$0xff] (%p2694_p5) }
 0x17d   : > { %v1707_v17 = vrot.slane %v1706_v46, 2  ;;  %v1839_v53 = vadd.f32 %v1838_v58, %v1837_v56  ;;  %2070 = vst [vmem:[%s3816_s24 + $0x140] sm:$0xff] (%p2694_p5), %v2069_v18  ;;  %2072 = vst [vmem:[%s3816_s24 + $0x148] sm:$0xff] (%p2694_p5), %v2071_v51  ;;  %v2101_v25 = vld [vmem:[%s3177_s18 + $0x140] sm:$0xff] (%p2694_p5)  ;;  %v2103_v52 = vld [vmem:[%s3177_s18 + $0x148] sm:$0xff] (%p2694_p5) }
 0x17e   : > { %2074 = vst [vmem:[%s3816_s24 + $0x150] sm:$0xff] (%p2694_p5), %v2073_v35  ;;  %2076 = vst [vmem:[%s3816_s24 + $0x158] sm:$0xff] (%p2694_p5), %v2075_v29  ;;  %v2105_v2 = vld [vmem:[%s3177_s18 + $0x150] sm:$0xff] (%p2694_p5)  ;;  %v2107_v10 = vld [vmem:[%s3177_s18 + $0x158] sm:$0xff] (%p2694_p5) }
 0x17f   : > { %v1708_v62 = vadd.f32 %v1707_v17, %v1706_v46  ;;  %v1840_v12 = vrot.slane %v1839_v53, 2  ;;  %2078 = vst [vmem:[%s3816_s24 + $0x160] sm:$0xff] (%p2694_p5), %v2077_v38  ;;  %2080 = vst [vmem:[%s3816_s24 + $0x168] sm:$0xff] (%p2694_p5), %v2079_v43  ;;  %v2109_v19 = vld [vmem:[%s3177_s18 + $0x160] sm:$0xff] (%p2694_p5)  ;;  %v2111_v54 = vld [vmem:[%s3177_s18 + $0x168] sm:$0xff] (%p2694_p5) }
 0x180   : > { %2082 = vst [vmem:[%s3816_s24 + $0x170] sm:$0xff] (%p2694_p5), %v2081_v4  ;;  %2084 = vst [vmem:[%s3816_s24 + $0x178] sm:$0xff] (%p2694_p5), %v2083_v32  ;;  %v2113_v63 = vld [vmem:[%s3177_s18 + $0x170] sm:$0xff] (%p2694_p5)  ;;  %v2115_v16 = vld [vmem:[%s3177_s18 + $0x178] sm:$0xff] (%p2694_p5) }
 0x181   : > { %v1709_v60 = vrot.slane %v1708_v62, 1  ;;  %v1841_v55 = vadd.f32 %v1840_v12, %v1839_v53  ;;  %2086 = vst [vmem:[%s3816_s24 + $0x200] sm:$0xff] (%p2694_p5), %v2085_v15  ;;  %2088 = vst [vmem:[%s3816_s24 + $0x208] sm:$0xff] (%p2694_p5), %v2087_v5  ;;  %v2117_v42 = vld [vmem:[%s3177_s18 + $0x180] sm:$0xff] (%p2694_p5)  ;;  %v2119_v59 = vld [vmem:[%s3177_s18 + $0x188] sm:$0xff] (%p2694_p5) }
 0x182   : > { %2090 = vst [vmem:[%s3816_s24 + $0x210] sm:$0xff] (%p2694_p5), %v2089_v45  ;;  %2092 = vst [vmem:[%s3816_s24 + $0x218] sm:$0xff] (%p2694_p5), %v2091_v61  ;;  %v2121_v36 = vld [vmem:[%s3177_s18 + $0x190] sm:$0xff] (%p2694_p5)  ;;  %v2123_v8 = vld [vmem:[%s3177_s18 + $0x198] sm:$0xff] (%p2694_p5) }
 0x183   : > { %v1710_v37 = vadd.f32 %v1709_v60, %v1708_v62  ;;  %v1842_v27 = vrot.slane %v1841_v55, 1  ;;  %1860 = sbr.rel (!%p2694_p5) target bundleno = 402 (0x192), region = 48  ;;  %2094 = vst [vmem:[%s3816_s24 + $0x220] sm:$0xff] (%p2694_p5), %v2093_v1  ;;  %2096 = vst [vmem:[%s3816_s24 + $0x228] sm:$0xff] (%p2694_p5), %v2095_v31  ;;  %v2125_v56 = vld [vmem:[%s3177_s18 + $0x1a0] sm:$0xff] (%p2694_p5)  ;;  %v2127_v46 = vld [vmem:[%s3177_s18 + $0x1a8] sm:$0xff] (%p2694_p5) }
 0x184   : > { %2098 = vst [vmem:[%s3816_s24 + $0x230] sm:$0xff] (%p2694_p5), %v2097_v57  ;;  %2100 = vst [vmem:[%s3816_s24 + $0x238] sm:$0xff] (%p2694_p5), %v2099_v14  ;;  %v2129_v58 = vld [vmem:[%s3177_s18 + $0x1b0] sm:$0xff] (%p2694_p5)  ;;  %v2131_v17 = vld [vmem:[%s3177_s18 + $0x1b8] sm:$0xff] (%p2694_p5) }
 0x185   : > { %v1843_v22 = vadd.f32 %v1842_v27, %v1841_v55  ;;  %1844 = vst [vmem:[%s366_s11] sm:$0x1] %v1710_v37  ;;  %2102 = vst [vmem:[%s3816_s24 + $0x240] sm:$0xff] (%p2694_p5), %v2101_v25  ;;  %v2133_v53 = vld [vmem:[%s3177_s18 + $0x1c0] sm:$0xff] (%p2694_p5)  ;;  %v2135_v62 = vld [vmem:[%s3177_s18 + $0x1c8] sm:$0xff] (%p2694_p5) }
 0x186   : > { %2104 = vst [vmem:[%s3816_s24 + $0x248] sm:$0xff] (%p2694_p5), %v2103_v52  ;;  %2106 = vst [vmem:[%s3816_s24 + $0x250] sm:$0xff] (%p2694_p5), %v2105_v2  ;;  %v2137_v12 = vld [vmem:[%s3177_s18 + $0x1d0] sm:$0xff] (%p2694_p5)  ;;  %v2139_v60 = vld [vmem:[%s3177_s18 + $0x1d8] sm:$0xff] (%p2694_p5) }
 0x187   : > { %1845 = vst [vmem:[%s366_s11 + $0x1] sm:$0x1] %v1843_v22  ;;  %2108 = vst [vmem:[%s3816_s24 + $0x258] sm:$0xff] (%p2694_p5), %v2107_v10  ;;  %v2141_v55 = vld [vmem:[%s3177_s18 + $0x1e0] sm:$0xff] (%p2694_p5)  ;;  %v2143_v37 = vld [vmem:[%s3177_s18 + $0x1e8] sm:$0xff] (%p2694_p5) }
 0x188   : > { %2110 = vst [vmem:[%s3816_s24 + $0x260] sm:$0xff] %v2109_v19  ;;  %2112 = vst [vmem:[%s3816_s24 + $0x268] sm:$0xff] %v2111_v54  ;;  %v2145_v27 = vld [vmem:[%s3177_s18 + $0x1f0] sm:$0xff]  ;;  %v2147_v22 = vld [vmem:[%s3177_s18 + $0x1f8] sm:$0xff] }
 0x189   : > { %2114 = vst [vmem:[%s3816_s24 + $0x270] sm:$0xff] %v2113_v63  ;;  %2116 = vst [vmem:[%s3816_s24 + $0x278] sm:$0xff] %v2115_v16 }
 0x18a   : > { %2118 = vst [vmem:[%s3816_s24 + $0x300] sm:$0xff] %v2117_v42  ;;  %2120 = vst [vmem:[%s3816_s24 + $0x308] sm:$0xff] %v2119_v59 }
 0x18b   : > { %2122 = vst [vmem:[%s3816_s24 + $0x310] sm:$0xff] %v2121_v36  ;;  %2124 = vst [vmem:[%s3816_s24 + $0x318] sm:$0xff] %v2123_v8 }
 0x18c   : > { %2126 = vst [vmem:[%s3816_s24 + $0x320] sm:$0xff] %v2125_v56  ;;  %2128 = vst [vmem:[%s3816_s24 + $0x328] sm:$0xff] %v2127_v46 }
 0x18d   : > { %2130 = vst [vmem:[%s3816_s24 + $0x330] sm:$0xff] %v2129_v58  ;;  %2132 = vst [vmem:[%s3816_s24 + $0x338] sm:$0xff] %v2131_v17 }
 0x18e   : > { %2134 = vst [vmem:[%s3816_s24 + $0x340] sm:$0xff] %v2133_v53  ;;  %2136 = vst [vmem:[%s3816_s24 + $0x348] sm:$0xff] %v2135_v62 }
 0x18f   : > { %2138 = vst [vmem:[%s3816_s24 + $0x350] sm:$0xff] %v2137_v12  ;;  %2140 = vst [vmem:[%s3816_s24 + $0x358] sm:$0xff] %v2139_v60 }
 0x190   : > { %2142 = vst [vmem:[%s3816_s24 + $0x360] sm:$0xff] %v2141_v55  ;;  %2144 = vst [vmem:[%s3816_s24 + $0x368] sm:$0xff] %v2143_v37 }
 0x191   : > { %2146 = vst [vmem:[%s3816_s24 + $0x370] sm:$0xff] %v2145_v27  ;;  %2148 = vst [vmem:[%s3816_s24 + $0x378] sm:$0xff] %v2147_v22 }
 0x192 PF: > { %s18_s30 = sadd.s32 1, %s2605_s30   ;;  %s4033_s24 = smov %s2585_s25 }
 0x193   : > { %p15_p12 = scmp.ge.s32.totalorder %s18_s30, 6   ;;  %s4034_s25 = smov %s2705_s16 }
 0x194   : > { %s4035_s26 = smov %s2597_s28  ;;  %s4036_s27 = smov %s2601_s29 }
 0x195   : > { %s4037_s28 = smov %s4040_s8  ;;  %s4038_s29 = smov %s4044_s9 }
 0x196   :  { %17 = sbr.rel (!%p15_p12) target bundleno = 4 (0x4), region = 130 }

</bundles_post_ra>
